<compile_context>
chip_gen: v7x
topology: tpu7x:2x2x1
jax: 0.10.0
libtpu: 0.0.40
codegen_flags: <defaults>
</compile_context>

<pallas_src>
import jax
import jax.numpy as jnp
import numpy as np
from jax import lax
from jax.experimental import pallas as pl
from jax.experimental.pallas import tpu as pltpu

# 3x3 tap order shared by the kernel and the wrapper weight packing (dy-major).
_TAPS = tuple((dy, dx) for dy in range(3) for dx in range(3))


def decoder_block_kernel(x_ref, w1_ref, b1_ref, w2_ref, b2_ref, out_ref, mid_ref):
    # x_ref  : (H+4, W+2, Cin)        one batch element, rows zero-padded by 2, cols by 1 (bf16)
    # w1_ref : (9, Cin, Cmid)         conv3x3 taps (bf16)
    # b1_ref : (1, Cmid)              f32
    # w2_ref : (9, Cmid, Cpack)       merged deconv taps, all 4 phases packed in lanes (bf16)
    # b2_ref : (1, Cpack)             f32 (bias tiled over phases, zero in pad lanes)
    # out_ref: (TILE_H, W, Cpack)     packed polyphase output tile (f32)
    # mid_ref: (TILE_H+2, W+2, Cmid)  scratch: padded conv1+ReLU rows needed by this tile (bf16)
    tile_h, W, cpack = out_ref.shape
    he = tile_h + 2
    cin = x_ref.shape[-1]
    cmid = mid_ref.shape[-1]

    h = pl.program_id(1)
    j0 = pl.multiple_of(h * tile_h, tile_h)

    # ---------- Conv2d 3x3, padding=1 : tap-accumulated im2col (no big patch) ----------
    # Extended rows m in [j0-1, j0+tile_h] are computed (1-row halo recomputed per tile).
    acc1 = jnp.zeros((he * W, cmid), jnp.float32)
    for t, (dy, dx) in enumerate(_TAPS):
        tap = x_ref[pl.ds(j0 + dy, he), dx:dx + W, :].reshape(he * W, cin)
        acc1 += jnp.dot(tap, w1_ref[t], preferred_element_type=jnp.float32)
    mid = jnp.maximum(acc1 + b1_ref[...], 0.0).astype(mid_ref.dtype).reshape(he, W, cmid)

    # Column-pad in registers, one full unmasked store (no 1-wide masked column stores).
    zcol = jnp.zeros((he, 1, cmid), mid_ref.dtype)
    mid_ref[...] = jnp.concatenate([zcol, mid, zcol], axis=1)

    # Rows just outside the image are the deconv's zero padding, not conv output.
    @pl.when(h == 0)
    def _():
        mid_ref[0:1, :, :] = jnp.zeros((1, W + 2, cmid), mid_ref.dtype)

    @pl.when(h == pl.num_programs(1) - 1)
    def _():
        mid_ref[he - 1:he, :, :] = jnp.zeros((1, W + 2, cmid), mid_ref.dtype)

    # ---------- ConvTranspose2d k=4, s=2, p=1 : merged polyphase, tap-accumulated ----------
    # out[2j+r, 2i+s, :] = sum_{a,b in {0,1}} mid_pad[j+r+a, i+s+b, :] @ W2[3-r-2a, 3-s-2b]
    # All 4 phases share the 3x3 window of mid_pad; per-tap weight slabs already carry the
    # packed (r, s, Cout) lane layout, so the accumulator IS the output block (no relayout).
    acc2 = jnp.zeros((tile_h * W, cpack), jnp.float32)
    for t, (dy, dx) in enumerate(_TAPS):
        tap = mid_ref[dy:dy + tile_h, dx:dx + W, :].reshape(tile_h * W, cmid)
        acc2 += jnp.dot(tap, w2_ref[t], preferred_element_type=jnp.float32)
    out_ref[...] = jnp.maximum(acc2 + b2_ref[...], 0.0).reshape(
        tile_h, W, cpack).astype(out_ref.dtype)


def _pick_tile_h(H, W, Cin, Cmid, Cpack, vmem_limit):
    """Largest divisor of H whose per-step working set fits the VMEM budget, capped at
    H//2 (when H >= 16) so there are >= 2 h-steps and the pipeline actually overlaps."""
    fixed = (2 * (H + 4) * (W + 2) * Cin * 2        # padded input (double-buffered)
             + 2 * 9 * Cin * Cmid * 2               # conv1 weights
             + 2 * 9 * Cmid * Cpack * 2             # merged deconv weights
             + 2 * (Cmid + Cpack) * 4)              # biases
    budget = max(vmem_limit - fixed, 1 << 20)
    cap = H // 2 if H >= 16 else H
    tile = 1
    for t in range(1, cap + 1):
        if H % t:
            continue
        he = t + 2
        per_step = (he * (W + 2) * Cmid * 2         # mid scratch (bf16)
                    + he * W * Cin * 2              # live conv tap (bf16)
                    + he * W * Cmid * 4             # conv1 f32 accumulator
                    + t * W * Cmid * 2              # deconv tap (bf16)
                    + 3 * t * W * Cpack * 4)        # deconv acc + double-buffered out block
        if per_step <= budget:
            tile = t
    return tile


def decoder_block_v2(x_nchw, w1, b1, w2, b2):
    """x_nchw: (N, Cin, H, W); w1: (Cmid, Cin, 3, 3); w2: (Cmid, Cout, 4, 4) (PyTorch layouts)."""
    N, Cin, H, W = x_nchw.shape
    Cmid = w1.shape[0]
    Cout = w2.shape[1]
    cpack = ((4 * Cout + 127) // 128) * 128         # lane-dense packed polyphase width

    # Glue in bf16 (halves HBM traffic of the layout conversion): NHWC, rows padded by 2
    # (so the halo conv rows slice uniformly), cols padded by 1 (conv padding).
    x = jnp.transpose(x_nchw.astype(jnp.bfloat16), (0, 2, 3, 1))
    xp = jnp.pad(x, ((0, 0), (2, 2), (1, 1), (0, 0)))

    # Conv1 weights: (9, Cin, Cmid) in _TAPS order (dy-major).
    w1m = jnp.transpose(w1, (2, 3, 1, 0)).reshape(9, Cin, Cmid).astype(jnp.bfloat16)
    b1_2d = b1.reshape(1, Cmid).astype(jnp.float32)

    # Merged deconv weights: one (Cmid, Cpack) slab per 3x3 tap of the padded conv1 output;
    # phase p = 2r+s occupies lanes [p*Cout, (p+1)*Cout); taps unused by a phase are zero.
    w2_hwio = jnp.transpose(w2, (2, 3, 0, 1)).astype(jnp.float32)   # (kh, kw, Cmid, Cout)
    zero_blk = jnp.zeros((Cmid, Cout), jnp.float32)
    taps = []
    for dy, dx in _TAPS:
        cols = []
        for r in range(2):
            for s in range(2):
                a, b = dy - r, dx - s
                if 0 <= a <= 1 and 0 <= b <= 1:
                    cols.append(w2_hwio[3 - r - 2 * a, 3 - s - 2 * b])
                else:
                    cols.append(zero_blk)
        taps.append(jnp.concatenate(cols, axis=1))                  # (Cmid, 4*Cout)
    w2m = jnp.stack(taps, axis=0)                                   # (9, Cmid, 4*Cout)
    w2m = jnp.pad(w2m, ((0, 0), (0, 0), (0, cpack - 4 * Cout))).astype(jnp.bfloat16)
    b2p = jnp.pad(jnp.tile(b2.astype(jnp.float32), 4),
                  (0, cpack - 4 * Cout)).reshape(1, cpack)

    # Generation-aware VMEM budget (~112 MiB on 128 MiB parts, ~56 MiB on v7x) and H tile.
    try:
        vmem_cap = int(pltpu.get_tpu_info().vmem_capacity_bytes)
    except Exception:
        vmem_cap = 64 * 1024 * 1024
    vmem_limit = vmem_cap * 7 // 8
    tile_h = _pick_tile_h(H, W, Cin, Cmid, cpack, vmem_limit)
    nh = H // tile_h

    out = pl.pallas_call(
        decoder_block_kernel,
        out_shape=jax.ShapeDtypeStruct((N, H, W, cpack), jnp.float32),
        grid=(N, nh),
        in_specs=[
            # Whole padded frame per batch element; index constant over h -> DMA'd once per n.
            pl.BlockSpec((None, H + 4, W + 2, Cin), lambda n, h: (n, 0, 0, 0)),
            pl.BlockSpec((9, Cin, Cmid), lambda n, h: (0, 0, 0)),
            pl.BlockSpec((1, Cmid), lambda n, h: (0, 0)),
            pl.BlockSpec((9, Cmid, cpack), lambda n, h: (0, 0, 0)),
            pl.BlockSpec((1, cpack), lambda n, h: (0, 0)),
        ],
        out_specs=pl.BlockSpec((None, tile_h, W, cpack), lambda n, h: (n, h, 0, 0)),
        scratch_shapes=[pltpu.VMEM((tile_h + 2, W + 2, Cmid), jnp.bfloat16)],
        compiler_params=pltpu.CompilerParams(
            dimension_semantics=("parallel", "arbitrary"),
            vmem_limit_bytes=vmem_limit),
    )(xp, w1m, b1_2d, w2m, b2p)

    # Un-pack the polyphase lanes: (N, H, W, Cpack) -> (N, 2H, 2W, Cout) -> NCHW.
    y = out[:, :, :, :4 * Cout].reshape(N, H, W, 2, 2, Cout)
    y = jnp.transpose(y, (0, 1, 3, 2, 4, 5)).reshape(N, 2 * H, 2 * W, Cout)
    return jnp.transpose(y, (0, 3, 1, 2))


def reference(x, w1, b1, w2, b2):
    """Pure-JAX f32 reference matching PyTorch semantics (NCHW)."""
    y = lax.conv_general_dilated(x, w1, (1, 1), ((1, 1), (1, 1)),
                                 dimension_numbers=('NCHW', 'OIHW', 'NCHW'))
    y = jax.nn.relu(y + b1[None, :, None, None])
    # ConvTranspose2d == lhs-dilated conv with flipped, IO-transposed kernel, pad = k-1-p = 2
    w2c = jnp.flip(jnp.transpose(w2, (1, 0, 2, 3)), axis=(2, 3))
    z = lax.conv_general_dilated(y, w2c, (1, 1), ((2, 2), (2, 2)),
                                 lhs_dilation=(2, 2),
                                 dimension_numbers=('NCHW', 'OIHW', 'NCHW'))
    z = jax.nn.relu(z + b2[None, :, None, None])
    return z


if __name__ == "__main__":
    N, Cin, H, W = 2, 4, 16, 16
    Cmid, Cout = 8, 5

    key = jax.random.PRNGKey(0)
    k = jax.random.split(key, 5)
    x = jax.random.normal(k[0], (N, Cin, H, W), jnp.float32)
    w1 = 0.1 * jax.random.normal(k[1], (Cmid, Cin, 3, 3), jnp.float32)
    b1 = 0.1 * jax.random.normal(k[2], (Cmid,), jnp.float32)
    w2 = 0.1 * jax.random.normal(k[3], (Cmid, Cout, 4, 4), jnp.float32)
    b2 = 0.1 * jax.random.normal(k[4], (Cout,), jnp.float32)

    out = jax.jit(decoder_block_v2)(x, w1, b1, w2, b2)
    out = jax.block_until_ready(out)
    assert out.shape == (N, Cout, 2 * H, 2 * W), out.shape

    ref = reference(x, w1, b1, w2, b2)
    # Tolerance reflects bf16 operand quantization (f32 accumulation) vs the f32 reference.
    np.testing.assert_allclose(np.asarray(out), np.asarray(ref), rtol=2e-2, atol=2e-2)

    print("KERNEL_OK")
</pallas_src>

<mosaic_0001>
module attributes {stable_mosaic.version = 11 : i64} {
  func.func @decoder_block_kernel(%arg0: i32, %arg1: i32, %arg2: memref<1x20x18x4xbf16, #tpu.memory_space<vmem>>, %arg3: memref<9x4x8xbf16, #tpu.memory_space<vmem>>, %arg4: memref<1x8xf32, #tpu.memory_space<vmem>>, %arg5: memref<9x8x128xbf16, #tpu.memory_space<vmem>>, %arg6: memref<1x128xf32, #tpu.memory_space<vmem>>, %arg7: memref<1x8x16x128xf32, #tpu.memory_space<vmem>>, %arg8: memref<10x18x8xbf16, #tpu.memory_space<vmem>>) attributes {dimension_semantics = [#tpu.dimension_semantics<parallel>, #tpu.dimension_semantics<arbitrary>], iteration_bounds = array<i64: 2, 2>, scalar_prefetch = 0 : i64, scratch_operands = 1 : i64, tpu.core_type = #tpu.core_type<tc>, window_params = [{transform_indices = @transform_0, window_bounds = array<i64: 1, 20, 18, 4>}, {pipeline_mode = #tpu.pipeline_mode<synchronous>, transform_indices = @transform_1, window_bounds = array<i64: 9, 4, 8>}, {pipeline_mode = #tpu.pipeline_mode<synchronous>, transform_indices = @transform_2, window_bounds = array<i64: 1, 8>}, {pipeline_mode = #tpu.pipeline_mode<synchronous>, transform_indices = @transform_3, window_bounds = array<i64: 9, 8, 128>}, {pipeline_mode = #tpu.pipeline_mode<synchronous>, transform_indices = @transform_4, window_bounds = array<i64: 1, 128>}, {transform_indices = @transform_5, window_bounds = array<i64: 1, 8, 16, 128>}]} {
    %c8_i32 = arith.constant 8 : i32
    %0 = arith.muli %arg1, %c8_i32 : i32
    %1 = tpu.assume_multiple %0, 8 : i32
    %cst = arith.constant 0.000000e+00 : f32
    %2 = vector.broadcast %cst : f32 to vector<160x8xf32>
    %c0_i32 = arith.constant 0 : i32
    %3 = arith.addi %1, %c0_i32 : i32
    %c0 = arith.constant 0 : index
    %4 = arith.index_cast %3 : i32 to index
    %c0_0 = arith.constant 0 : index
    %c0_1 = arith.constant 0 : index
    %5 = vector.load %arg2[%c0, %4, %c0_0, %c0_1] : memref<1x20x18x4xbf16, #tpu.memory_space<vmem>>, vector<1x10x16x4xbf16>
    %6 = vector.shape_cast %5 : vector<1x10x16x4xbf16> to vector<10x16x4xbf16>
    %7 = vector.shape_cast %6 : vector<10x16x4xbf16> to vector<160x4xbf16>
    %c0_2 = arith.constant 0 : index
    %c0_3 = arith.constant 0 : index
    %c0_4 = arith.constant 0 : index
    %8 = vector.load %arg3[%c0_2, %c0_3, %c0_4] : memref<9x4x8xbf16, #tpu.memory_space<vmem>>, vector<1x4x8xbf16>
    %9 = vector.shape_cast %8 : vector<1x4x8xbf16> to vector<4x8xbf16>
    %cst_5 = arith.constant dense<0.000000e+00> : vector<160x8xf32>
    %10 = tpu.matmul %7, %9, %cst_5 {dimension_numbers = #tpu.dot_dimension_numbers<[1], [0], [0], [1], [0, 0, 1, 1], [], []>} : vector<160x4xbf16>, vector<4x8xbf16>, vector<160x8xf32> -> vector<160x8xf32>
    %11 = arith.addf %2, %10 : vector<160x8xf32>
    %c0_i32_6 = arith.constant 0 : i32
    %12 = arith.addi %1, %c0_i32_6 : i32
    %c0_7 = arith.constant 0 : index
    %13 = arith.index_cast %12 : i32 to index
    %c1 = arith.constant 1 : index
    %c0_8 = arith.constant 0 : index
    %14 = vector.load %arg2[%c0_7, %13, %c1, %c0_8] : memref<1x20x18x4xbf16, #tpu.memory_space<vmem>>, vector<1x10x16x4xbf16>
    %15 = vector.shape_cast %14 : vector<1x10x16x4xbf16> to vector<10x16x4xbf16>
    %16 = vector.shape_cast %15 : vector<10x16x4xbf16> to vector<160x4xbf16>
    %c1_9 = arith.constant 1 : index
    %c0_10 = arith.constant 0 : index
    %c0_11 = arith.constant 0 : index
    %17 = vector.load %arg3[%c1_9, %c0_10, %c0_11] : memref<9x4x8xbf16, #tpu.memory_space<vmem>>, vector<1x4x8xbf16>
    %18 = vector.shape_cast %17 : vector<1x4x8xbf16> to vector<4x8xbf16>
    %cst_12 = arith.constant dense<0.000000e+00> : vector<160x8xf32>
    %19 = tpu.matmul %16, %18, %cst_12 {dimension_numbers = #tpu.dot_dimension_numbers<[1], [0], [0], [1], [0, 0, 1, 1], [], []>} : vector<160x4xbf16>, vector<4x8xbf16>, vector<160x8xf32> -> vector<160x8xf32>
    %20 = arith.addf %11, %19 : vector<160x8xf32>
    %c0_i32_13 = arith.constant 0 : i32
    %21 = arith.addi %1, %c0_i32_13 : i32
    %c0_14 = arith.constant 0 : index
    %22 = arith.index_cast %21 : i32 to index
    %c2 = arith.constant 2 : index
    %c0_15 = arith.constant 0 : index
    %23 = vector.load %arg2[%c0_14, %22, %c2, %c0_15] : memref<1x20x18x4xbf16, #tpu.memory_space<vmem>>, vector<1x10x16x4xbf16>
    %24 = vector.shape_cast %23 : vector<1x10x16x4xbf16> to vector<10x16x4xbf16>
    %25 = vector.shape_cast %24 : vector<10x16x4xbf16> to vector<160x4xbf16>
    %c2_16 = arith.constant 2 : index
    %c0_17 = arith.constant 0 : index
    %c0_18 = arith.constant 0 : index
    %26 = vector.load %arg3[%c2_16, %c0_17, %c0_18] : memref<9x4x8xbf16, #tpu.memory_space<vmem>>, vector<1x4x8xbf16>
    %27 = vector.shape_cast %26 : vector<1x4x8xbf16> to vector<4x8xbf16>
    %cst_19 = arith.constant dense<0.000000e+00> : vector<160x8xf32>
    %28 = tpu.matmul %25, %27, %cst_19 {dimension_numbers = #tpu.dot_dimension_numbers<[1], [0], [0], [1], [0, 0, 1, 1], [], []>} : vector<160x4xbf16>, vector<4x8xbf16>, vector<160x8xf32> -> vector<160x8xf32>
    %29 = arith.addf %20, %28 : vector<160x8xf32>
    %c1_i32 = arith.constant 1 : i32
    %30 = arith.addi %1, %c1_i32 : i32
    %c0_20 = arith.constant 0 : index
    %31 = arith.index_cast %30 : i32 to index
    %c0_21 = arith.constant 0 : index
    %c0_22 = arith.constant 0 : index
    %32 = vector.load %arg2[%c0_20, %31, %c0_21, %c0_22] : memref<1x20x18x4xbf16, #tpu.memory_space<vmem>>, vector<1x10x16x4xbf16>
    %33 = vector.shape_cast %32 : vector<1x10x16x4xbf16> to vector<10x16x4xbf16>
    %34 = vector.shape_cast %33 : vector<10x16x4xbf16> to vector<160x4xbf16>
    %c3 = arith.constant 3 : index
    %c0_23 = arith.constant 0 : index
    %c0_24 = arith.constant 0 : index
    %35 = vector.load %arg3[%c3, %c0_23, %c0_24] : memref<9x4x8xbf16, #tpu.memory_space<vmem>>, vector<1x4x8xbf16>
    %36 = vector.shape_cast %35 : vector<1x4x8xbf16> to vector<4x8xbf16>
    %cst_25 = arith.constant dense<0.000000e+00> : vector<160x8xf32>
    %37 = tpu.matmul %34, %36, %cst_25 {dimension_numbers = #tpu.dot_dimension_numbers<[1], [0], [0], [1], [0, 0, 1, 1], [], []>} : vector<160x4xbf16>, vector<4x8xbf16>, vector<160x8xf32> -> vector<160x8xf32>
    %38 = arith.addf %29, %37 : vector<160x8xf32>
    %c1_i32_26 = arith.constant 1 : i32
    %39 = arith.addi %1, %c1_i32_26 : i32
    %c0_27 = arith.constant 0 : index
    %40 = arith.index_cast %39 : i32 to index
    %c1_28 = arith.constant 1 : index
    %c0_29 = arith.constant 0 : index
    %41 = vector.load %arg2[%c0_27, %40, %c1_28, %c0_29] : memref<1x20x18x4xbf16, #tpu.memory_space<vmem>>, vector<1x10x16x4xbf16>
    %42 = vector.shape_cast %41 : vector<1x10x16x4xbf16> to vector<10x16x4xbf16>
    %43 = vector.shape_cast %42 : vector<10x16x4xbf16> to vector<160x4xbf16>
    %c4 = arith.constant 4 : index
    %c0_30 = arith.constant 0 : index
    %c0_31 = arith.constant 0 : index
    %44 = vector.load %arg3[%c4, %c0_30, %c0_31] : memref<9x4x8xbf16, #tpu.memory_space<vmem>>, vector<1x4x8xbf16>
    %45 = vector.shape_cast %44 : vector<1x4x8xbf16> to vector<4x8xbf16>
    %cst_32 = arith.constant dense<0.000000e+00> : vector<160x8xf32>
    %46 = tpu.matmul %43, %45, %cst_32 {dimension_numbers = #tpu.dot_dimension_numbers<[1], [0], [0], [1], [0, 0, 1, 1], [], []>} : vector<160x4xbf16>, vector<4x8xbf16>, vector<160x8xf32> -> vector<160x8xf32>
    %47 = arith.addf %38, %46 : vector<160x8xf32>
    %c1_i32_33 = arith.constant 1 : i32
    %48 = arith.addi %1, %c1_i32_33 : i32
    %c0_34 = arith.constant 0 : index
    %49 = arith.index_cast %48 : i32 to index
    %c2_35 = arith.constant 2 : index
    %c0_36 = arith.constant 0 : index
    %50 = vector.load %arg2[%c0_34, %49, %c2_35, %c0_36] : memref<1x20x18x4xbf16, #tpu.memory_space<vmem>>, vector<1x10x16x4xbf16>
    %51 = vector.shape_cast %50 : vector<1x10x16x4xbf16> to vector<10x16x4xbf16>
    %52 = vector.shape_cast %51 : vector<10x16x4xbf16> to vector<160x4xbf16>
    %c5 = arith.constant 5 : index
    %c0_37 = arith.constant 0 : index
    %c0_38 = arith.constant 0 : index
    %53 = vector.load %arg3[%c5, %c0_37, %c0_38] : memref<9x4x8xbf16, #tpu.memory_space<vmem>>, vector<1x4x8xbf16>
    %54 = vector.shape_cast %53 : vector<1x4x8xbf16> to vector<4x8xbf16>
    %cst_39 = arith.constant dense<0.000000e+00> : vector<160x8xf32>
    %55 = tpu.matmul %52, %54, %cst_39 {dimension_numbers = #tpu.dot_dimension_numbers<[1], [0], [0], [1], [0, 0, 1, 1], [], []>} : vector<160x4xbf16>, vector<4x8xbf16>, vector<160x8xf32> -> vector<160x8xf32>
    %56 = arith.addf %47, %55 : vector<160x8xf32>
    %c2_i32 = arith.constant 2 : i32
    %57 = arith.addi %1, %c2_i32 : i32
    %c0_40 = arith.constant 0 : index
    %58 = arith.index_cast %57 : i32 to index
    %c0_41 = arith.constant 0 : index
    %c0_42 = arith.constant 0 : index
    %59 = vector.load %arg2[%c0_40, %58, %c0_41, %c0_42] : memref<1x20x18x4xbf16, #tpu.memory_space<vmem>>, vector<1x10x16x4xbf16>
    %60 = vector.shape_cast %59 : vector<1x10x16x4xbf16> to vector<10x16x4xbf16>
    %61 = vector.shape_cast %60 : vector<10x16x4xbf16> to vector<160x4xbf16>
    %c6 = arith.constant 6 : index
    %c0_43 = arith.constant 0 : index
    %c0_44 = arith.constant 0 : index
    %62 = vector.load %arg3[%c6, %c0_43, %c0_44] : memref<9x4x8xbf16, #tpu.memory_space<vmem>>, vector<1x4x8xbf16>
    %63 = vector.shape_cast %62 : vector<1x4x8xbf16> to vector<4x8xbf16>
    %cst_45 = arith.constant dense<0.000000e+00> : vector<160x8xf32>
    %64 = tpu.matmul %61, %63, %cst_45 {dimension_numbers = #tpu.dot_dimension_numbers<[1], [0], [0], [1], [0, 0, 1, 1], [], []>} : vector<160x4xbf16>, vector<4x8xbf16>, vector<160x8xf32> -> vector<160x8xf32>
    %65 = arith.addf %56, %64 : vector<160x8xf32>
    %c2_i32_46 = arith.constant 2 : i32
    %66 = arith.addi %1, %c2_i32_46 : i32
    %c0_47 = arith.constant 0 : index
    %67 = arith.index_cast %66 : i32 to index
    %c1_48 = arith.constant 1 : index
    %c0_49 = arith.constant 0 : index
    %68 = vector.load %arg2[%c0_47, %67, %c1_48, %c0_49] : memref<1x20x18x4xbf16, #tpu.memory_space<vmem>>, vector<1x10x16x4xbf16>
    %69 = vector.shape_cast %68 : vector<1x10x16x4xbf16> to vector<10x16x4xbf16>
    %70 = vector.shape_cast %69 : vector<10x16x4xbf16> to vector<160x4xbf16>
    %c7 = arith.constant 7 : index
    %c0_50 = arith.constant 0 : index
    %c0_51 = arith.constant 0 : index
    %71 = vector.load %arg3[%c7, %c0_50, %c0_51] : memref<9x4x8xbf16, #tpu.memory_space<vmem>>, vector<1x4x8xbf16>
    %72 = vector.shape_cast %71 : vector<1x4x8xbf16> to vector<4x8xbf16>
    %cst_52 = arith.constant dense<0.000000e+00> : vector<160x8xf32>
    %73 = tpu.matmul %70, %72, %cst_52 {dimension_numbers = #tpu.dot_dimension_numbers<[1], [0], [0], [1], [0, 0, 1, 1], [], []>} : vector<160x4xbf16>, vector<4x8xbf16>, vector<160x8xf32> -> vector<160x8xf32>
    %74 = arith.addf %65, %73 : vector<160x8xf32>
    %c2_i32_53 = arith.constant 2 : i32
    %75 = arith.addi %1, %c2_i32_53 : i32
    %c0_54 = arith.constant 0 : index
    %76 = arith.index_cast %75 : i32 to index
    %c2_55 = arith.constant 2 : index
    %c0_56 = arith.constant 0 : index
    %77 = vector.load %arg2[%c0_54, %76, %c2_55, %c0_56] : memref<1x20x18x4xbf16, #tpu.memory_space<vmem>>, vector<1x10x16x4xbf16>
    %78 = vector.shape_cast %77 : vector<1x10x16x4xbf16> to vector<10x16x4xbf16>
    %79 = vector.shape_cast %78 : vector<10x16x4xbf16> to vector<160x4xbf16>
    %c8 = arith.constant 8 : index
    %c0_57 = arith.constant 0 : index
    %c0_58 = arith.constant 0 : index
    %80 = vector.load %arg3[%c8, %c0_57, %c0_58] : memref<9x4x8xbf16, #tpu.memory_space<vmem>>, vector<1x4x8xbf16>
    %81 = vector.shape_cast %80 : vector<1x4x8xbf16> to vector<4x8xbf16>
    %cst_59 = arith.constant dense<0.000000e+00> : vector<160x8xf32>
    %82 = tpu.matmul %79, %81, %cst_59 {dimension_numbers = #tpu.dot_dimension_numbers<[1], [0], [0], [1], [0, 0, 1, 1], [], []>} : vector<160x4xbf16>, vector<4x8xbf16>, vector<160x8xf32> -> vector<160x8xf32>
    %83 = arith.addf %74, %82 : vector<160x8xf32>
    %c0_60 = arith.constant 0 : index
    %c0_61 = arith.constant 0 : index
    %84 = vector.load %arg4[%c0_60, %c0_61] : memref<1x8xf32, #tpu.memory_space<vmem>>, vector<1x8xf32>
    %85 = vector.broadcast %84 : vector<1x8xf32> to vector<160x8xf32>
    %86 = arith.addf %83, %85 : vector<160x8xf32>
    %cst_62 = arith.constant 0.000000e+00 : f32
    %87 = vector.broadcast %cst_62 : f32 to vector<160x8xf32>
    %88 = arith.maximumf %86, %87 : vector<160x8xf32>
    %89 = arith.truncf %88 : vector<160x8xf32> to vector<160x8xbf16>
    %90 = vector.shape_cast %89 : vector<160x8xbf16> to vector<10x16x8xbf16>
    %cst_63 = arith.constant 0.000000e+00 : bf16
    %91 = vector.broadcast %cst_63 : bf16 to vector<10x1x8xbf16>
    %92 = tpu.concatenate %91, %90, %91 in 1 : vector<10x1x8xbf16>, vector<10x16x8xbf16>, vector<10x1x8xbf16> -> vector<10x18x8xbf16>
    %c0_64 = arith.constant 0 : index
    %c0_65 = arith.constant 0 : index
    %c0_66 = arith.constant 0 : index
    %93 = vector.load %arg8[%c0_64, %c0_65, %c0_66] : memref<10x18x8xbf16, #tpu.memory_space<vmem>>, vector<10x18x8xbf16>
    tpu.vector_store %arg8[%c0_64, %c0_65, %c0_66], %92 {strides = array<i32>} : memref<10x18x8xbf16, #tpu.memory_space<vmem>>, vector<10x18x8xbf16>,
    %c0_i32_67 = arith.constant 0 : i32
    %94 = arith.cmpi eq, %arg1, %c0_i32_67 : i32
    %95 = arith.extui %94 : i1 to i32
    %c0_i32_68 = arith.constant 0 : i32
    %96 = arith.cmpi ne, %95, %c0_i32_68 : i32
    scf.if %96 {
      %cst_142 = arith.constant 0.000000e+00 : bf16
      %164 = vector.broadcast %cst_142 : bf16 to vector<1x18x8xbf16>
      %c0_143 = arith.constant 0 : index
      %c0_144 = arith.constant 0 : index
      %c0_145 = arith.constant 0 : index
      %165 = vector.load %arg8[%c0_143, %c0_144, %c0_145] : memref<10x18x8xbf16, #tpu.memory_space<vmem>>, vector<1x18x8xbf16>
      tpu.vector_store %arg8[%c0_143, %c0_144, %c0_145], %164 {strides = array<i32>} : memref<10x18x8xbf16, #tpu.memory_space<vmem>>, vector<1x18x8xbf16>,
    } else {
    }
    %c1_i32_69 = arith.constant 1 : i32
    %97 = arith.cmpi eq, %arg1, %c1_i32_69 : i32
    %98 = arith.extui %97 : i1 to i32
    %c0_i32_70 = arith.constant 0 : i32
    %99 = arith.cmpi ne, %98, %c0_i32_70 : i32
    scf.if %99 {
      %cst_142 = arith.constant 0.000000e+00 : bf16
      %164 = vector.broadcast %cst_142 : bf16 to vector<1x18x8xbf16>
      %c9 = arith.constant 9 : index
      %c0_143 = arith.constant 0 : index
      %c0_144 = arith.constant 0 : index
      %165 = vector.load %arg8[%c9, %c0_143, %c0_144] : memref<10x18x8xbf16, #tpu.memory_space<vmem>>, vector<1x18x8xbf16>
      tpu.vector_store %arg8[%c9, %c0_143, %c0_144], %164 {strides = array<i32>} : memref<10x18x8xbf16, #tpu.memory_space<vmem>>, vector<1x18x8xbf16>,
    } else {
    }
    %cst_71 = arith.constant 0.000000e+00 : f32
    %100 = vector.broadcast %cst_71 : f32 to vector<128x128xf32>
    %c0_72 = arith.constant 0 : index
    %c0_73 = arith.constant 0 : index
    %c0_74 = arith.constant 0 : index
    %101 = vector.load %arg8[%c0_72, %c0_73, %c0_74] : memref<10x18x8xbf16, #tpu.memory_space<vmem>>, vector<8x16x8xbf16>
    %102 = vector.shape_cast %101 : vector<8x16x8xbf16> to vector<128x8xbf16>
    %c0_75 = arith.constant 0 : index
    %c0_76 = arith.constant 0 : index
    %c0_77 = arith.constant 0 : index
    %103 = vector.load %arg5[%c0_75, %c0_76, %c0_77] : memref<9x8x128xbf16, #tpu.memory_space<vmem>>, vector<1x8x128xbf16>
    %104 = vector.shape_cast %103 : vector<1x8x128xbf16> to vector<8x128xbf16>
    %cst_78 = arith.constant dense<0.000000e+00> : vector<128x128xf32>
    %105 = tpu.matmul %102, %104, %cst_78 {dimension_numbers = #tpu.dot_dimension_numbers<[1], [0], [0], [1], [0, 0, 1, 1], [], []>} : vector<128x8xbf16>, vector<8x128xbf16>, vector<128x128xf32> -> vector<128x128xf32>
    %106 = arith.addf %100, %105 : vector<128x128xf32>
    %c0_79 = arith.constant 0 : index
    %c1_80 = arith.constant 1 : index
    %c0_81 = arith.constant 0 : index
    %107 = vector.load %arg8[%c0_79, %c1_80, %c0_81] : memref<10x18x8xbf16, #tpu.memory_space<vmem>>, vector<8x16x8xbf16>
    %108 = vector.shape_cast %107 : vector<8x16x8xbf16> to vector<128x8xbf16>
    %c1_82 = arith.constant 1 : index
    %c0_83 = arith.constant 0 : index
    %c0_84 = arith.constant 0 : index
    %109 = vector.load %arg5[%c1_82, %c0_83, %c0_84] : memref<9x8x128xbf16, #tpu.memory_space<vmem>>, vector<1x8x128xbf16>
    %110 = vector.shape_cast %109 : vector<1x8x128xbf16> to vector<8x128xbf16>
    %cst_85 = arith.constant dense<0.000000e+00> : vector<128x128xf32>
    %111 = tpu.matmul %108, %110, %cst_85 {dimension_numbers = #tpu.dot_dimension_numbers<[1], [0], [0], [1], [0, 0, 1, 1], [], []>} : vector<128x8xbf16>, vector<8x128xbf16>, vector<128x128xf32> -> vector<128x128xf32>
    %112 = arith.addf %106, %111 : vector<128x128xf32>
    %c0_86 = arith.constant 0 : index
    %c2_87 = arith.constant 2 : index
    %c0_88 = arith.constant 0 : index
    %113 = vector.load %arg8[%c0_86, %c2_87, %c0_88] : memref<10x18x8xbf16, #tpu.memory_space<vmem>>, vector<8x16x8xbf16>
    %114 = vector.shape_cast %113 : vector<8x16x8xbf16> to vector<128x8xbf16>
    %c2_89 = arith.constant 2 : index
    %c0_90 = arith.constant 0 : index
    %c0_91 = arith.constant 0 : index
    %115 = vector.load %arg5[%c2_89, %c0_90, %c0_91] : memref<9x8x128xbf16, #tpu.memory_space<vmem>>, vector<1x8x128xbf16>
    %116 = vector.shape_cast %115 : vector<1x8x128xbf16> to vector<8x128xbf16>
    %cst_92 = arith.constant dense<0.000000e+00> : vector<128x128xf32>
    %117 = tpu.matmul %114, %116, %cst_92 {dimension_numbers = #tpu.dot_dimension_numbers<[1], [0], [0], [1], [0, 0, 1, 1], [], []>} : vector<128x8xbf16>, vector<8x128xbf16>, vector<128x128xf32> -> vector<128x128xf32>
    %118 = arith.addf %112, %117 : vector<128x128xf32>
    %c1_93 = arith.constant 1 : index
    %c0_94 = arith.constant 0 : index
    %c0_95 = arith.constant 0 : index
    %119 = vector.load %arg8[%c1_93, %c0_94, %c0_95] : memref<10x18x8xbf16, #tpu.memory_space<vmem>>, vector<8x16x8xbf16>
    %120 = vector.shape_cast %119 : vector<8x16x8xbf16> to vector<128x8xbf16>
    %c3_96 = arith.constant 3 : index
    %c0_97 = arith.constant 0 : index
    %c0_98 = arith.constant 0 : index
    %121 = vector.load %arg5[%c3_96, %c0_97, %c0_98] : memref<9x8x128xbf16, #tpu.memory_space<vmem>>, vector<1x8x128xbf16>
    %122 = vector.shape_cast %121 : vector<1x8x128xbf16> to vector<8x128xbf16>
    %cst_99 = arith.constant dense<0.000000e+00> : vector<128x128xf32>
    %123 = tpu.matmul %120, %122, %cst_99 {dimension_numbers = #tpu.dot_dimension_numbers<[1], [0], [0], [1], [0, 0, 1, 1], [], []>} : vector<128x8xbf16>, vector<8x128xbf16>, vector<128x128xf32> -> vector<128x128xf32>
    %124 = arith.addf %118, %123 : vector<128x128xf32>
    %c1_100 = arith.constant 1 : index
    %c1_101 = arith.constant 1 : index
    %c0_102 = arith.constant 0 : index
    %125 = vector.load %arg8[%c1_100, %c1_101, %c0_102] : memref<10x18x8xbf16, #tpu.memory_space<vmem>>, vector<8x16x8xbf16>
    %126 = vector.shape_cast %125 : vector<8x16x8xbf16> to vector<128x8xbf16>
    %c4_103 = arith.constant 4 : index
    %c0_104 = arith.constant 0 : index
    %c0_105 = arith.constant 0 : index
    %127 = vector.load %arg5[%c4_103, %c0_104, %c0_105] : memref<9x8x128xbf16, #tpu.memory_space<vmem>>, vector<1x8x128xbf16>
    %128 = vector.shape_cast %127 : vector<1x8x128xbf16> to vector<8x128xbf16>
    %cst_106 = arith.constant dense<0.000000e+00> : vector<128x128xf32>
    %129 = tpu.matmul %126, %128, %cst_106 {dimension_numbers = #tpu.dot_dimension_numbers<[1], [0], [0], [1], [0, 0, 1, 1], [], []>} : vector<128x8xbf16>, vector<8x128xbf16>, vector<128x128xf32> -> vector<128x128xf32>
    %130 = arith.addf %124, %129 : vector<128x128xf32>
    %c1_107 = arith.constant 1 : index
    %c2_108 = arith.constant 2 : index
    %c0_109 = arith.constant 0 : index
    %131 = vector.load %arg8[%c1_107, %c2_108, %c0_109] : memref<10x18x8xbf16, #tpu.memory_space<vmem>>, vector<8x16x8xbf16>
    %132 = vector.shape_cast %131 : vector<8x16x8xbf16> to vector<128x8xbf16>
    %c5_110 = arith.constant 5 : index
    %c0_111 = arith.constant 0 : index
    %c0_112 = arith.constant 0 : index
    %133 = vector.load %arg5[%c5_110, %c0_111, %c0_112] : memref<9x8x128xbf16, #tpu.memory_space<vmem>>, vector<1x8x128xbf16>
    %134 = vector.shape_cast %133 : vector<1x8x128xbf16> to vector<8x128xbf16>
    %cst_113 = arith.constant dense<0.000000e+00> : vector<128x128xf32>
    %135 = tpu.matmul %132, %134, %cst_113 {dimension_numbers = #tpu.dot_dimension_numbers<[1], [0], [0], [1], [0, 0, 1, 1], [], []>} : vector<128x8xbf16>, vector<8x128xbf16>, vector<128x128xf32> -> vector<128x128xf32>
    %136 = arith.addf %130, %135 : vector<128x128xf32>
    %c2_114 = arith.constant 2 : index
    %c0_115 = arith.constant 0 : index
    %c0_116 = arith.constant 0 : index
    %137 = vector.load %arg8[%c2_114, %c0_115, %c0_116] : memref<10x18x8xbf16, #tpu.memory_space<vmem>>, vector<8x16x8xbf16>
    %138 = vector.shape_cast %137 : vector<8x16x8xbf16> to vector<128x8xbf16>
    %c6_117 = arith.constant 6 : index
    %c0_118 = arith.constant 0 : index
    %c0_119 = arith.constant 0 : index
    %139 = vector.load %arg5[%c6_117, %c0_118, %c0_119] : memref<9x8x128xbf16, #tpu.memory_space<vmem>>, vector<1x8x128xbf16>
    %140 = vector.shape_cast %139 : vector<1x8x128xbf16> to vector<8x128xbf16>
    %cst_120 = arith.constant dense<0.000000e+00> : vector<128x128xf32>
    %141 = tpu.matmul %138, %140, %cst_120 {dimension_numbers = #tpu.dot_dimension_numbers<[1], [0], [0], [1], [0, 0, 1, 1], [], []>} : vector<128x8xbf16>, vector<8x128xbf16>, vector<128x128xf32> -> vector<128x128xf32>
    %142 = arith.addf %136, %141 : vector<128x128xf32>
    %c2_121 = arith.constant 2 : index
    %c1_122 = arith.constant 1 : index
    %c0_123 = arith.constant 0 : index
    %143 = vector.load %arg8[%c2_121, %c1_122, %c0_123] : memref<10x18x8xbf16, #tpu.memory_space<vmem>>, vector<8x16x8xbf16>
    %144 = vector.shape_cast %143 : vector<8x16x8xbf16> to vector<128x8xbf16>
    %c7_124 = arith.constant 7 : index
    %c0_125 = arith.constant 0 : index
    %c0_126 = arith.constant 0 : index
    %145 = vector.load %arg5[%c7_124, %c0_125, %c0_126] : memref<9x8x128xbf16, #tpu.memory_space<vmem>>, vector<1x8x128xbf16>
    %146 = vector.shape_cast %145 : vector<1x8x128xbf16> to vector<8x128xbf16>
    %cst_127 = arith.constant dense<0.000000e+00> : vector<128x128xf32>
    %147 = tpu.matmul %144, %146, %cst_127 {dimension_numbers = #tpu.dot_dimension_numbers<[1], [0], [0], [1], [0, 0, 1, 1], [], []>} : vector<128x8xbf16>, vector<8x128xbf16>, vector<128x128xf32> -> vector<128x128xf32>
    %148 = arith.addf %142, %147 : vector<128x128xf32>
    %c2_128 = arith.constant 2 : index
    %c2_129 = arith.constant 2 : index
    %c0_130 = arith.constant 0 : index
    %149 = vector.load %arg8[%c2_128, %c2_129, %c0_130] : memref<10x18x8xbf16, #tpu.memory_space<vmem>>, vector<8x16x8xbf16>
    %150 = vector.shape_cast %149 : vector<8x16x8xbf16> to vector<128x8xbf16>
    %c8_131 = arith.constant 8 : index
    %c0_132 = arith.constant 0 : index
    %c0_133 = arith.constant 0 : index
    %151 = vector.load %arg5[%c8_131, %c0_132, %c0_133] : memref<9x8x128xbf16, #tpu.memory_space<vmem>>, vector<1x8x128xbf16>
    %152 = vector.shape_cast %151 : vector<1x8x128xbf16> to vector<8x128xbf16>
    %cst_134 = arith.constant dense<0.000000e+00> : vector<128x128xf32>
    %153 = tpu.matmul %150, %152, %cst_134 {dimension_numbers = #tpu.dot_dimension_numbers<[1], [0], [0], [1], [0, 0, 1, 1], [], []>} : vector<128x8xbf16>, vector<8x128xbf16>, vector<128x128xf32> -> vector<128x128xf32>
    %154 = arith.addf %148, %153 : vector<128x128xf32>
    %c0_135 = arith.constant 0 : index
    %c0_136 = arith.constant 0 : index
    %155 = vector.load %arg6[%c0_135, %c0_136] : memref<1x128xf32, #tpu.memory_space<vmem>>, vector<1x128xf32>
    %156 = vector.broadcast %155 : vector<1x128xf32> to vector<128x128xf32>
    %157 = arith.addf %154, %156 : vector<128x128xf32>
    %cst_137 = arith.constant 0.000000e+00 : f32
    %158 = vector.broadcast %cst_137 : f32 to vector<128x128xf32>
    %159 = arith.maximumf %157, %158 : vector<128x128xf32>
    %160 = vector.shape_cast %159 : vector<128x128xf32> to vector<8x16x128xf32>
    %c0_138 = arith.constant 0 : index
    %c0_139 = arith.constant 0 : index
    %c0_140 = arith.constant 0 : index
    %c0_141 = arith.constant 0 : index
    %161 = vector.load %arg7[%c0_138, %c0_139, %c0_140, %c0_141] : memref<1x8x16x128xf32, #tpu.memory_space<vmem>>, vector<1x8x16x128xf32>
    %162 = vector.shape_cast %161 : vector<1x8x16x128xf32> to vector<8x16x128xf32>
    %163 = vector.shape_cast %160 : vector<8x16x128xf32> to vector<1x8x16x128xf32>
    tpu.vector_store %arg7[%c0_138, %c0_139, %c0_140, %c0_141], %163 {strides = array<i32>} : memref<1x8x16x128xf32, #tpu.memory_space<vmem>>, vector<1x8x16x128xf32>,
    return
  }
  func.func @transform_0(%arg0: i32, %arg1: i32) -> (i32, i32, i32, i32) {
    %c0_i32 = arith.constant 0 : i32
    %c0_i32_0 = arith.constant 0 : i32
    %c0_i32_1 = arith.constant 0 : i32
    %c0_i32_2 = arith.constant 0 : i32
    return %arg0, %c0_i32, %c0_i32_0, %c0_i32_1 : i32, i32, i32, i32
  }
  func.func @transform_1(%arg0: i32, %arg1: i32) -> (i32, i32, i32) {
    %c0_i32 = arith.constant 0 : i32
    %c0_i32_0 = arith.constant 0 : i32
    %c0_i32_1 = arith.constant 0 : i32
    %c0_i32_2 = arith.constant 0 : i32
    return %c0_i32, %c0_i32_0, %c0_i32_1 : i32, i32, i32
  }
  func.func @transform_2(%arg0: i32, %arg1: i32) -> (i32, i32) {
    %c0_i32 = arith.constant 0 : i32
    %c0_i32_0 = arith.constant 0 : i32
    %c0_i32_1 = arith.constant 0 : i32
    return %c0_i32, %c0_i32_0 : i32, i32
  }
  func.func @transform_3(%arg0: i32, %arg1: i32) -> (i32, i32, i32) {
    %c0_i32 = arith.constant 0 : i32
    %c0_i32_0 = arith.constant 0 : i32
    %c0_i32_1 = arith.constant 0 : i32
    %c0_i32_2 = arith.constant 0 : i32
    return %c0_i32, %c0_i32_0, %c0_i32_1 : i32, i32, i32
  }
  func.func @transform_4(%arg0: i32, %arg1: i32) -> (i32, i32) {
    %c0_i32 = arith.constant 0 : i32
    %c0_i32_0 = arith.constant 0 : i32
    %c0_i32_1 = arith.constant 0 : i32
    return %c0_i32, %c0_i32_0 : i32, i32
  }
  func.func @transform_5(%arg0: i32, %arg1: i32) -> (i32, i32, i32, i32) {
    %c0_i32 = arith.constant 0 : i32
    %c0_i32_0 = arith.constant 0 : i32
    %c0_i32_1 = arith.constant 0 : i32
    return %arg0, %arg1, %c0_i32, %c0_i32_0 : i32, i32, i32, i32
  }
}

</mosaic_0001>

<bundles_post_ra>
// kernel: tile.8
= control target key start
LH: loop header
LB: loop body
LE: loop exit
PB: predicated region body
PF: predicated region fallthrough
CT: control target
= control target key end

     0   :  { %s22_s0 = inlined_call_operand.vmem [shape: f32[5], index: 0, kind: input, shape index: {}]   ;;  %s23_s1 = inlined_call_operand.vmem [shape: f32[4,5], index: 1, kind: output, shape index: {}]  }
   0x1   :  { %v4_v0 = vld [vmem:[%s22_s0] ss:$0 sm:$0xff] }
   0x2   :  { %5 = vst [vmem:[%s23_s1] sm:$0xf] %v4_v0 }

// kernel: tile.9
= control target key start
LH: loop header
LB: loop body
LE: loop exit
PB: predicated region body
PF: predicated region fallthrough
CT: control target
= control target key end

     0   :  { %vm7_vm0 = vcmask 39936   ;;  %s37_s8 = smov 5   ;;  %s38_s9 = smov 10   ;;  %vm13_vm1 = vcmask 162936   ;;  %vm19_vm2 = vcmask 121936   ;;  %vm25_vm3 = vcmask 80936   ;;  %s55_s0 = inlined_call_operand.vmem [shape: f32[4,5], index: 0, kind: input, shape index: {}]   ;;  %s56_s1 = inlined_call_operand.vmem [shape: f32[20], index: 1, kind: output, shape index: {}]  }
   0x1   :  { %v4_v0 = vld [vmem:[%s55_s0] sm:$0xf]  ;;  %s36_s0 = smov 15  }
   0x2   :  { %5 = vst [vmem:[#allocation1] sm:$0xf] %v4_v0 }
   0x9   :  { %v10_v1 = vld [vmem:[#allocation1 + $0x3] sm:$0x1]   ;;  %v22_v2 = vld [vmem:[#allocation1 + $0x1] sm:$0x1]   ;;  %v6_v3 = vld [vmem:[#allocation1] sm:$0x1]  }
   0xa   :  { %11 = vrot.lane.b32.xlu0 %v10_v1, %s36_s0  ;;  %23 = vrot.lane.b32.xlu1 %v22_v2, %s37_s8  ;;  %v16_v4 = vld [vmem:[#allocation1 + $0x2] sm:$0x1]   ;;  %8 = vst.msk [vmem:[#allocation0] sm:$0x1] %vm7_vm0, %v6_v3  }
   0xe   :  { %17 = vrot.lane.b32.xlu0 %v16_v4, %s38_s9 }
  0x7c   :  { %v12_v5 = vpop.permute.xlu0 %11   ;;  %v24_v6 = vpop.permute.xlu1 %23  }
  0x7d   :  { %14 = vst.msk [vmem:[#allocation0] sm:$0x1] %vm13_vm1, %v12_v5  }
  0x80   :  { %v18_v7 = vpop.permute.xlu0 %17  }
  0x81   :  { %20 = vst.msk [vmem:[#allocation0] sm:$0x1] %vm19_vm2, %v18_v7  }
  0x82   :  { %26 = vst.msk [vmem:[#allocation0] sm:$0x1] %vm25_vm3, %v24_v6  }
  0x89   :  { %v30_v8 = vld [vmem:[#allocation0] sm:$0x1] }
  0x8a   :  { %32 = vst [vmem:[%s56_s1] sm:$0x1] %v30_v8 }

// kernel: decoder_block_v2.1
= control target key start
LH: loop header
LB: loop body
LE: loop exit
PB: predicated region body
PF: predicated region fallthrough
CT: control target
= control target key end

     0   :  { %s7768_s18 = smov 0   ;;  %s7770_s19 = smov 0   ;;  %s9669_s0 = inlined_call_operand.vmem [shape: bf16[2,20,18,4], index: 0, kind: input, shape index: {}]   ;;  %s9670_s1 = inlined_call_operand.vmem [shape: bf16[9,4,8], index: 1, kind: input, shape index: {}]   ;;  %s9671_s2 = inlined_call_operand.vmem [shape: f32[1,8], index: 2, kind: input, shape index: {}]   ;;  %s9672_s3 = inlined_call_operand.vmem [shape: bf16[9,8,128], index: 3, kind: input, shape index: {}]   ;;  %s9673_s4 = inlined_call_operand.vmem [shape: f32[1,128], index: 4, kind: input, shape index: {}]   ;;  %s9674_s5 = inlined_call_operand.vmem [shape: f32[2,16,16,128], index: 5, kind: output, shape index: {}]  }
   0x1   :  { %s7772_s20 = smov 0   ;;  %s7774_s21 = smov 0  }
   0x2   :  { %s7776_s22 = smov 0  }
   0x3 LB: > { %s24_s23 = sadd.s32 1, %s7726_s20  ;;  %s27_s24 = sadd.s32 1, %s7730_s21  ;;  %s7734_s22 = sphi %s7776_s22, %s15_s22   ;;  %s7730_s21 = sphi %s7774_s21, %s9757_s21   ;;  %s7726_s20 = sphi %s7772_s20, %s9756_s20   ;;  %s7722_s19 = sphi %s7770_s19, %s9755_s19   ;;  %s7718_s18 = sphi %s7768_s18, %s9754_s18  }
   0x4   : > { %p25_p0 = scmp.ge.s32.totalorder %s24_s23, 2  ;;  %p6177_p1 = scmp.ge.s32.totalorder %s7734_s22, 1 }
   0x5   : > { %p201_p2 = scmp.lt.s32.totalorder %s7734_s22, 5 }
   0x6   : > { %s9759_s23 = smov (%p25_p0, %s24_s23), 0  ;;  %s9761_s24 = smov (!%p25_p0, %s27_s24), %s7730_s21 }
   0x7   : > { %p202_p3 = pnand %p6177_p1, %p201_p2  ;;  %p29_p4 = scmp.ge.s32.totalorder %s9761_s24, 2 }
   0x9   : > { %s9763_s24 = smov (%p29_p4, %s9761_s24), 0  ;;  %205 = sbr.rel (%p202_p3) target bundleno = 1106 (0x452), region = 40 }
  0x10   : > { %v275_v0 = vld [vmem:[%s9670_s1] sm:$0x3]  ;;  %vm592_vm0 = vcmask 1041408   ;;  %p234_p5 = scmp.lt.s32.totalorder %s7722_s19, 1  ;;  %s6179_s27 = sshll.u32 %s7718_s18, 3  ;;  %vm561_vm1 = vcmask 31744  }
  0x11   : > { %7570 = vmatprep.subr.msk.bf16.mxu0 %vm592_vm0, %v275_v0  ;;  %v790_v1 = vsel %vm592_vm0, %v275_v0, 0  ;;  %p242_p6 = scmp.lt.s32.totalorder %s6179_s27, 15  ;;  %s6740_s28 = smul.u32 96, %s7718_s18  ;;  %v6237_v2 = vld [vmem:[%s9670_s1 + $0x4] sm:$0x3]  ;;  %vm935_vm2 = vcmask 1042432  }
  0x12   : > { %6944 = vmatpush3.bf16.msra.mxu0 %v790_v1  ;;  %s9765_s19 = smov (!%p234_p5, %s7722_s19), 1  ;;  %v1071_v10 = vsel %vm592_vm0, %v6237_v2, 0  ;;  %v7848_v12 = vld [vmem:[%s9670_s1 + $0x6] sm:$0x3]  ;;  %vm936_vm3 = vcmask 1046532   ;;  %vm3389_vm8 = vcmask 1040384  }
  0x13   : > { %s9767_s27 = smov (!%p242_p6, %s6179_s27), 15  ;;  %7571 = vmatprep.subr.msk.bf16.mxu0 %vm592_vm0, %v6237_v2  ;;  %s7587_s6 = smul.u32 240, %s9765_s19  ;;  %vm7914_vm4 = vmor %vm935_vm2, %vm936_vm3  ;;  %vm286_vm5 = vsmask.f32 3328  ;;  %vm287_vm6 = vsmask.f32 7440 }
  0x14   : > { %s6181_s7 = sshll.u32 %s9765_s19, 5  ;;  %s6180_s8 = sshll.u32 %s9767_s27, 1  ;;  %vm8137_vm7 = vmor %vm286_vm5, %vm287_vm6  ;;  %vm3390_vm9 = vsmask.f32 256  ;;  %vm3525_vm11 = vcmask 57344   ;;  %vm3522_vm12 = vcmask 60416  }
  0x15   : > { %s238_s11 = scalar_lea.vmem %s9669_s0, %s7587_s6  ;;  %s246_s12 = sadd.s32 %s6181_s7, %s6180_s8  ;;  %vm8892_vm10 = vmand %vm3389_vm8, %vm3390_vm9 }
  0x16   : > { %s6182_s13 = sshll.u32 %s246_s12, 3  ;;  %s7814_s14 = scalar_lea.vmem %s238_s11, %s6740_s28 }
  0x17   : > { %s7819_s17 = scalar_lea.vmem %s9674_s5, %s6182_s13  ;;  %v7822_v3 = vld [vmem:[%s7814_s14] sm:$0xf]  ;;  %v7825_v4 = vld [vmem:[%s7814_s14 + $0x4] sm:$0xf]  ;;  %v7828_v5 = vld [vmem:[%s7814_s14 + $0xc] sm:$0xf] }
  0x18   : > { %v6207_v6 = vcombine.low %v7822_v3, %v7825_v4  ;;  %v7833_v7 = vld [vmem:[%s7814_s14 + $0x10] sm:$0xf]  ;;  %v7836_v8 = vld [vmem:[%s7814_s14 + $0x18] sm:$0xf]  ;;  %v7843_v11 = vld [vmem:[%s7814_s14 + $0x1c] sm:$0xf] }
  0x19   : > { %v6208_v9 = vcombine.low %v7828_v5, %v7833_v7  ;;  %9691 = vst [vmem:[#allocation3_spill] sm:$0xff] %v7843_v11  ;;  %v6209_v13 = vcombine.low %v7836_v8, %v7843_v11  ;;  %v7854_v14 = vld [vmem:[%s7814_s14 + $0x24] sm:$0xf]  ;;  %v7857_v15 = vld [vmem:[%s7814_s14 + $0x28] sm:$0xf]  ;;  %v940_v28 = vrot.slane %v7825_v4, 5 }
  0x1a   : > { %6945 = vmatprep.mubr.msk.bf16.mxu0 %vm561_vm1, %v6207_v6  ;;  %9692 = vst [vmem:[#allocation4_spill] sm:$0xff] %v7857_v15  ;;  %v7861_v16 = vld [vmem:[%s7814_s14 + $0x30] sm:$0xf]  ;;  %v7864_v17 = vld [vmem:[%s7814_s14 + $0x34] sm:$0xf]  ;;  %v6210_v18 = vcombine.low %v7854_v14, %v7857_v15  ;;  %v947_v34 = vrot.slane %v7833_v7, 5 }
  0x1b   : > { %6946 = vmatmul.mubr.msk.bf16.vlgmr.msra.gmra.mrb[0].mxu0 %vm561_vm1, %v6208_v9  ;;  %9693 = vst [vmem:[#allocation5_spill] sm:$0xff] %v7864_v17  ;;  %v6211_v19 = vcombine.low %v7861_v16, %v7864_v17  ;;  %v7875_v20 = vld [vmem:[%s7814_s14 + $0x3c] sm:$0xf]  ;;  %v7878_v21 = vld [vmem:[%s7814_s14 + $0x40] sm:$0xf]  ;;  %v942_v36 = vrot.slane %v940_v28, 4 }
  0x1c   : > { %6966 = vmatpush3.bf16.msra.mxu0 %v1071_v10  ;;  %6949 = vmatprep.mubr.msk.bf16.mxu0 %vm561_vm1, %v6209_v13  ;;  %9694 = vst [vmem:[#allocation6_spill] sm:$0xff] %v7878_v21  ;;  %v7881_v22 = vld [vmem:[%s7814_s14 + $0x48] sm:$0xf]  ;;  %v7884_v23 = vld [vmem:[%s7814_s14 + $0x4c] sm:$0xf]  ;;  %v6212_v24 = vcombine.low %v7875_v20, %v7878_v21  ;;  %v954_v40 = vrot.slane %v7843_v11, 5 }
  0x1d   : > { %7572 = vmatprep.subr.msk.bf16.mxu0 %vm592_vm0, %v7848_v12  ;;  %v6213_v25 = vcombine.low %v7881_v22, %v7884_v23  ;;  %v7893_v26 = vld [vmem:[%s7814_s14 + $0x54] sm:$0xf]  ;;  %v7896_v27 = vld [vmem:[%s7814_s14 + $0x58] sm:$0xf]  ;;  %v7900_v29 = vld [vmem:[%s7814_s14 + $0x60] sm:$0xf] }
  0x1e   : > { %v7903_v30 = vld [vmem:[%s7814_s14 + $0x64] sm:$0xf]  ;;  %v7906_v31 = vld [vmem:[%s7814_s14 + $0x8] sm:$0x1]  ;;  %v905_v32 = vld [vmem:[%s7814_s14] sm:$0xe]  ;;  %v6214_v33 = vcombine.low %v7893_v26, %v7896_v27 }
  0x1f   : > { %v6215_v35 = vcombine.low %v7900_v29, %v7903_v30  ;;  %v6227_v38 = vrot.slane %v905_v32, 9  ;;  %v943_v39 = vrot.slane %v7906_v31, 5  ;;  %v7921_v41 = vld [vmem:[%s7814_s14 + $0x6c] sm:$0xf]  ;;  %v7924_v42 = vld [vmem:[%s7814_s14 + $0x70] sm:$0xf] }
  0x20   : > { %v7927_v43 = vld [vmem:[%s7814_s14 + $0x14] sm:$0x1]  ;;  %v906_v44 = vld [vmem:[%s7814_s14 + $0xc] sm:$0xe]  ;;  %v7933_v45 = vld [vmem:[%s7814_s14 + $0x20] sm:$0x1]  ;;  %v6216_v53 = vcombine.low %v7921_v41, %v7924_v42 }
  0x21   : > { %9697 = vst [vmem:[#allocation7_spill] sm:$0xff] %v7933_v45  ;;  %v907_v46 = vld [vmem:[%s7814_s14 + $0x18] sm:$0xe]  ;;  %v949_v47 = vrot.slane %v947_v34, 4  ;;  %v941_v48 = vsel %vm7914_vm4, %v6227_v38, %v940_v28  ;;  %v944_v49 = vsel %vm7914_vm4, %v942_v36, %v943_v39  ;;  %v956_v50 = vrot.slane %v954_v40, 4  ;;  %p6559_p7 = scmp.ne.s32.totalorder %s7718_s18, 0 }
  0x22   : > { %v6228_v51 = vrot.slane %v906_v44, 9  ;;  %v950_v52 = vrot.slane %v7927_v43, 5  ;;  %v6229_v54 = vrot.slane %v907_v46, 9  ;;  %v957_v55 = vrot.slane %v7933_v45, 5  ;;  %v7956_v62 = vld [vmem:[%s7814_s14 + $0x2c] sm:$0x1] }
  0x23   : > { %6950 = vmatmul.mubr.msk.bf16.gmra.mrb[4].mxu0 %vm561_vm1, %v6210_v18  ;;  %v6238_v56 = vcombine.low %v941_v48, %v944_v49  ;;  %v961_v59 = vrot.slane %v7857_v15, 5  ;;  %9698 = vst [vmem:[#allocation8_spill] sm:$0xff] %v7956_v62  ;;  %v908_v63 = vld [vmem:[%s7814_s14 + $0x24] sm:$0xe]  ;;  %v968_v0 = vrot.slane %v7864_v17, 5  ;;  %v964_v18 = vrot.slane %v7956_v62, 5 }
  0x24   : > { %6953 = vmatprep.mubr.msk.bf16.mxu0 %vm561_vm1, %v6211_v19  ;;  %v948_v57 = vsel %vm7914_vm4, %v6228_v51, %v947_v34  ;;  %v951_v58 = vsel %vm7914_vm4, %v949_v47, %v950_v52  ;;  %v955_v60 = vsel %vm7914_vm4, %v6229_v54, %v954_v40  ;;  %v958_v61 = vsel %vm7914_vm4, %v956_v50, %v957_v55  ;;  %v7961_v1 = vld [vmem:[%s7814_s14 + $0x38] sm:$0x1]  ;;  %v909_v2 = vld [vmem:[%s7814_s14 + $0x30] sm:$0xe]  ;;  %v7971_v32 = vld [vmem:[%s9670_s1 + $0x8] sm:$0x3] }
  0x25   : > { %9699 = vst [vmem:[#allocation9_spill] sm:$0xff] %v7961_v1  ;;  %v6239_v6 = vcombine.low %v948_v57, %v951_v58  ;;  %v6240_v9 = vcombine.low %v955_v60, %v958_v61  ;;  %v6230_v10 = vrot.slane %v908_v63, 9  ;;  %v963_v13 = vrot.slane %v961_v59, 4  ;;  %v7985_v38 = vld [vmem:[%s7814_s14 + $0x44] sm:$0x1] }
  0x26   : > { %v1313_v19 = vsel %vm592_vm0, %v7848_v12, 0  ;;  %v971_v28 = vrot.slane %v7961_v1, 5  ;;  %v975_v34 = vrot.slane %v7878_v21, 5  ;;  %9700 = vst [vmem:[#allocation10_spill] sm:$0xff] %v7985_v38  ;;  %v910_v39 = vld [vmem:[%s7814_s14 + $0x3c] sm:$0xe] }
  0x27   : > { %v965_v12 = vsel %vm7914_vm4, %v963_v13, %v964_v18  ;;  %v982_v40 = vrot.slane %v7884_v23, 5  ;;  %v282_v44 = vld [vmem:[%s7814_s14 + $0x50] sm:$0x1]  ;;  %v911_v46 = vld [vmem:[%s7814_s14 + $0x48] sm:$0xe]  ;;  %v6232_v49 = vrot.slane %v910_v39, 9 }
  0x28   : > { %v977_v50 = vrot.slane %v975_v34, 4  ;;  %v978_v51 = vrot.slane %v7985_v38, 5  ;;  %v6233_v52 = vrot.slane %v911_v46, 9  ;;  %v985_v54 = vrot.slane %v282_v44, 5  ;;  %v283_v60 = vld [vmem:[%s7814_s14 + $0x5c] sm:$0x1] }
  0x29   : > { %v976_v55 = vsel %vm7914_vm4, %v6232_v49, %v975_v34  ;;  %v989_v57 = vrot.slane %v7896_v27, 5  ;;  %v912_v61 = vld [vmem:[%s7814_s14 + $0x54] sm:$0xe]  ;;  %v996_v63 = vrot.slane %v7903_v30, 5  ;;  %v992_v18 = vrot.slane %v283_v60, 5 }
  0x2a   : > { %v983_v58 = vsel %vm7914_vm4, %v6233_v52, %v982_v40  ;;  %v914_v39 = vld [vmem:[%s7814_s14 + $0x6c] sm:$0xe]  ;;  %v317_v60 = vshll.u32 %v7828_v5, 16  ;;  %v8160_v15 = vld [vmem:[%s7814_s14 + $0x38] sm:$0x1] }
  0x2b   : > { %6954 = vmatmul.mubr.msk.bf16.gmra.mrb[8].mxu0 %vm561_vm1, %v6212_v24  ;;  %v6231_v24 = vrot.slane %v909_v2, 9  ;;  %v913_v2 = vld [vmem:[%s7814_s14 + $0x60] sm:$0xe]  ;;  %v991_v13 = vrot.slane %v989_v57, 4  ;;  %v6236_v46 = vrot.slane %v914_v39, 9  ;;  %v7640_v52 = vld [vmem:[%s7814_s14 + $0xc] sm:$0xff]  }
  0x2c   : > { %6957 = vmatprep.mubr.msk.bf16.mxu0 %vm561_vm1, %v6213_v25  ;;  %v970_v25 = vrot.slane %v968_v0, 4  ;;  %v8258_v11 = vld [vmem:[%s7814_s14 + $0x7c] sm:$0xf] }
  0x2e   : > { %v972_v36 = vsel %vm7914_vm4, %v970_v25, %v971_v28 }
  0x33   : > { %6958 = vmatmul.mubr.msk.bf16.gmra.mrb[12].mxu0 %vm561_vm1, %v6214_v33  ;;  %v962_v33 = vsel %vm7914_vm4, %v6230_v10, %v961_v59  ;;  %v6234_v10 = vrot.slane %v912_v61, 9  ;;  %v338_v61 = vshrl.u32 %v7836_v8, 16 }
  0x34   : > { %6961 = vmatprep.mubr.msk.bf16.mxu0 %vm561_vm1, %v6215_v35  ;;  %v969_v35 = vsel %vm7914_vm4, %v6231_v24, %v968_v0  ;;  %v6241_v47 = vcombine.low %v962_v33, %v965_v12  ;;  %v284_v0 = vld [vmem:[%s7814_s14 + $0x68] sm:$0x1]  ;;  %v998_v24 = vrot.slane %v996_v63, 4  ;;  %v993_v33 = vsel %vm7914_vm4, %v991_v13, %v992_v18 }
  0x35   : > { %v6242_v48 = vcombine.low %v969_v35, %v972_v36  ;;  %v999_v25 = vrot.slane %v284_v0, 5  ;;  %v990_v28 = vsel %vm7914_vm4, %v6234_v10, %v989_v57  ;;  %v1003_v12 = vrot.slane %v7924_v42, 5  ;;  %v285_v36 = vld [vmem:[%s7814_s14 + $0x74] sm:$0x1]  ;;  %v6301_v0 = vld [vmem:[%s7814_s14 + $0xc] sm:$0xf] }
  0x36   : > { %v290_v57 = vshrl.u32 %v7822_v3, 16  ;;  %v341_v10 = vshll.u32 %v7836_v8, 16  ;;  %v8070_v8 = vrot.slane %v338_v61, 4 }
  0x37   : > { %v1000_v35 = vsel %vm7914_vm4, %v998_v24, %v999_v25  ;;  %v1004_v49 = vsel %vm7914_vm4, %v6236_v46, %v1003_v12  ;;  %v362_v24 = vshrl.u32 %v7854_v14, 16  ;;  %v1479_v25 = vshrl.u32 %v6301_v0, 16  ;;  %v8082_v46 = vld [vmem:[%s7814_s14 + $0x1c] sm:$0xf] }
  0x38   : > { %9701 = vst [vmem:[#allocation11_spill] sm:$0xff] %v8070_v8  ;;  %v8076_v39 = vrot.slane %v341_v10, 5 }
  0x3a   : > { %9702 = vst [vmem:[#allocation12_spill] sm:$0xff] %v8076_v39  ;;  %v8261_v39 = vld [vmem:[%s7814_s14 + $0x74] sm:$0x1] }
  0x3b   : > { %6962 = vmatmul.mubr.msk.bf16.gmra.mrb[16].mxu0 %vm561_vm1, %v6216_v53  ;;  %v984_v53 = vrot.slane %v982_v40, 4  ;;  %v6245_v40 = vcombine.low %v990_v28, %v993_v33  ;;  %v1482_v28 = vshll.u32 %v6301_v0, 16 }
  0x3c   : > { %6967 = vmatprep.mubr.msk.bf16.mxu0 %vm561_vm1, %v6238_v56  ;;  %v979_v56 = vsel %vm7914_vm4, %v977_v50, %v978_v51 }
  0x3d   : > { %v986_v59 = vsel %vm7914_vm4, %v984_v53, %v985_v54  ;;  %v7641_v53 = vld [vmem:[%s7814_s14 + $0x18] sm:$0xff]   ;;  %v7642_v54 = vld [vmem:[%s7814_s14 + $0x24] sm:$0xff]  }
  0x43   : > { %6968 = vmatmul.mubr.msk.bf16.vlgmr.msra.gmra.mrb[0].mxu0 %vm561_vm1, %v6239_v6  ;;  %v6243_v6 = vcombine.low %v976_v55, %v979_v56  ;;  %v1781_v55 = vsel %vm592_vm0, %v7971_v32, 0  ;;  %v6372_v56 = vld [vmem:[%s9670_s1 + $0xa] sm:$0x3] }
  0x44   : > { %6988 = vmatpush3.bf16.msra.mxu0 %v1313_v19  ;;  %6971 = vmatprep.mubr.msk.bf16.mxu0 %vm561_vm1, %v6240_v9  ;;  %v6244_v9 = vcombine.low %v983_v58, %v986_v59  ;;  %v6235_v19 = vrot.slane %v913_v2, 9  ;;  %v293_v58 = vshll.u32 %v7822_v3, 16  ;;  %v314_v59 = vshrl.u32 %v7828_v5, 16  ;;  %v8053_v2 = vld [vmem:[%s7814_s14 + $0x10] sm:$0xf]  ;;  %v7644_v5 = vld [vmem:[%s7814_s14 + $0x3c] sm:$0xff]  }
  0x45   : > { %7573 = vmatprep.subr.msk.bf16.mxu0 %vm592_vm0, %v7971_v32  ;;  %v8047_v32 = vsel %vm592_vm0, %v6372_v56, 0  ;;  %v1488_v33 = vshll.u32 %v8053_v2, 16 }
  0x46   : > { %v997_v34 = vsel %vm7914_vm4, %v6235_v19, %v996_v63  ;;  %v7643_v63 = vld [vmem:[%s7814_s14 + $0x30] sm:$0xff]   ;;  %v8061_v13 = vrot.slane %v293_v58, 5  ;;  %v8063_v18 = vrot.slane %v314_v59, 4  ;;  %v8065_v19 = vrot.slane %v317_v60, 5 }
  0x47   : > { %v6246_v44 = vcombine.low %v997_v34, %v1000_v35  ;;  %v365_v35 = vshll.u32 %v7854_v14, 16  ;;  %v389_v14 = vshll.u32 %v7861_v16, 16  ;;  %v1512_v58 = vshll.u32 %v8082_v46, 16  ;;  %v7646_v60 = vld [vmem:[%s7814_s14 + $0x54] sm:$0xff]  }
  0x48   : > { %v1516_v59 = vshrl.u32 %v8082_v46, 16 }
  0x49   : > { %v8102_v10 = vrot.slane %v365_v35, 5 }
  0x4a   : > { %v1518_v34 = vrot.slane %v1516_v59, 4  ;;  %v6310_v59 = vld [vmem:[%s7814_s14 + $0x30] sm:$0xf] }
  0x4b   : > { %6972 = vmatmul.mubr.msk.bf16.gmra.mrb[4].mxu0 %vm561_vm1, %v6241_v47  ;;  %v1005_v47 = vrot.slane %v1003_v12, 4  ;;  %v1492_v12 = vshrl.u32 %v8053_v2, 16  ;;  %9704 = vst [vmem:[#allocation14_spill] sm:$0xff] %v8102_v10  ;;  %v1554_v1 = vshll.u32 %v6310_v59, 16 }
  0x4c   : > { %6975 = vmatprep.mubr.msk.bf16.mxu0 %vm561_vm1, %v6242_v48  ;;  %v1006_v48 = vrot.slane %v285_v36, 5 }
  0x4e   : > { %v1007_v50 = vsel %vm7914_vm4, %v1005_v47, %v1006_v48  ;;  %v8084_v47 = vrot.slane %v362_v24, 4  ;;  %v6307_v48 = vld [vmem:[%s7814_s14 + $0x24] sm:$0xf]  ;;  %v410_v24 = vshrl.u32 %v7875_v20, 16 }
  0x4f   : > { %v6247_v51 = vcombine.low %v1004_v49, %v1007_v50  ;;  %v8089_v49 = vld [vmem:[%s7814_s14 + $0x28] sm:$0xf]  ;;  %v8092_v50 = vld [vmem:[%s7814_s14 + $0x14] sm:$0x1]  ;;  %v1530_v61 = vshll.u32 %v6307_v48, 16 }
  0x50   : > { %9703 = vst [vmem:[#allocation13_spill] sm:$0xff] %v8084_v47  ;;  %v1540_v0 = vshrl.u32 %v8089_v49, 16 }
  0x53   : > { %6976 = vmatmul.mubr.msk.bf16.gmra.mrb[8].mxu0 %vm561_vm1, %v6243_v6  ;;  %v8055_v6 = vrot.slane %v290_v57, 4 }
  0x54   : > { %6979 = vmatprep.mubr.msk.bf16.mxu0 %vm561_vm1, %v6244_v9  ;;  %v8131_v9 = vld [vmem:[%s7814_s14 + $0x34] sm:$0xf] }
  0x55   : > { %v1560_v17 = vshll.u32 %v8131_v9, 16 }
  0x57   : > { %v8162_v10 = vrot.slane %v1560_v17, 5 }
  0x5b   : > { %6980 = vmatmul.mubr.msk.bf16.gmra.mrb[12].mxu0 %vm561_vm1, %v6245_v40  ;;  %v386_v40 = vshrl.u32 %v7861_v16, 16  ;;  %v1527_v16 = vshrl.u32 %v6307_v48, 16  ;;  %v8114_v48 = vld [vmem:[%s7814_s14 + $0x20] sm:$0x1] }
  0x5c   : > { %6983 = vmatprep.mubr.msk.bf16.mxu0 %vm561_vm1, %v6246_v44  ;;  %v6304_v44 = vld [vmem:[%s7814_s14 + $0x18] sm:$0xf] }
  0x5d   : > { %v1506_v57 = vshll.u32 %v6304_v44, 16 }
  0x5f   : > { %v1508_v36 = vrot.slane %v1506_v57, 5  ;;  %v8144_v57 = vld [vmem:[%s7814_s14 + $0x40] sm:$0xf] }
  0x60   : > { %9710 = vst [vmem:[#allocation18_spill] sm:$0xff] %v8144_v57 }
  0x63   : > { %6984 = vmatmul.mubr.msk.bf16.gmra.mrb[16].mxu0 %vm561_vm1, %v6247_v51  ;;  %v1481_v51 = vrot.slane %v1479_v25, 4  ;;  %v1498_v25 = vshll.u32 %v8092_v50, 16 }
  0x64   : > { %6989 = vmatprep.mubr.msk.bf16.mxu0 %vm561_vm1, %v7640_v52  ;;  %v1484_v52 = vrot.slane %v1482_v28, 5  ;;  %v8107_v28 = vrot.slane %v386_v40, 4  ;;  %v8120_v40 = vld [vmem:[%s7814_s14 + $0x2c] sm:$0x1] }
  0x66   : > { %9705 = vst [vmem:[#allocation15_spill] sm:$0xff] %v8107_v28 }
  0x6b   : > { %6990 = vmatmul.mubr.msk.bf16.vlgmr.msra.gmra.mrb[0].mxu0 %vm561_vm1, %v7641_v53  ;;  %v8094_v53 = vrot.slane %v1488_v33, 5  ;;  %v8109_v33 = vrot.slane %v389_v14, 5  ;;  %v1529_v14 = vrot.slane %v1527_v16, 4  ;;  %v6313_v16 = vld [vmem:[%s7814_s14 + $0x3c] sm:$0xf] }
  0x6c   : > { %7010 = vmatpush3.bf16.msra.mxu0 %v1781_v55  ;;  %6993 = vmatprep.mubr.msk.bf16.mxu0 %vm561_vm1, %v7642_v54  ;;  %v1494_v54 = vrot.slane %v1492_v12, 4  ;;  %v7645_v55 = vld [vmem:[%s7814_s14 + $0x48] sm:$0xff]   ;;  %v1485_v12 = vor.u32 %v1484_v52, %v1481_v51  ;;  %v1532_v51 = vrot.slane %v1530_v61, 5  ;;  %v7647_v61 = vld [vmem:[%s7814_s14 + $0x60] sm:$0xff]   ;;  %v1575_v28 = vshrl.u32 %v6313_v16, 16 }
  0x6d   : > { %7574 = vmatprep.subr.msk.bf16.mxu0 %vm592_vm0, %v6372_v56  ;;  %v1503_v56 = vshrl.u32 %v6304_v44, 16  ;;  %9706 = vst [vmem:[#allocation16_spill] sm:$0xff] %v8109_v33  ;;  %v1564_v33 = vshrl.u32 %v8131_v9, 16 }
  0x6e   : > { %v1495_v44 = vor.u32 %v1494_v54, %v8094_v53  ;;  %v1542_v54 = vrot.slane %v1540_v0, 4  ;;  %v1486_v3 = vrot.slane %v1485_v12, 4  ;;  %v7648_v12 = vld [vmem:[%s7814_s14 + $0x6c] sm:$0xff]   ;;  %v1533_v38 = vor.u32 %v1532_v51, %v1529_v14 }
  0x6f   : > { %v1505_v35 = vrot.slane %v1503_v56, 4  ;;  %v413_v56 = vshll.u32 %v7875_v20, 16  ;;  %v1588_v14 = vshrl.u32 %v8144_v57, 16  ;;  %v1577_v47 = vrot.slane %v1575_v28, 4  ;;  %v8179_v28 = vld [vmem:[%s7814_s14 + $0x4c] sm:$0xf] }
  0x70   : > { %v1496_v0 = vrot.slane %v1495_v44, 4  ;;  %v1578_v44 = vshll.u32 %v6313_v16, 16  ;;  %v1534_v16 = vrot.slane %v1533_v38, 4  ;;  %9713 = vst [vmem:[#allocation21_spill] sm:$0xff] %v8179_v28 }
  0x71   : > { %v8170_v38 = vrot.slane %v413_v56, 5 }
  0x73   : > { %6994 = vmatmul.mubr.msk.bf16.gmra.mrb[4].mxu0 %vm561_vm1, %v7643_v63  ;;  %v1536_v63 = vshll.u32 %v8089_v49, 16  ;;  %9712 = vst [vmem:[#allocation20_spill] sm:$0xff] %v8170_v38 }
  0x74   : > { %6997 = vmatprep.mubr.msk.bf16.mxu0 %vm561_vm1, %v7644_v5  ;;  %v8116_v5 = vrot.slane %v1512_v58, 5  ;;  %v1500_v58 = vrot.slane %v1498_v25, 5  ;;  %v1546_v25 = vshll.u32 %v8120_v40, 16 }
  0x75   : > { %v8122_v52 = vrot.slane %v1536_v63, 5 }
  0x76   : > { %v1519_v20 = vor.u32 %v1518_v34, %v8116_v5  ;;  %v1491_v34 = vsel %vm8137_vm7, %v1486_v3, %v8094_v53  ;;  %v1501_v51 = vsel %vm8137_vm7, %v1496_v0, %v1500_v58  ;;  %v1548_v62 = vrot.slane %v1546_v25, 5  ;;  %v8165_v0 = vld [vmem:[%s7814_s14 + $0x44] sm:$0x1]  ;;  %v6316_v25 = vld [vmem:[%s7814_s14 + $0x48] sm:$0xf] }
  0x77   : > { %v1543_v21 = vor.u32 %v1542_v54, %v8122_v52  ;;  %v1580_v58 = vrot.slane %v1578_v44, 5  ;;  %9711 = vst [vmem:[#allocation19_spill] sm:$0xff] %v8165_v0  ;;  %v1570_v44 = vshll.u32 %v8160_v15, 16 }
  0x79   : > { %v1544_v3 = vrot.slane %v1543_v21, 4  ;;  %v7649_v21 = vld [vmem:[%s7814_s14 + $0x78] sm:$0xff]  }
  0x7b   : > { %6998 = vmatmul.mubr.msk.bf16.gmra.mrb[8].mxu0 %vm561_vm1, %v7645_v55  ;;  %v8124_v55 = vrot.slane %v410_v24, 4  ;;  %v1509_v24 = vor.u32 %v1508_v36, %v1505_v35  ;;  %v1584_v35 = vshll.u32 %v8144_v57, 16 }
  0x7c   : > { %7001 = vmatprep.mubr.msk.bf16.mxu0 %vm561_vm1, %v7646_v60  ;;  %v1522_v60 = vshll.u32 %v8114_v48, 16 }
  0x7d   : > { %9707 = vst [vmem:[#allocation17_spill] sm:$0xff] %v8124_v55  ;;  %v1551_v55 = vshrl.u32 %v6310_v59, 16  ;;  %v1510_v54 = vrot.slane %v1509_v24, 4  ;;  %v1520_v59 = vrot.slane %v1519_v20, 4  ;;  %v8167_v24 = vrot.slane %v1584_v35, 5 }
  0x7e   : > { %v1524_v36 = vrot.slane %v1522_v60, 5  ;;  %v1556_v60 = vrot.slane %v1554_v1, 5  ;;  %v1590_v20 = vrot.slane %v1588_v14, 4  ;;  %v8189_v35 = vld [vmem:[%s7814_s14 + $0x58] sm:$0xf]  ;;  %v1581_v14 = vor.u32 %v1580_v58, %v1577_v47 }
  0x7f   : > { %v1553_v53 = vrot.slane %v1551_v55, 4  ;;  %v6332_v55 = vcombine.low %v1491_v34, %v1501_v51  ;;  %v1515_v17 = vsel %vm8137_vm7, %v1510_v54, %v8116_v5  ;;  %v6319_v34 = vld [vmem:[%s7814_s14 + $0x54] sm:$0xf]  ;;  %9714 = vst [vmem:[#allocation22_spill] sm:$0xff] %v8189_v35  ;;  %v1599_v51 = vshrl.u32 %v6316_v25, 16 }
  0x80   : > { %v1525_v1 = vsel %vm8137_vm7, %v1520_v59, %v1524_v36  ;;  %v1594_v36 = vshll.u32 %v8165_v0, 16  ;;  %v1591_v54 = vor.u32 %v1590_v20, %v8167_v24  ;;  %v1602_v59 = vshll.u32 %v6316_v25, 16  ;;  %v6322_v25 = vld [vmem:[%s7814_s14 + $0x60] sm:$0xf] }
  0x81   : > { %v1557_v56 = vor.u32 %v1556_v60, %v1553_v53  ;;  %v1626_v53 = vshll.u32 %v6319_v34, 16  ;;  %v1632_v60 = vshll.u32 %v8189_v35, 16  ;;  %v1572_v58 = vrot.slane %v1570_v44, 5 }
  0x82   : > { %v1636_v20 = vshrl.u32 %v8189_v35, 16  ;;  %v1596_v45 = vrot.slane %v1594_v36, 5  ;;  %v1601_v0 = vrot.slane %v1599_v51, 4  ;;  %v1647_v44 = vshrl.u32 %v6322_v25, 16 }
  0x83   : > { %7002 = vmatmul.mubr.msk.bf16.gmra.mrb[12].mxu0 %vm561_vm1, %v7647_v61  ;;  %v1566_v61 = vrot.slane %v1564_v33, 4  ;;  %v1539_v33 = vsel %vm8137_vm7, %v1534_v16, %v8122_v52  ;;  %v1608_v52 = vshll.u32 %v8179_v28, 16  ;;  %v6333_v16 = vcombine.low %v1515_v17, %v1525_v1 }
  0x84   : > { %7005 = vmatprep.mubr.msk.bf16.mxu0 %vm561_vm1, %v7648_v12  ;;  %v1549_v12 = vsel %vm8137_vm7, %v1544_v3, %v1548_v62  ;;  %v1612_v62 = vshrl.u32 %v8179_v28, 16  ;;  %v1623_v3 = vshrl.u32 %v6319_v34, 16  ;;  %v1582_v28 = vrot.slane %v1581_v14, 4 }
  0x85   : > { %v1567_v5 = vor.u32 %v1566_v61, %v8162_v10  ;;  %v6334_v47 = vcombine.low %v1539_v33, %v1549_v12  ;;  %v1558_v61 = vrot.slane %v1557_v56, 4  ;;  %v1592_v17 = vrot.slane %v1591_v54, 4 }
  0x86   : > { %v1604_v1 = vrot.slane %v1602_v59, 5  ;;  %v8204_v34 = vrot.slane %v1608_v52, 5  ;;  %v1614_v57 = vrot.slane %v1612_v62, 4  ;;  %v1625_v33 = vrot.slane %v1623_v3, 4  ;;  %v8247_v52 = vld [vmem:[%s7814_s14 + $0x68] sm:$0x1] }
  0x87   : > { %v1568_v38 = vrot.slane %v1567_v5, 4  ;;  %v1628_v12 = vrot.slane %v1626_v53, 5  ;;  %v8209_v56 = vrot.slane %v1632_v60, 5  ;;  %v8212_v5 = vld [vmem:[%s7814_s14 + $0x5c] sm:$0x1]  ;;  %v1638_v14 = vrot.slane %v1636_v20, 4 }
  0x88   : > { %9717 = vst [vmem:[#allocation25_spill] sm:$0xff] %v8212_v5  ;;  %v1650_v36 = vshll.u32 %v6322_v25, 16  ;;  %v1563_v62 = vsel %vm8137_vm7, %v1558_v61, %v8162_v10  ;;  %v6325_v53 = vld [vmem:[%s7814_s14 + $0x6c] sm:$0xf]  ;;  %v1587_v60 = vsel %vm8137_vm7, %v1582_v28, %v8167_v24  ;;  %v1605_v20 = vor.u32 %v1604_v1, %v1601_v0 }
  0x89   : > { %v1573_v3 = vsel %vm8137_vm7, %v1568_v38, %v1572_v58  ;;  %v1615_v25 = vor.u32 %v1614_v57, %v8204_v34  ;;  %v8235_v10 = vld [vmem:[%s9670_s1 + $0xc] sm:$0x3]  ;;  %v1597_v38 = vsel %vm8137_vm7, %v1592_v17, %v1596_v45  ;;  %v1629_v61 = vor.u32 %v1628_v12, %v1625_v33 }
  0x8a   : > { %v1642_v0 = vshll.u32 %v8212_v5, 16  ;;  %v1649_v24 = vrot.slane %v1647_v44, 4  ;;  %v1639_v57 = vor.u32 %v1638_v14, %v8209_v56  ;;  %v1652_v28 = vrot.slane %v1650_v36, 5 }
  0x8b   : > { %7006 = vmatmul.mubr.msk.bf16.gmra.mrb[16].mxu0 %vm561_vm1, %v7649_v21  ;;  %v8202_v21 = vld [vmem:[%s7814_s14 + $0x64] sm:$0xf]  ;;  %v1674_v35 = vshll.u32 %v6325_v53, 16  ;;  %v1606_v33 = vrot.slane %v1605_v20, 4  ;;  %v6336_v44 = vcombine.low %v1587_v60, %v1597_v38  ;;  %v1616_v14 = vrot.slane %v1615_v25, 4 }
  0x8c   : > { %7011 = vmatprep.mubr.msk.bf16.mxu0 %vm561_vm1, %v6332_v55  ;;  %9715 = vst [vmem:[#allocation23_spill] sm:$0xff] %v8202_v21  ;;  %v8207_v55 = vld [vmem:[%s7814_s14 + $0x50] sm:$0x1]  ;;  %v1656_v51 = vshll.u32 %v8202_v21, 16  ;;  %v1660_v54 = vshrl.u32 %v8202_v21, 16  ;;  %v1630_v36 = vrot.slane %v1629_v61, 4  ;;  %v1653_v5 = vor.u32 %v1652_v28, %v1649_v24 }
  0x8d   : > { %9716 = vst [vmem:[#allocation24_spill] sm:$0xff] %v8207_v55  ;;  %v1618_v59 = vshll.u32 %v8207_v55, 16  ;;  %v8230_v21 = vld [vmem:[%s7814_s14 + $0x70] sm:$0xf]  ;;  %v461_v60 = vshll.u32 %v7893_v26, 16  ;;  %v1611_v38 = vsel %vm8137_vm7, %v1606_v33, %v8204_v34  ;;  %v1690_v28 = vshll.u32 %v8261_v39, 16 }
  0x8e   : > { %9718 = vst [vmem:[#allocation26_spill] sm:$0xff] %v8230_v21  ;;  %v8244_v58 = vrot.slane %v1656_v51, 5  ;;  %v1662_v1 = vrot.slane %v1660_v54, 4  ;;  %v1680_v45 = vshll.u32 %v8230_v21, 16  ;;  %v1684_v17 = vshrl.u32 %v8230_v21, 16 }
  0x8f   : > { %v1620_v12 = vrot.slane %v1618_v59, 5  ;;  %v1644_v51 = vrot.slane %v1642_v0, 5  ;;  %v6328_v54 = vld [vmem:[%s7814_s14 + $0x78] sm:$0xf]  ;;  %v1666_v21 = vshll.u32 %v8247_v52, 16  ;;  %v1708_v0 = vshrl.u32 %v8258_v11, 16 }
  0x90   : > { %v1663_v55 = vor.u32 %v1662_v1, %v8244_v58  ;;  %v1686_v59 = vrot.slane %v1684_v17, 4  ;;  %v1695_v20 = vshrl.u32 %v6328_v54, 16  ;;  %v1698_v25 = vshll.u32 %v6328_v54, 16  ;;  %v8288_v33 = vld [vmem:[%s7814_s14 + $0x80] sm:$0x1] }
  0x91   : > { %v1621_v61 = vsel %vm8137_vm7, %v1616_v14, %v1620_v12  ;;  %v1654_v24 = vrot.slane %v1653_v5, 4  ;;  %v9719_v17 = vshrl.u32 %v7881_v22, 16  ;;  %v1958_v5 = vrot.slane %v8053_v2, 5 }
  0x92   : > { %v1664_v1 = vrot.slane %v1663_v55, 4  ;;  %v1697_v12 = vrot.slane %v1695_v20, 4  ;;  %v6337_v14 = vcombine.low %v1611_v38, %v1621_v61  ;;  %v1714_v20 = vshll.u32 %v8288_v33, 16 }
  0x93   : > { %7012 = vmatmul.mubr.msk.bf16.vlgmr.msra.gmra.mrb[0].mxu0 %vm561_vm1, %v6333_v16  ;;  %v1671_v16 = vshrl.u32 %v6325_v53, 16  ;;  %v1640_v53 = vrot.slane %v1639_v57, 4  ;;  %v1668_v57 = vrot.slane %v1666_v21, 5  ;;  %v9720_v21 = vshll.u32 %v7881_v22, 16 }
  0x94   : > { %7032 = vmatpush3.bf16.msra.mxu0 %v8047_v32  ;;  %7015 = vmatprep.mubr.msk.bf16.mxu0 %vm561_vm1, %v6334_v47  ;;  %v6335_v47 = vcombine.low %v1563_v62, %v1573_v3  ;;  %v1676_v32 = vrot.slane %v1674_v35, 5  ;;  %v8263_v62 = vrot.slane %v1680_v45, 5  ;;  %v458_v3 = vshrl.u32 %v7893_v26, 16 }
  0x95   : > { %7575 = vmatprep.subr.msk.bf16.mxu0 %vm592_vm0, %v8235_v10  ;;  %v1673_v8 = vrot.slane %v1671_v16, 4  ;;  %v1704_v35 = vshll.u32 %v8258_v11, 16  ;;  %v1635_v26 = vsel %vm8137_vm7, %v1630_v36, %v8209_v56  ;;  %v1645_v34 = vsel %vm8137_vm7, %v1640_v53, %v1644_v51 }
  0x96   : > { %v1687_v45 = vor.u32 %v1686_v59, %v8263_v62  ;;  %v1700_v56 = vrot.slane %v1698_v25, 5  ;;  %v482_v36 = vshrl.u32 %v7900_v29, 16  ;;  %v6338_v51 = vcombine.low %v1635_v26, %v1645_v34 }
  0x97   : > { %v1677_v16 = vor.u32 %v1676_v32, %v1673_v8  ;;  %v8295_v55 = vrot.slane %v1704_v35, 5  ;;  %v1710_v8 = vrot.slane %v1708_v0, 4  ;;  %v6352_v32 = vld [vmem:[%s7814_s14 + $0xc] sm:$0xe]  ;;  %v1659_v54 = vsel %vm8137_vm7, %v1654_v24, %v8244_v58  ;;  %v6353_v0 = vld [vmem:[%s7814_s14 + $0x18] sm:$0xe] }
  0x98   : > { %v1692_v53 = vrot.slane %v1690_v28, 5  ;;  %v1669_v2 = vsel %vm8137_vm7, %v1664_v1, %v1668_v57  ;;  %v1688_v59 = vrot.slane %v1687_v45, 4  ;;  %v1701_v25 = vor.u32 %v1700_v56, %v1697_v12 }
  0x99   : > { %v1678_v22 = vrot.slane %v1677_v16, 4  ;;  %v6362_v38 = vrot.slane %v6352_v32, 9  ;;  %v1960_v61 = vrot.slane %v1958_v5, 4  ;;  %v1961_v35 = vrot.slane %v8092_v50, 5 }
  0x9a   : > { %v471_v26 = vshrl.u32 %v7896_v27, 16  ;;  %v1711_v58 = vor.u32 %v1710_v8, %v8295_v55  ;;  %v1965_v24 = vrot.slane %v8082_v46, 5  ;;  %v8313_v57 = vrot.slane %v461_v60, 5 }
  0x9b   : > { %7016 = vmatmul.mubr.msk.bf16.gmra.mrb[4].mxu0 %vm561_vm1, %v6335_v47  ;;  %v8285_v47 = vrot.slane %v9719_v17, 4  ;;  %v8307_v17 = vrot.slane %v458_v3, 4  ;;  %v8315_v28 = vrot.slane %v482_v36, 4  ;;  %v485_v34 = vshll.u32 %v7900_v29, 16 }
  0x9c   : > { %7019 = vmatprep.mubr.msk.bf16.mxu0 %vm561_vm1, %v6336_v44  ;;  %v8293_v44 = vrot.slane %v9720_v21, 5  ;;  %v495_v1 = vshrl.u32 %v7903_v30, 16  ;;  %v6339_v50 = vcombine.low %v1659_v54, %v1669_v2  ;;  %v1683_v3 = vsel %vm8137_vm7, %v1678_v22, %v8263_v62  ;;  %v6354_v54 = vld [vmem:[%s7814_s14 + $0x24] sm:$0xe] }
  0x9d   : > { %v1693_v16 = vsel %vm8137_vm7, %v1688_v59, %v1692_v53  ;;  %v6363_v46 = vrot.slane %v6353_v0, 9  ;;  %v1702_v60 = vrot.slane %v1701_v25, 4  ;;  %v1716_v45 = vrot.slane %v1714_v20, 5 }
  0x9e   : > { %v8327_v12 = vsel %vm7914_vm4, %v6362_v38, %v1958_v5  ;;  %v8331_v29 = vsel %vm7914_vm4, %v1960_v61, %v1961_v35  ;;  %v1712_v56 = vrot.slane %v1711_v58, 4  ;;  %v1967_v21 = vrot.slane %v1965_v24, 4 }
  0x9f   : > { %v299_v62 = vshll.u32 %v7825_v4, 16  ;;  %v8335_v8 = vrot.slane %v485_v34, 5  ;;  %v506_v32 = vshrl.u32 %v7921_v41, 16  ;;  %v509_v36 = vshll.u32 %v7921_v41, 16  ;;  %v6355_v34 = vld [vmem:[%s7814_s14 + $0x30] sm:$0xe] }
  0xa0   : > { %v519_v5 = vshrl.u32 %v7924_v42, 16  ;;  %v6373_v53 = vcombine.low %v8327_v12, %v8331_v29  ;;  %v8345_v2 = vsel %vm7914_vm4, %v6363_v46, %v1965_v24  ;;  %v1707_v22 = vsel %vm8137_vm7, %v1702_v60, %v8295_v55 }
  0xa1   : > { %v301_v59 = vrot.slane %v299_v62, 5  ;;  %v9721_v20 = vshrl.u32 %v7825_v4, 16  ;;  %v309_v38 = vshll.u32 %v7906_v31, 16  ;;  %v1717_v61 = vsel %vm8137_vm7, %v1712_v56, %v1716_v45 }
  0xa2   : > { %v320_v58 = vor.u32 %v8065_v19, %v8063_v18  ;;  %v1972_v24 = vrot.slane %v8089_v49, 5  ;;  %v9722_v45 = vshrl.u32 %v7833_v7, 16  ;;  %v333_v29 = vshll.u32 %v7927_v43, 16 }
  0xa3   : > { %7020 = vmatmul.mubr.msk.bf16.gmra.mrb[8].mxu0 %vm561_vm1, %v6337_v14  ;;  %v1968_v14 = vrot.slane %v8114_v48, 5  ;;  %v296_v48 = vor.u32 %v8061_v13, %v8055_v6  ;;  %v305_v25 = vrot.slane %v9721_v20, 4  ;;  %v6364_v6 = vrot.slane %v6354_v54, 9  ;;  %v6186_v13 = vld [vmem:[%s9670_s1 + $0x2] sm:$0x3]  ;;  %v9723_v20 = vld [vmem:[#allocation11_spill] sm:$0xff] }
  0xa4   : > { %7023 = vmatprep.mubr.msk.bf16.mxu0 %vm561_vm1, %v6338_v51  ;;  %v6340_v51 = vcombine.low %v1683_v3, %v1693_v16  ;;  %7569 = vmatprep.subr.msk.bf16.mxu1 %vm592_vm0, %v6186_v13  ;;  %v594_v4 = vsel %vm592_vm0, %v6186_v13, 0  ;;  %v311_v0 = vrot.slane %v309_v38, 5  ;;  %v323_v16 = vshll.u32 %v7833_v7, 16  ;;  %v9725_v13 = vld [vmem:[#allocation3_spill] sm:$0xff] }
  0xa5   : > { %v8360_v35 = vsel %vm7914_vm4, %v1967_v21, %v1968_v14  ;;  %v297_v55 = vrot.slane %v296_v48, 4  ;;  %v306_v31 = vor.u32 %v305_v25, %v301_v59  ;;  %6922 = vmatpush3.bf16.msra.mxu1 %v594_v4  ;;  %v321_v60 = vrot.slane %v320_v58, 4  ;;  %v9724_v25 = vld [vmem:[#allocation12_spill] sm:$0xff]  ;;  %v9728_v58 = vld [vmem:[#allocation19_spill] sm:$0xff] }
  0xa6   : > { %v329_v12 = vrot.slane %v9722_v45, 4  ;;  %v6341_v56 = vcombine.low %v1707_v22, %v1717_v61  ;;  %v2331_v18 = vsel %vm592_vm0, %v8235_v10, 0  ;;  %v1975_v19 = vrot.slane %v8120_v40, 5  ;;  %v7660_v61 = vld [vmem:[%s7814_s14 + $0x1c] sm:$0xf] }
  0xa7   : > { %v302_v3 = vsel %vm8137_vm7, %v297_v55, %v301_v59  ;;  %v307_v46 = vrot.slane %v306_v31, 4  ;;  %v325_v49 = vrot.slane %v323_v16, 5  ;;  %v6374_v21 = vcombine.low %v8345_v2, %v8360_v35  ;;  %v6357_v2 = vld [vmem:[%s7814_s14 + $0x48] sm:$0xe]  ;;  %v9727_v31 = vld [vmem:[#allocation18_spill] sm:$0xff] }
  0xa8   : > { %v6365_v14 = vrot.slane %v6355_v34, 9  ;;  %v1982_v62 = vrot.slane %v8160_v15, 5  ;;  %v1974_v43 = vrot.slane %v1972_v24, 4  ;;  %v335_v48 = vrot.slane %v333_v29, 5  ;;  %v9729_v34 = vld [vmem:[#allocation7_spill] sm:$0xff] }
  0xa9   : > { %v312_v7 = vsel %vm8137_vm7, %v307_v46, %v311_v0  ;;  %v330_v54 = vor.u32 %v329_v12, %v325_v49  ;;  %v1973_v40 = vsel %vm7914_vm4, %v6364_v6, %v1972_v24  ;;  %v326_v59 = vsel %vm8137_vm7, %v321_v60, %v325_v49  ;;  %v9730_v12 = vld [vmem:[#allocation21_spill] sm:$0xff] }
  0xaa   : > { %v344_v38 = vor.u32 %v9724_v25, %v9723_v20  ;;  %v347_v35 = vshll.u32 %v7660_v61, 16  ;;  %v9726_v55 = vshrl.u32 %v9725_v13, 16  ;;  %v1986_v0 = vrot.slane %v9727_v31, 5 }
  0xab   : > { %7024 = vmatmul.mubr.msk.bf16.gmra.mrb[12].mxu0 %vm561_vm1, %v6339_v50  ;;  %v1979_v50 = vrot.slane %v8131_v9, 5  ;;  %v6356_v9 = vld [vmem:[%s7814_s14 + $0x3c] sm:$0xe]  ;;  %v331_v15 = vrot.slane %v330_v54, 4  ;;  %v1989_v24 = vrot.slane %v9728_v58, 5  ;;  %v1976_v16 = vsel %vm7914_vm4, %v1974_v43, %v1975_v19 }
  0xac   : > { %7027 = vmatprep.mubr.msk.bf16.mxu0 %vm561_vm1, %v6340_v51  ;;  %v6187_v51 = vcombine.low %v302_v3, %v312_v7  ;;  %v6366_v22 = vrot.slane %v6356_v9, 9  ;;  %v353_v4 = vrot.slane %v9726_v55, 4  ;;  %v357_v3 = vshll.u32 %v9729_v34, 16  ;;  %v9732_v9 = vld [vmem:[#allocation14_spill] sm:$0xff]  ;;  %v7661_v19 = vld [vmem:[%s7814_s14 + $0x28] sm:$0xf] }
  0xad   : > { %v1981_v10 = vrot.slane %v1979_v50, 4  ;;  %v8403_v6 = vsel %vm7914_vm4, %v6365_v14, %v1979_v50  ;;  %v336_v46 = vsel %vm8137_vm7, %v331_v15, %v335_v48  ;;  %v345_v60 = vrot.slane %v344_v38, 4  ;;  %v6358_v38 = vld [vmem:[%s7814_s14 + $0x54] sm:$0xe]  ;;  %v8439_v58 = vld [vmem:[%s9670_s1 + $0xe] sm:$0x3] }
  0xae   : > { %6923 = vmatprep.mubr.msk.bf16.mxu1 %vm561_vm1, %v6187_v51  ;;  %v6367_v45 = vrot.slane %v6357_v2, 9  ;;  %v1993_v29 = vrot.slane %v9730_v12, 5  ;;  %v6188_v50 = vcombine.low %v326_v59, %v336_v46  ;;  %v359_v51 = vrot.slane %v357_v3, 5  ;;  %v9733_v2 = vld [vmem:[#allocation4_spill] sm:$0xff] }
  0xaf   : > { %v8417_v14 = vsel %vm7914_vm4, %v1981_v10, %v1982_v62  ;;  %v371_v43 = vshll.u32 %v7661_v19, 16  ;;  %v6375_v54 = vcombine.low %v1973_v40, %v1976_v16  ;;  %v1988_v48 = vrot.slane %v1986_v0, 4  ;;  %v9735_v59 = vld [vmem:[#allocation8_spill] sm:$0xff] }
  0xb0   : > { %6924 = vmatmul.mubr.msk.bf16.vlgmr.msra.gmra.mrb[0].mxu1 %vm561_vm1, %v6188_v50  ;;  %v9734_v15 = vshrl.u32 %v9733_v2, 16  ;;  %v381_v25 = vshll.u32 %v9735_v59, 16  ;;  %v6376_v13 = vcombine.low %v8403_v6, %v8417_v14  ;;  %v1987_v40 = vsel %vm7914_vm4, %v6366_v22, %v1986_v0  ;;  %v6359_v3 = vld [vmem:[%s7814_s14 + $0x60] sm:$0xe] }
  0xb1   : > { %v8433_v55 = vsel %vm7914_vm4, %v6367_v45, %v1993_v29  ;;  %v1995_v34 = vrot.slane %v1993_v29, 4  ;;  %v1990_v16 = vsel %vm7914_vm4, %v1988_v48, %v1989_v24  ;;  %v6368_v46 = vrot.slane %v6358_v38, 9  ;;  %v9738_v29 = vld [vmem:[#allocation15_spill] sm:$0xff]  ;;  %v9739_v50 = vld [vmem:[#allocation16_spill] sm:$0xff] }
  0xb2   : > { %v377_v20 = vrot.slane %v9734_v15, 4  ;;  %v383_v0 = vrot.slane %v381_v25, 5  ;;  %v6369_v14 = vrot.slane %v6359_v3, 9  ;;  %v6377_v48 = vcombine.low %v1987_v40, %v1990_v16  ;;  %v9745_v59 = vld [vmem:[#allocation20_spill] sm:$0xff]  ;;  %v9747_v40 = vld [vmem:[#allocation6_spill] sm:$0xff] }
  0xb3   : > { %7028 = vmatmul.mubr.msk.bf16.gmra.mrb[16].mxu0 %vm561_vm1, %v6341_v56  ;;  %v9731_v56 = vld [vmem:[#allocation13_spill] sm:$0xff]  ;;  %v9748_v16 = vshrl.u32 %v9747_v40, 16  ;;  %v6361_v40 = vld [vmem:[%s7814_s14 + $0x78] sm:$0xe]  ;;  %v2024_v41 = vrot.slane %v8288_v33, 5 }
  0xb4   : > { %7033 = vmatprep.mubr.msk.bf16.mxu0 %vm561_vm1, %v6373_v53  ;;  %v349_v53 = vrot.slane %v347_v35, 5  ;;  %v368_v49 = vor.u32 %v9732_v9, %v9731_v56  ;;  %v373_v35 = vrot.slane %v371_v43, 5  ;;  %v7662_v56 = vld [vmem:[%s7814_s14 + $0x34] sm:$0xf]  ;;  %v9743_v43 = vld [vmem:[#allocation9_spill] sm:$0xff] }
  0xb5   : > { %v395_v9 = vshll.u32 %v7662_v56, 16 }
  0xb6   : > { %v354_v7 = vor.u32 %v353_v4, %v349_v53  ;;  %v350_v61 = vsel %vm8137_vm7, %v345_v60, %v349_v53  ;;  %v369_v10 = vrot.slane %v368_v49, 4  ;;  %v9736_v4 = vld [vmem:[#allocation24_spill] sm:$0xff]  ;;  %v378_v22 = vor.u32 %v377_v20, %v373_v35  ;;  %v9737_v60 = vld [vmem:[#allocation22_spill] sm:$0xff]  ;;  %v9740_v49 = vld [vmem:[#allocation25_spill] sm:$0xff] }
  0xb7   : > { %v1996_v31 = vrot.slane %v9736_v4, 5  ;;  %v2000_v53 = vrot.slane %v9737_v60, 5  ;;  %v2003_v24 = vrot.slane %v9740_v49, 5  ;;  %v9744_v20 = vld [vmem:[#allocation17_spill] sm:$0xff]  ;;  %v9746_v4 = vld [vmem:[#allocation23_spill] sm:$0xff]  ;;  %v425_v60 = vrot.slane %v9748_v16, 4 }
  0xb8   : > { %v355_v62 = vrot.slane %v354_v7, 4  ;;  %v379_v12 = vrot.slane %v378_v22, 4  ;;  %v9741_v7 = vld [vmem:[#allocation5_spill] sm:$0xff]  ;;  %v416_v25 = vor.u32 %v9745_v59, %v9744_v20  ;;  %v2007_v3 = vrot.slane %v9746_v4, 5 }
  0xb9   : > { %v1997_v2 = vsel %vm7914_vm4, %v1995_v34, %v1996_v31  ;;  %v2002_v38 = vrot.slane %v2000_v53, 4  ;;  %v9749_v31 = vld [vmem:[#allocation10_spill] sm:$0xff] }
  0xba   : > { %v360_v6 = vsel %vm8137_vm7, %v355_v62, %v359_v51  ;;  %v9742_v51 = vshrl.u32 %v9741_v7, 16  ;;  %v384_v15 = vsel %vm8137_vm7, %v379_v12, %v383_v0  ;;  %v429_v34 = vshll.u32 %v9749_v31, 16 }
  0xbb   : > { %7034 = vmatmul.mubr.msk.bf16.vlgmr.msra.gmra.mrb[0].mxu0 %vm561_vm1, %v6374_v21  ;;  %v6189_v45 = vcombine.low %v350_v61, %v360_v6  ;;  %v374_v21 = vsel %vm8137_vm7, %v369_v10, %v373_v35  ;;  %v8468_v61 = vld [vmem:[%s7814_s14 + $0x6c] sm:$0xe]  ;;  %v397_v35 = vrot.slane %v395_v9, 5  ;;  %v7663_v6 = vld [vmem:[%s7814_s14 + $0x40] sm:$0xf]  ;;  %v6378_v0 = vcombine.low %v8433_v55, %v1997_v2 }
  0xbc   : > { %7054 = vmatpush3.bf16.msra.mxu0 %v2331_v18  ;;  %7037 = vmatprep.mubr.msk.bf16.mxu0 %vm561_vm1, %v6375_v54  ;;  %v392_v18 = vor.u32 %v9739_v50, %v9738_v29  ;;  %v401_v19 = vrot.slane %v9742_v51, 4  ;;  %v405_v54 = vshll.u32 %v9743_v43, 16  ;;  %v6190_v62 = vcombine.low %v374_v21, %v384_v15 }
  0xbd   : > { %7576 = vmatprep.subr.msk.bf16.mxu0 %vm592_vm0, %v8439_v58  ;;  %6927 = vmatprep.mubr.msk.bf16.mxu1 %vm561_vm1, %v6189_v45  ;;  %v419_v22 = vshll.u32 %v7663_v6, 16  ;;  %v2010_v45 = vrot.slane %v8247_v52, 5  ;;  %v2001_v21 = vsel %vm7914_vm4, %v6368_v46, %v2000_v53  ;;  %v6370_v50 = vrot.slane %v8468_v61, 9  ;;  %v9750_v52 = vld [vmem:[#allocation26_spill] sm:$0xff] }
  0xbe   : > { %v393_v10 = vrot.slane %v392_v18, 4  ;;  %6928 = vmatmul.mubr.msk.bf16.gmra.mrb[4].mxu1 %vm561_vm1, %v6190_v62  ;;  %v402_v12 = vor.u32 %v401_v19, %v397_v35  ;;  %v407_v29 = vrot.slane %v405_v54, 5  ;;  %v417_v18 = vrot.slane %v416_v25, 4  ;;  %v7664_v54 = vld [vmem:[%s7814_s14 + $0x4c] sm:$0xf] }
  0xbf   : > { %v421_v56 = vrot.slane %v419_v22, 5  ;;  %v2004_v55 = vsel %vm7914_vm4, %v2002_v38, %v2003_v24  ;;  %v2014_v9 = vrot.slane %v9750_v52, 5  ;;  %v2009_v46 = vrot.slane %v2007_v3, 4 }
  0xc0   : > { %v398_v49 = vsel %vm8137_vm7, %v393_v10, %v397_v35  ;;  %v403_v7 = vrot.slane %v402_v12, 4  ;;  %v431_v51 = vrot.slane %v429_v34, 5  ;;  %v2017_v19 = vrot.slane %v8261_v39, 5  ;;  %v7666_v35 = vld [vmem:[%s7814_s14 + $0x58] sm:$0xf] }
  0xc1   : > { %v426_v53 = vor.u32 %v425_v60, %v421_v56  ;;  %v440_v24 = vor.u32 %v8293_v44, %v8285_v47  ;;  %v6379_v2 = vcombine.low %v2001_v21, %v2004_v55  ;;  %v2016_v59 = vrot.slane %v2014_v9, 4  ;;  %v7665_v44 = vld [vmem:[%s7814_s14 + $0x50] sm:$0x1]  ;;  %v7667_v34 = vld [vmem:[%s7814_s14 + $0x5c] sm:$0x1] }
  0xc2   : > { %v408_v43 = vsel %vm8137_vm7, %v403_v7, %v407_v29  ;;  %v9751_v39 = vshrl.u32 %v7884_v23, 16  ;;  %v453_v62 = vshll.u32 %v7665_v44, 16  ;;  %v464_v10 = vor.u32 %v8313_v57, %v8307_v17 }
  0xc3   : > { %7038 = vmatmul.mubr.msk.bf16.gmra.mrb[4].mxu0 %vm561_vm1, %v6376_v13  ;;  %v8490_v13 = vsel %vm7914_vm4, %v6369_v14, %v2007_v3  ;;  %v6191_v15 = vcombine.low %v398_v49, %v408_v43  ;;  %v422_v14 = vsel %vm8137_vm7, %v417_v18, %v421_v56  ;;  %v427_v20 = vrot.slane %v426_v53, 4 }
  0xc4   : > { %7041 = vmatprep.mubr.msk.bf16.mxu0 %vm561_vm1, %v6377_v48  ;;  %v443_v48 = vshll.u32 %v7664_v54, 16  ;;  %v441_v25 = vrot.slane %v440_v24, 4  ;;  %v449_v61 = vrot.slane %v9751_v39, 4  ;;  %v467_v4 = vshll.u32 %v7666_v35, 16  ;;  %v7670_v54 = vld [vmem:[%s7814_s14 + $0x70] sm:$0xf] }
  0xc5   : > { %6931 = vmatprep.mubr.msk.bf16.mxu1 %vm561_vm1, %v6191_v15  ;;  %v432_v47 = vsel %vm8137_vm7, %v427_v20, %v431_v51  ;;  %v2011_v3 = vsel %vm7914_vm4, %v2009_v46, %v2010_v45  ;;  %v473_v23 = vrot.slane %v471_v26, 4  ;;  %v455_v16 = vrot.slane %v453_v62, 5 }
  0xc6   : > { %v445_v38 = vrot.slane %v443_v48, 5  ;;  %v6192_v6 = vcombine.low %v422_v14, %v432_v47  ;;  %v465_v60 = vrot.slane %v464_v10, 4  ;;  %v469_v31 = vrot.slane %v467_v4, 5  ;;  %v7671_v14 = vld [vmem:[%s7814_s14 + $0x74] sm:$0x1]  ;;  %v7650_v47 = vld [vmem:[%s7814_s14 + $0x18] sm:$0xff]  }
  0xc7   : > { %v477_v12 = vshll.u32 %v7667_v34, 16  ;;  %v508_v17 = vrot.slane %v506_v32, 4  ;;  %v2021_v57 = vrot.slane %v8258_v11, 5  ;;  %v2018_v45 = vsel %vm7914_vm4, %v2016_v59, %v2017_v19  ;;  %v6439_v34 = vld [vmem:[%s7814_s14 + $0x24] sm:$0xf] }
  0xc8   : > { %v450_v22 = vor.u32 %v449_v61, %v445_v38  ;;  %6932 = vmatmul.mubr.msk.bf16.gmra.mrb[8].mxu1 %vm561_vm1, %v6192_v6  ;;  %v446_v27 = vsel %vm8137_vm7, %v441_v25, %v445_v38  ;;  %v474_v29 = vor.u32 %v473_v23, %v469_v31  ;;  %v511_v32 = vrot.slane %v509_v36, 5  ;;  %v7668_v36 = vld [vmem:[%s7814_s14 + $0x64] sm:$0xf] }
  0xc9   : > { %v479_v21 = vrot.slane %v477_v12, 5  ;;  %v6380_v11 = vcombine.low %v8490_v13, %v2011_v3  ;;  %v6371_v18 = vrot.slane %v6361_v40, 9  ;;  %v470_v52 = vsel %vm8137_vm7, %v465_v60, %v469_v31  ;;  %v7651_v6 = vld [vmem:[%s7814_s14 + $0x24] sm:$0xff]   ;;  %v8575_v40 = vld [vmem:[%s9670_s1 + $0x10] sm:$0x3] }
  0xca   : > { %v451_v26 = vrot.slane %v450_v22, 4  ;;  %v2023_v7 = vrot.slane %v2021_v57, 4  ;;  %v491_v13 = vshll.u32 %v7668_v36, 16  ;;  %v497_v53 = vrot.slane %v495_v1, 4  ;;  %v7652_v22 = vld [vmem:[%s7814_s14 + $0x30] sm:$0xff]   ;;  %v7654_v31 = vld [vmem:[%s7814_s14 + $0x48] sm:$0xff]  }
  0xcb   : > { %7042 = vmatmul.mubr.msk.bf16.gmra.mrb[8].mxu0 %vm561_vm1, %v6378_v0  ;;  %v2015_v0 = vsel %vm7914_vm4, %v6370_v50, %v2014_v9  ;;  %v475_v50 = vrot.slane %v474_v29, 4  ;;  %v488_v9 = vor.u32 %v8335_v8, %v8315_v28  ;;  %v7669_v28 = vld [vmem:[%s7814_s14 + $0x68] sm:$0x1]  ;;  %v2022_v33 = vsel %vm7914_vm4, %v6371_v18, %v2021_v57  ;;  %v6436_v60 = vld [vmem:[%s7814_s14 + $0x18] sm:$0xf] }
  0xcc   : > { %7045 = vmatprep.mubr.msk.bf16.mxu0 %vm561_vm1, %v6379_v2  ;;  %v456_v56 = vsel %vm8137_vm7, %v451_v26, %v455_v16  ;;  %v6381_v49 = vcombine.low %v2015_v0, %v2018_v45  ;;  %v493_v43 = vrot.slane %v491_v13, 5  ;;  %v501_v8 = vshll.u32 %v7669_v28, 16  ;;  %v7653_v16 = vld [vmem:[%s7814_s14 + $0x3c] sm:$0xff]   ;;  %v8593_v26 = vld [vmem:[%s7814_s14 + $0x28] sm:$0xf]  ;;  %v7655_v29 = vld [vmem:[%s7814_s14 + $0x54] sm:$0xff]  }
  0xcd   : > { %v6193_v55 = vcombine.low %v446_v27, %v456_v56  ;;  %v480_v46 = vsel %vm8137_vm7, %v475_v50, %v479_v21  ;;  %v489_v19 = vrot.slane %v488_v9, 4  ;;  %v512_v24 = vor.u32 %v511_v32, %v508_v17  ;;  %v8602_v50 = vld [vmem:[%s7814_s14 + $0x34] sm:$0xf]  ;;  %v7656_v9 = vld [vmem:[%s7814_s14 + $0x60] sm:$0xff]   ;;  %v8609_v36 = vld [vmem:[%s7814_s14 + $0x2c] sm:$0x1] }
  0xce   : > { %v6194_v51 = vcombine.low %v470_v52, %v480_v46  ;;  %v515_v48 = vshll.u32 %v7670_v54, 16  ;;  %v521_v2 = vrot.slane %v519_v5, 4  ;;  %v2025_v30 = vsel %vm7914_vm4, %v2023_v7, %v2024_v41  ;;  %v8615_v28 = vld [vmem:[%s7814_s14 + $0x40] sm:$0xf] }
  0xcf   : > { %6935 = vmatprep.mubr.msk.bf16.mxu1 %vm561_vm1, %v6193_v55  ;;  %v498_v1 = vor.u32 %v497_v53, %v493_v43  ;;  %v503_v15 = vrot.slane %v501_v8, 5  ;;  %v525_v20 = vshll.u32 %v7671_v14, 16  ;;  %v513_v59 = vrot.slane %v512_v24, 4 }
  0xd0   : > { %6936 = vmatmul.mubr.msk.bf16.gmra.mrb[12].mxu1 %vm561_vm1, %v6194_v51  ;;  %v517_v25 = vrot.slane %v515_v48, 5  ;;  %v494_v38 = vsel %vm8137_vm7, %v489_v19, %v493_v43  ;;  %v6382_v5 = vcombine.low %v2022_v33, %v2025_v30  ;;  %v2799_v23 = vsel %vm592_vm0, %v8439_v58, 0  ;;  %v8585_v58 = vld [vmem:[%s7814_s14 + $0x1c] sm:$0xf] }
  0xd1   : > { %v499_v42 = vrot.slane %v498_v1, 4  ;;  %v527_v61 = vrot.slane %v525_v20, 5  ;;  %v2497_v12 = vshrl.u32 %v6436_v60, 16  ;;  %v2500_v17 = vshll.u32 %v6436_v60, 16  ;;  %v6445_v43 = vld [vmem:[%s7814_s14 + $0x3c] sm:$0xf] }
  0xd2   : > { %v522_v39 = vor.u32 %v521_v2, %v517_v25  ;;  %v518_v10 = vsel %vm8137_vm7, %v513_v59, %v517_v25  ;;  %v2506_v57 = vshll.u32 %v8585_v58, 16  ;;  %v2510_v27 = vshrl.u32 %v8585_v58, 16 }
  0xd3   : > { %7046 = vmatmul.mubr.msk.bf16.gmra.mrb[12].mxu0 %vm561_vm1, %v6380_v11  ;;  %v504_v44 = vsel %vm8137_vm7, %v499_v42, %v503_v15  ;;  %v2521_v0 = vshrl.u32 %v6439_v34, 16  ;;  %v2524_v45 = vshll.u32 %v6439_v34, 16  ;;  %v2499_v21 = vrot.slane %v2497_v12, 4  ;;  %v6442_v11 = vld [vmem:[%s7814_s14 + $0x30] sm:$0xf] }
  0xd4   : > { %7049 = vmatprep.mubr.msk.bf16.mxu0 %vm561_vm1, %v6381_v49  ;;  %v6195_v62 = vcombine.low %v494_v38, %v504_v44  ;;  %v523_v35 = vrot.slane %v522_v39, 4  ;;  %v2502_v32 = vrot.slane %v2500_v17, 5  ;;  %v8597_v18 = vrot.slane %v2506_v57, 5  ;;  %v8606_v49 = vld [vmem:[%s7814_s14 + $0x20] sm:$0x1]  ;;  %v7657_v42 = vld [vmem:[%s7814_s14 + $0x6c] sm:$0xff]  }
  0xd5   : > { %v2512_v56 = vrot.slane %v2510_v27, 4  ;;  %v2530_v55 = vshll.u32 %v8593_v26, 16  ;;  %v2534_v52 = vshrl.u32 %v8593_v26, 16  ;;  %v2523_v7 = vrot.slane %v2521_v0, 4  ;;  %v8631_v44 = vld [vmem:[%s7814_s14 + $0x38] sm:$0x1] }
  0xd6   : > { %6939 = vmatprep.mubr.msk.bf16.mxu1 %vm561_vm1, %v6195_v62  ;;  %v528_v4 = vsel %vm8137_vm7, %v523_v35, %v527_v61  ;;  %v2526_v41 = vrot.slane %v2524_v45, 5  ;;  %v2545_v13 = vshrl.u32 %v6442_v11, 16  ;;  %v2548_v46 = vshll.u32 %v6442_v11, 16  ;;  %v7658_v62 = vld [vmem:[%s7814_s14 + $0x78] sm:$0xff]   ;;  %v6448_v35 = vld [vmem:[%s7814_s14 + $0x48] sm:$0xf] }
  0xd7   : > { %v6196_v3 = vcombine.low %v518_v10, %v528_v4  ;;  %v2503_v53 = vor.u32 %v2502_v32, %v2499_v21  ;;  %v2554_v51 = vshll.u32 %v8602_v50, 16  ;;  %v2558_v19 = vshrl.u32 %v8602_v50, 16  ;;  %v8645_v12 = vld [vmem:[%s7814_s14 + $0x44] sm:$0x1]  ;;  %v6451_v32 = vld [vmem:[%s7814_s14 + $0x54] sm:$0xf] }
  0xd8   : > { %v2513_v8 = vor.u32 %v2512_v56, %v8597_v18  ;;  %v2516_v33 = vshll.u32 %v8606_v49, 16  ;;  %v8620_v24 = vrot.slane %v2530_v55, 5  ;;  %v2536_v54 = vrot.slane %v2534_v52, 4  ;;  %v7659_v55 = vld [vmem:[%s7814_s14 + $0x84] sm:$0xff]  }
  0xd9   : > { %6940 = vmatmul.mubr.msk.bf16.gmra.mrb[16].mxu1 %vm561_vm1, %v6196_v3  ;;  %v2527_v48 = vor.u32 %v2526_v41, %v2523_v7  ;;  %v2540_v2 = vshll.u32 %v8609_v36, 16  ;;  %v2569_v30 = vshrl.u32 %v6445_v43, 16  ;;  %v2572_v1 = vshll.u32 %v6445_v43, 16 }
  0xda   : > { %v2578_v15 = vshll.u32 %v8615_v28, 16  ;;  %v2582_v14 = vshrl.u32 %v8615_v28, 16  ;;  %v2547_v20 = vrot.slane %v2545_v13, 4  ;;  %v2550_v59 = vrot.slane %v2548_v46, 5  ;;  %v8661_v13 = vld [vmem:[%s7814_s14 + $0x50] sm:$0x1] }
  0xdb   : > { %7050 = vmatmul.mubr.msk.bf16.gmra.mrb[16].mxu0 %vm561_vm1, %v6382_v5  ;;  %v8626_v25 = vrot.slane %v2554_v51, 5  ;;  %v2560_v38 = vrot.slane %v2558_v19, 4  ;;  %v2504_v5 = vrot.slane %v2503_v53, 4  ;;  %v2514_v39 = vrot.slane %v2513_v8, 4  ;;  %v8670_v19 = vld [vmem:[%s7814_s14 + $0x58] sm:$0xf] }
  0xdc   : > { %7055 = vmatprep.mubr.msk.bf16.mxu0 %vm561_vm1, %v7650_v47  ;;  %v2518_v61 = vrot.slane %v2516_v33, 5  ;;  %v2537_v47 = vor.u32 %v2536_v54, %v8620_v24  ;;  %v8634_v10 = vrot.slane %v2527_v48, 4  ;;  %v2571_v4 = vrot.slane %v2569_v30, 4  ;;  %v6454_v8 = vld [vmem:[%s7814_s14 + $0x60] sm:$0xf] }
  0xdd   : > { %v2574_v3 = vrot.slane %v2572_v1, 5  ;;  %v2551_v60 = vor.u32 %v2550_v59, %v2547_v20  ;;  %v2564_v34 = vshll.u32 %v8631_v44, 16  ;;  %v2509_v17 = vsel %vm8137_vm7, %v2504_v5, %v8597_v18  ;;  %v8676_v30 = vld [vmem:[%s7814_s14 + $0x64] sm:$0xf] }
  0xde   : > { %v2519_v57 = vsel %vm8137_vm7, %v2514_v39, %v2518_v61  ;;  %v2538_v27 = vrot.slane %v2537_v47, 4  ;;  %v2593_v0 = vshrl.u32 %v6448_v35, 16  ;;  %v2596_v45 = vshll.u32 %v6448_v35, 16 }
  0xdf   : > { %v2575_v11 = vor.u32 %v2574_v3, %v2571_v4  ;;  %v2588_v18 = vshll.u32 %v8645_v12, 16  ;;  %v6467_v52 = vcombine.low %v2509_v17, %v2519_v57  ;;  %v2566_v41 = vrot.slane %v2564_v34, 5 }
  0xe0   : > { %v2533_v46 = vsel %vm8137_vm7, %v8634_v10, %v8620_v24  ;;  %v2595_v51 = vrot.slane %v2593_v0, 4  ;;  %v2617_v43 = vshrl.u32 %v6451_v32, 16  ;;  %v2598_v33 = vrot.slane %v2596_v45, 5  ;;  %v8702_v0 = vld [vmem:[%s7814_s14 + $0x68] sm:$0x1] }
  0xe1   : > { %v2576_v1 = vrot.slane %v2575_v11, 4  ;;  %v2612_v24 = vshll.u32 %v8661_v13, 16  ;;  %v2626_v20 = vshll.u32 %v8670_v19, 16  ;;  %v2630_v59 = vshrl.u32 %v8670_v19, 16 }
  0xe2   : > { %v2650_v61 = vshll.u32 %v8676_v30, 16  ;;  %v2654_v47 = vshrl.u32 %v8676_v30, 16  ;;  %v2619_v35 = vrot.slane %v2617_v43, 4 }
  0xe3   : > { %7056 = vmatmul.mubr.msk.bf16.vlgmr.msra.gmra.mrb[0].mxu0 %vm561_vm1, %v7651_v6  ;;  %v8637_v6 = vrot.slane %v2578_v15, 5 }
  0xe4   : > { %7076 = vmatpush3.bf16.msra.mxu0 %v2799_v23  ;;  %7059 = vmatprep.mubr.msk.bf16.mxu0 %vm561_vm1, %v7652_v22  ;;  %v2584_v22 = vrot.slane %v2582_v14, 4  ;;  %v8640_v23 = vld [vmem:[%s7814_s14 + $0x4c] sm:$0xf]  ;;  %v2590_v14 = vrot.slane %v2588_v18, 5  ;;  %v8704_v45 = vrot.slane %v2650_v61, 5 }
  0xe5   : > { %7577 = vmatprep.subr.msk.bf16.mxu0 %vm592_vm0, %v8575_v40  ;;  %v2606_v21 = vshrl.u32 %v8640_v23, 16  ;;  %v8709_v18 = vld [vmem:[%s7814_s14 + $0x70] sm:$0xf] }
  0xe6   : > { %v2585_v56 = vor.u32 %v2584_v22, %v8637_v6  ;;  %v2614_v22 = vrot.slane %v2612_v24, 5 }
  0xe7   : > { %v2608_v48 = vrot.slane %v2606_v21, 4 }
  0xe8   : > { %v2586_v15 = vrot.slane %v2585_v56, 4 }
  0xea   : > { %v2591_v3 = vsel %vm8137_vm7, %v2586_v15, %v2590_v14 }
  0xeb   : > { %7060 = vmatmul.mubr.msk.bf16.gmra.mrb[4].mxu0 %vm561_vm1, %v7653_v16  ;;  %v2542_v16 = vrot.slane %v2540_v2, 5  ;;  %v2620_v2 = vshll.u32 %v6451_v32, 16 }
  0xec   : > { %7063 = vmatprep.mubr.msk.bf16.mxu0 %vm561_vm1, %v7654_v31  ;;  %v2561_v31 = vor.u32 %v2560_v38, %v8626_v25  ;;  %v2641_v38 = vshrl.u32 %v6454_v8, 16 }
  0xed   : > { %v2543_v53 = vsel %vm8137_vm7, %v2538_v27, %v2542_v16  ;;  %v2622_v4 = vrot.slane %v2620_v2, 5  ;;  %v8697_v16 = vld [vmem:[%s7814_s14 + $0x5c] sm:$0x1] }
  0xee   : > { %v2562_v7 = vrot.slane %v2561_v31, 4  ;;  %v2632_v31 = vrot.slane %v2630_v59, 4  ;;  %v2643_v34 = vrot.slane %v2641_v38, 4  ;;  %v6468_v57 = vcombine.low %v2533_v46, %v2543_v53  ;;  %v6460_v53 = vld [vmem:[%s7814_s14 + $0x78] sm:$0xf] }
  0xef   : > { %v2623_v11 = vor.u32 %v2622_v4, %v2619_v35  ;;  %v2636_v56 = vshll.u32 %v8697_v16, 16  ;;  %v2689_v14 = vshrl.u32 %v6460_v53, 16  ;;  %v2692_v24 = vshll.u32 %v6460_v53, 16  ;;  %v6463_v4 = vld [vmem:[%s7814_s14 + $0x84] sm:$0xf] }
  0xf0   : > { %v2567_v39 = vsel %vm8137_vm7, %v2562_v7, %v2566_v41  ;;  %v2660_v41 = vshll.u32 %v8702_v0, 16 }
  0xf1   : > { %v2638_v15 = vrot.slane %v2636_v56, 5  ;;  %v2716_v56 = vshll.u32 %v6463_v4, 16 }
  0xf3   : > { %7064 = vmatmul.mubr.msk.bf16.gmra.mrb[8].mxu0 %vm561_vm1, %v7655_v29  ;;  %v2602_v29 = vshll.u32 %v8640_v23, 16 }
  0xf4   : > { %7067 = vmatprep.mubr.msk.bf16.mxu0 %vm561_vm1, %v7656_v9  ;;  %v2552_v9 = vrot.slane %v2551_v60, 4  ;;  %v8699_v60 = vrot.slane %v2626_v20, 5 }
  0xf5   : > { %v8673_v54 = vrot.slane %v2602_v29, 5  ;;  %v6457_v29 = vld [vmem:[%s7814_s14 + $0x6c] sm:$0xf] }
  0xf6   : > { %v2557_v5 = vsel %vm8137_vm7, %v2552_v9, %v8626_v25  ;;  %v2581_v25 = vsel %vm8137_vm7, %v2576_v1, %v8637_v6  ;;  %v2656_v6 = vrot.slane %v2654_v47, 4  ;;  %v2633_v9 = vor.u32 %v2632_v31, %v8699_v60 }
  0xf7   : > { %v2609_v10 = vor.u32 %v2608_v48, %v8673_v54  ;;  %v6469_v27 = vcombine.low %v2557_v5, %v2567_v39  ;;  %v2665_v46 = vshrl.u32 %v6457_v29, 16  ;;  %v2678_v48 = vshrl.u32 %v8709_v18, 16 }
  0xf8   : > { %v2657_v43 = vor.u32 %v2656_v6, %v8704_v45  ;;  %v2624_v1 = vrot.slane %v2623_v11, 4  ;;  %v2634_v38 = vrot.slane %v2633_v9, 4  ;;  %v2662_v5 = vrot.slane %v2660_v41, 5  ;;  %v8745_v6 = vld [vmem:[%s7814_s14 + $0x80] sm:$0x1] }
  0xf9   : > { %v2610_v32 = vrot.slane %v2609_v10, 4  ;;  %v2667_v39 = vrot.slane %v2665_v46, 4  ;;  %v2680_v10 = vrot.slane %v2678_v48, 4  ;;  %v2708_v41 = vshll.u32 %v8745_v6, 16 }
  0xfa   : > { %v2658_v61 = vrot.slane %v2657_v43, 4  ;;  %v2718_v48 = vrot.slane %v2716_v56, 5 }
  0xfb   : > { %7068 = vmatmul.mubr.msk.bf16.gmra.mrb[12].mxu0 %vm561_vm1, %v7657_v42  ;;  %v2644_v42 = vshll.u32 %v6454_v8, 16  ;;  %v2668_v8 = vshll.u32 %v6457_v29, 16  ;;  %v2615_v2 = vsel %vm8137_vm7, %v2610_v32, %v2614_v22 }
  0xfc   : > { %7071 = vmatprep.mubr.msk.bf16.mxu0 %vm561_vm1, %v7658_v62  ;;  %v2599_v62 = vor.u32 %v2598_v33, %v2595_v51  ;;  %v8717_v51 = vld [vmem:[%s7814_s14 + $0x7c] sm:$0xf]  ;;  %v2674_v33 = vshll.u32 %v8709_v18, 16 }
  0xfd   : > { %v2646_v17 = vrot.slane %v2644_v42, 5  ;;  %v2698_v20 = vshll.u32 %v8717_v51, 16  ;;  %v2702_v59 = vshrl.u32 %v8717_v51, 16  ;;  %v2670_v47 = vrot.slane %v2668_v8, 5 }
  0xfe   : > { %v2600_v21 = vrot.slane %v2599_v62, 4  ;;  %v2676_v62 = vrot.slane %v2674_v33, 5 }
  0xff   : > { %v2647_v7 = vor.u32 %v2646_v17, %v2643_v34  ;;  %v2700_v22 = vrot.slane %v2698_v20, 5  ;;  %v2704_v31 = vrot.slane %v2702_v59, 4  ;;  %v8736_v34 = vld [vmem:[%s7814_s14 + $0x88] sm:$0xf]  ;;  %v2629_v17 = vsel %vm8137_vm7, %v2624_v1, %v8699_v60 }
 0x100   : > { %v2671_v32 = vor.u32 %v2670_v47, %v2667_v39  ;;  %v2681_v11 = vor.u32 %v2680_v10, %v2676_v62  ;;  %v2713_v60 = vshrl.u32 %v6463_v4, 16  ;;  %v2726_v9 = vshrl.u32 %v8736_v34, 16  ;;  %v6487_v10 = vld [vmem:[%s7814_s14 + $0x18] sm:$0xe] }
 0x101   : > { %v2648_v42 = vrot.slane %v2647_v7, 4  ;;  %v2976_v47 = vrot.slane %v8585_v58, 5 }
 0x102   : > { %v2672_v53 = vrot.slane %v2671_v32, 4  ;;  %v2682_v43 = vrot.slane %v2681_v11, 4  ;;  %v2715_v33 = vrot.slane %v2713_v60, 4  ;;  %v6488_v32 = vld [vmem:[%s7814_s14 + $0x24] sm:$0xe] }
 0x103   : > { %7072 = vmatmul.mubr.msk.bf16.gmra.mrb[16].mxu0 %vm561_vm1, %v7659_v55  ;;  %v3107_v55 = vsel %vm592_vm0, %v8575_v40, 0  ;;  %v2605_v40 = vsel %vm8137_vm7, %v2600_v21, %v8673_v54  ;;  %v8732_v54 = vld [vmem:[%s7814_s14 + $0x74] sm:$0x1]  ;;  %v2653_v29 = vsel %vm8137_vm7, %v2648_v42, %v8704_v45  ;;  %v2663_v21 = vsel %vm8137_vm7, %v2658_v61, %v2662_v5  ;;  %v6489_v11 = vld [vmem:[%s7814_s14 + $0x30] sm:$0xe] }
 0x104   : > { %7077 = vmatprep.mubr.msk.bf16.mxu0 %vm561_vm1, %v6467_v52  ;;  %v6470_v52 = vcombine.low %v2581_v25, %v2591_v3  ;;  %v6471_v35 = vcombine.low %v2605_v40, %v2615_v2  ;;  %v2691_v25 = vrot.slane %v2689_v14, 4  ;;  %v2694_v3 = vrot.slane %v2692_v24, 5  ;;  %v8758_v24 = vld [vmem:[%s7814_s14 + $0x8c] sm:$0x1] }
 0x105   : > { %v6473_v45 = vcombine.low %v2653_v29, %v2663_v21  ;;  %v2728_v2 = vrot.slane %v2726_v9, 4  ;;  %v2710_v14 = vrot.slane %v2708_v41, 5  ;;  %v2677_v20 = vsel %vm8137_vm7, %v2672_v53, %v2676_v62 }
 0x106   : > { %v2695_v7 = vor.u32 %v2694_v3, %v2691_v25  ;;  %v2732_v5 = vshll.u32 %v8758_v24, 16  ;;  %v2993_v41 = vrot.slane %v8631_v44, 5  ;;  %v3004_v44 = vrot.slane %v8640_v23, 5 }
 0x108   : > { %v2696_v1 = vrot.slane %v2695_v7, 4  ;;  %v2734_v3 = vrot.slane %v2732_v5, 5  ;;  %v2986_v7 = vrot.slane %v8609_v36, 5  ;;  %v6493_v5 = vld [vmem:[%s7814_s14 + $0x60] sm:$0xe] }
 0x10a   : > { %v2701_v39 = vsel %vm8137_vm7, %v2696_v1, %v2700_v22  ;;  %v3000_v1 = vrot.slane %v8645_v12, 5 }
 0x10b   : > { %7078 = vmatmul.mubr.msk.bf16.vlgmr.msra.gmra.mrb[0].mxu0 %vm561_vm1, %v6468_v57  ;;  %v2639_v57 = vsel %vm8137_vm7, %v2634_v38, %v2638_v15  ;;  %v2719_v38 = vor.u32 %v2718_v48, %v2715_v33 }
 0x10c   : > { %7098 = vmatpush3.bf16.msra.mxu0 %v3107_v55  ;;  %7081 = vmatprep.mubr.msk.bf16.mxu0 %vm561_vm1, %v6469_v27  ;;  %v2684_v27 = vshll.u32 %v8732_v54, 16  ;;  %v2722_v55 = vshll.u32 %v8736_v34, 16  ;;  %v6472_v46 = vcombine.low %v2629_v17, %v2639_v57  ;;  %v2978_v17 = vrot.slane %v2976_v47, 4 }
 0x10d   : > { %v2720_v4 = vrot.slane %v2719_v38, 4  ;;  %v2979_v57 = vrot.slane %v8606_v49, 5  ;;  %v2990_v49 = vrot.slane %v8602_v50, 5 }
 0x10e   : > { %v2686_v8 = vrot.slane %v2684_v27, 5  ;;  %v2724_v40 = vrot.slane %v2722_v55, 5  ;;  %v2983_v27 = vrot.slane %v8593_v26, 5  ;;  %v6498_v55 = vrot.slane %v6488_v32, 9 }
 0x10f   : > { %v2980_v21 = vsel %vm7914_vm4, %v2978_v17, %v2979_v57  ;;  %v2992_v26 = vrot.slane %v2990_v49, 4  ;;  %v6494_v17 = vld [vmem:[%s7814_s14 + $0x6c] sm:$0xe]  ;;  %v6495_v57 = vld [vmem:[%s7814_s14 + $0x78] sm:$0xe] }
 0x110   : > { %v2687_v59 = vsel %vm8137_vm7, %v2682_v43, %v2686_v8  ;;  %v2729_v42 = vor.u32 %v2728_v2, %v2724_v40  ;;  %v2985_v9 = vrot.slane %v2983_v27, 4  ;;  %v2984_v50 = vsel %vm7914_vm4, %v6498_v55, %v2983_v27  ;;  %v6490_v43 = vld [vmem:[%s7814_s14 + $0x3c] sm:$0xe]  ;;  %v6491_v8 = vld [vmem:[%s7814_s14 + $0x48] sm:$0xe] }
 0x111   : > { %v6474_v62 = vcombine.low %v2677_v20, %v2687_v59  ;;  %v2994_v36 = vsel %vm7914_vm4, %v2992_v26, %v2993_v41  ;;  %v3011_v59 = vrot.slane %v8670_v19, 5  ;;  %v6504_v27 = vrot.slane %v6494_v17, 9  ;;  %v6496_v55 = vld [vmem:[%s7814_s14 + $0x84] sm:$0xe] }
 0x112   : > { %v2730_v25 = vrot.slane %v2729_v42, 4  ;;  %v6492_v42 = vld [vmem:[%s7814_s14 + $0x54] sm:$0xe]  ;;  %v6505_v32 = vrot.slane %v6495_v57, 9  ;;  %v3042_v26 = vrot.slane %v8758_v24, 5 }
 0x113   : > { %7082 = vmatmul.mubr.msk.bf16.gmra.mrb[4].mxu0 %vm561_vm1, %v6470_v52  ;;  %v2705_v52 = vor.u32 %v2704_v31, %v2700_v22  ;;  %v6497_v31 = vrot.slane %v6487_v10, 9  ;;  %v2725_v22 = vsel %vm8137_vm7, %v2720_v4, %v2724_v40  ;;  %v6500_v40 = vrot.slane %v6490_v43, 9 }
 0x114   : > { %7085 = vmatprep.mubr.msk.bf16.mxu0 %vm561_vm1, %v6471_v35  ;;  %v2735_v58 = vsel %vm8137_vm7, %v2730_v25, %v2734_v3  ;;  %v3013_v10 = vrot.slane %v3011_v59, 4  ;;  %v3021_v4 = vrot.slane %v8702_v0, 5  ;;  %v3025_v3 = vrot.slane %v8709_v18, 5 }
 0x115   : > { %v2706_v15 = vrot.slane %v2705_v52, 4  ;;  %v2977_v29 = vsel %vm7914_vm4, %v6497_v31, %v2976_v47  ;;  %v6476_v60 = vcombine.low %v2725_v22, %v2735_v58  ;;  %v6499_v52 = vrot.slane %v6489_v11, 9 }
 0x116   : > { %v6508_v56 = vcombine.low %v2977_v29, %v2980_v21  ;;  %v6502_v47 = vrot.slane %v6492_v42, 9  ;;  %v3032_v0 = vrot.slane %v8717_v51, 5  ;;  %v3027_v29 = vrot.slane %v3025_v3, 4  ;;  %v8885_v42 = vld [vmem:[%s9671_s2] ss:$0 sm:$0xff] }
 0x117   : > { %v2711_v61 = vsel %vm8137_vm7, %v2706_v15, %v2710_v14  ;;  %v2991_v53 = vsel %vm7914_vm4, %v6499_v52, %v2990_v49  ;;  %v6501_v15 = vrot.slane %v6491_v8, 9  ;;  %v3007_v14 = vrot.slane %v8661_v13, 5 }
 0x118   : > { %v6475_v35 = vcombine.low %v2701_v39, %v2711_v61  ;;  %v6510_v48 = vcombine.low %v2991_v53, %v2994_v36  ;;  %v3018_v13 = vrot.slane %v8676_v30, 5  ;;  %v3012_v30 = vsel %vm7914_vm4, %v6502_v47, %v3011_v59 }
 0x119   : > { %v3005_v38 = vsel %vm7914_vm4, %v6501_v15, %v3004_v44  ;;  %v3028_v21 = vrot.slane %v8732_v54, 5  ;;  %v3034_v49 = vrot.slane %v3032_v0, 4  ;;  %v3035_v18 = vrot.slane %v8745_v6, 5 }
 0x11a   : > { %v3020_v19 = vrot.slane %v3018_v13, 4  ;;  %v3026_v11 = vsel %vm7914_vm4, %v6504_v27, %v3025_v3 }
 0x11b   : > { %7086 = vmatmul.mubr.msk.bf16.gmra.mrb[8].mxu0 %vm561_vm1, %v6472_v46  ;;  %v2987_v46 = vsel %vm7914_vm4, %v2985_v9, %v2986_v7  ;;  %v3029_v51 = vsel %vm7914_vm4, %v3027_v29, %v3028_v21  ;;  %v3036_v54 = vsel %vm7914_vm4, %v3034_v49, %v3035_v18  ;;  %v6506_v7 = vrot.slane %v6496_v55, 9 }
 0x11c   : > { %7089 = vmatprep.mubr.msk.bf16.mxu0 %vm561_vm1, %v6473_v45  ;;  %v2997_v45 = vrot.slane %v8615_v28, 5  ;;  %v6509_v33 = vcombine.low %v2984_v50, %v2987_v46  ;;  %v3006_v28 = vrot.slane %v3004_v44, 4  ;;  %v6515_v6 = vcombine.low %v3026_v11, %v3029_v51 }
 0x11d   : > { %v7736_v11 = vmov (!%p6559_p7), 0  }
 0x11e   : > { %v2999_v2 = vrot.slane %v2997_v45, 4  ;;  %v2998_v23 = vsel %vm7914_vm4, %v6500_v40, %v2997_v45  ;;  %v3008_v12 = vsel %vm7914_vm4, %v3006_v28, %v3007_v14 }
 0x11f   : > { %v6512_v61 = vcombine.low %v3005_v38, %v3008_v12 }
 0x120   : > { %v3001_v20 = vsel %vm7914_vm4, %v2999_v2, %v3000_v1 }
 0x121   : > { %v6511_v39 = vcombine.low %v2998_v23, %v3001_v20 }
 0x123   : > { %7090 = vmatmul.mubr.msk.bf16.gmra.mrb[12].mxu0 %vm561_vm1, %v6474_v62  ;;  %v3014_v62 = vrot.slane %v8697_v16, 5  ;;  %v3022_v16 = vsel %vm7914_vm4, %v3020_v19, %v3021_v4 }
 0x124   : > { %7093 = vmatprep.mubr.msk.bf16.mxu0 %vm561_vm1, %v6475_v35  ;;  %v6503_v35 = vrot.slane %v6493_v5, 9 }
 0x125   : > { %v3015_v25 = vsel %vm7914_vm4, %v3013_v10, %v3014_v62 }
 0x126   : > { %v3019_v31 = vsel %vm7914_vm4, %v6503_v35, %v3018_v13  ;;  %v6513_v22 = vcombine.low %v3012_v30, %v3015_v25 }
 0x127   : > { %v6514_v58 = vcombine.low %v3019_v31, %v3022_v16 }
 0x12b   : > { %7094 = vmatmul.mubr.msk.bf16.gmra.mrb[16].mxu0 %vm561_vm1, %v6476_v60  ;;  %v3039_v60 = vrot.slane %v8736_v34, 5 }
 0x12c   : > { %7099 = vmatprep.mubr.msk.bf16.mxu0 %vm561_vm1, %v6508_v56  ;;  %v3033_v56 = vsel %vm7914_vm4, %v6505_v32, %v3032_v0 }
 0x12d   : > { %v6516_v9 = vcombine.low %v3033_v56, %v3036_v54  ;;  %v3041_v52 = vrot.slane %v3039_v60, 4  ;;  %v3040_v34 = vsel %vm7914_vm4, %v6506_v7, %v3039_v60 }
 0x12f   : > { %v3043_v41 = vsel %vm7914_vm4, %v3041_v52, %v3042_v26 }
 0x130   : > { %v6517_v50 = vcombine.low %v3040_v34, %v3043_v41 }
 0x133   : > { %7100 = vmatmul.mubr.msk.bf16.vlgmr.msra.gmra.mrb[0].mxu0 %vm561_vm1, %v6509_v33 }
 0x134   : > { %7103 = vmatprep.mubr.msk.bf16.mxu0 %vm561_vm1, %v6510_v48 }
 0x13b   : > { %7104 = vmatmul.mubr.msk.bf16.gmra.mrb[4].mxu0 %vm561_vm1, %v6511_v39 }
 0x13c   : > { %7107 = vmatprep.mubr.msk.bf16.mxu0 %vm561_vm1, %v6512_v61 }
 0x143   : > { %7108 = vmatmul.mubr.msk.bf16.gmra.mrb[8].mxu0 %vm561_vm1, %v6513_v22 }
 0x144   : > { %7111 = vmatprep.mubr.msk.bf16.mxu0 %vm561_vm1, %v6514_v58 }
 0x14b   : > { %7112 = vmatmul.mubr.msk.bf16.gmra.mrb[12].mxu0 %vm561_vm1, %v6515_v6 }
 0x14c   : > { %7115 = vmatprep.mubr.msk.bf16.mxu0 %vm561_vm1, %v6516_v9 }
 0x153   : > { %7116 = vmatmul.mubr.msk.bf16.gmra.mrb[16].mxu0 %vm561_vm1, %v6517_v50 }
 0x183   : > { %v6925_v46 = vpop.f32.mrb[0].mxu1 }
 0x184   : > { %v630_v45 = vpop.f32.mrb[1].mxu1 }
 0x185   : > { %v6926_v53 = vpop.f32.mrb[2].mxu1 }
 0x186   : > { %v633_v36 = vpop.f32.mrb[3].mxu1 }
 0x191   : > { %v6929_v43 = vpop.f32.mrb[4].mxu1 }
 0x192   : > { %v646_v44 = vpop.f32.mrb[5].mxu1 }
 0x193   : > { %v6930_v24 = vpop.f32.mrb[6].mxu1 }
 0x194   : > { %v649_v8 = vpop.f32.mrb[7].mxu1 }
 0x19b   : > { %v8858_v33 = vpop.f32.mrb[8].mxu1 }
 0x19c   : > { %v8860_v48 = vpop.f32.mrb[9].mxu1 }
 0x19d   : > { %v8862_v40 = vpop.f32.mrb[10].mxu1 }
 0x19e   : > { %v8864_v2 = vpop.f32.mrb[11].mxu1 }
 0x1a3   : > { %v8866_v1 = vpop.f32.mrb[12].mxu1 }
 0x1a4   : > { %v8868_v15 = vpop.f32.mrb[13].mxu1 }
 0x1a5   : > { %v8870_v28 = vpop.f32.mrb[14].mxu1 }
 0x1a6   : > { %v8872_v14 = vpop.f32.mrb[15].mxu1 }
 0x1ac   : > { %v8874_v23 = vpop.f32.mrb[16].mxu1 }
 0x1ad   : > { %v8876_v20 = vpop.f32.mrb[17].mxu1 }
 0x1ae   : > { %v8878_v59 = vpop.f32.mrb[18].mxu1 }
 0x1af   : > { %v8880_v38 = vpop.f32.mrb[19].mxu1 }
 0x206   : > { %v7101_v12 = vpop.f32.mrb[0].mxu0 }
 0x207   : > { %v7281_v13 = vadd.f32 %v7101_v12, %v6925_v46  ;;  %v3143_v5 = vpop.f32.mrb[1].mxu0 }
 0x208   : > { %v7282_v39 = vadd.f32 %v3143_v5, %v630_v45  ;;  %v7102_v61 = vpop.f32.mrb[2].mxu0 }
 0x209   : > { %v3251_v47 = vadd.f32 %v7281_v13, %v8885_v42  ;;  %v7283_v10 = vadd.f32 %v7102_v61, %v6926_v53  ;;  %v3146_v62 = vpop.f32.mrb[3].mxu0 }
 0x20a   : > { %v3249_v35 = vadd.f32 %v7282_v39, %v8885_v42  ;;  %v7284_v19 = vadd.f32 %v3146_v62, %v633_v36 }
 0x20b   : > { %v3252_v4 = vadd.f32 %v7283_v10, %v8885_v42  ;;  %v3271_v25 = vmax.f32 %v3251_v47, 0.0 }
 0x20c   : > { %v3250_v30 = vadd.f32 %v7284_v19, %v8885_v42  ;;  %v3269_v31 = vmax.f32 %v3249_v35, 0.0 }
 0x20d   : > { %v3272_v3 = vmax.f32 %v3252_v4, 0.0 }
 0x20e   : > { %v3270_v16 = vmax.f32 %v3250_v30, 0.0  ;;  %v7105_v17 = vpop.f32.mrb[4].mxu0 }
 0x20f   : > { %v3290_v0 = vpack.c.bf16 %v3272_v3, %v3271_v25  ;;  %v7285_v57 = vadd.f32 %v7105_v17, %v6929_v43  ;;  %v3159_v22 = vpop.f32.mrb[5].mxu0 }
 0x210   : > { %v3289_v58 = vpack.c.bf16 %v3270_v16, %v3269_v31  ;;  %v7286_v27 = vadd.f32 %v3159_v22, %v646_v44  ;;  %v7106_v29 = vpop.f32.mrb[6].mxu0 }
 0x211   : > { %v3307_v21 = vshrl.u32 %v3290_v0, 16  ;;  %v3255_v32 = vadd.f32 %v7285_v57, %v8885_v42  ;;  %v7287_v49 = vadd.f32 %v7106_v29, %v6930_v24  ;;  %v3162_v18 = vpop.f32.mrb[7].mxu0  ;;  %v3310_v55 = vshll.u32 %v3290_v0, 16 }
 0x212   : > { %v3300_v51 = vshrl.u32 %v3289_v58, 16  ;;  %v3253_v60 = vadd.f32 %v7286_v27, %v8885_v42  ;;  %v7288_v56 = vadd.f32 %v3162_v18, %v649_v8  ;;  %v3303_v7 = vshll.u32 %v3289_v58, 16 }
 0x213   : > { %v3309_v54 = vrot.slane %v3307_v21, 7  ;;  %v3256_v6 = vadd.f32 %v7287_v49, %v8885_v42  ;;  %v3275_v52 = vmax.f32 %v3255_v32, 0.0 }
 0x214   : > { %v3302_v9 = vrot.slane %v3300_v51, 7  ;;  %v3254_v26 = vadd.f32 %v7288_v56, %v8885_v42  ;;  %v3273_v50 = vmax.f32 %v3253_v60, 0.0 }
 0x215   : > { %v3312_v34 = vor.u32 %v3310_v55, %v3309_v54  ;;  %v3403_v41 = vsel %vm8892_vm10, %v3309_v54, 0  ;;  %v3276_v46 = vmax.f32 %v3256_v6, 0.0 }
 0x216   : > { %v6534_v45 = vcombine.low %v3403_v41, %v3403_v41  ;;  %v3305_v53 = vor.u32 %v3303_v7, %v3302_v9  ;;  %v3402_v36 = vsel %vm8892_vm10, %v3302_v9, 0  ;;  %v3274_v43 = vmax.f32 %v3254_v26, 0.0  ;;  %v7109_v44 = vpop.f32.mrb[8].mxu0 }
 0x217   : > { %v3393_v24 = vsel %vm8892_vm10, 0, %v3312_v34  ;;  %v6531_v8 = vcombine.low %v3402_v36, %v3402_v36  ;;  %v3292_v12 = vpack.c.bf16 %v3276_v46, %v3275_v52  ;;  %v7289_v13 = vadd.f32 %v7109_v44, %v8858_v33  ;;  %v3175_v5 = vpop.f32.mrb[9].mxu0 }
 0x218   : > { %v6532_v39 = vcombine.low %v3393_v24, %v3393_v24  ;;  %v6533_v61 = vcombine.high %v3393_v24, %v3393_v24  ;;  %3529 = vst.msk [vmem:[#allocation2 + $0x14] sm:$0x1] %vm3525_vm11, %v6534_v45  ;;  %v3392_v47 = vsel %vm8892_vm10, 0, %v3305_v53  ;;  %v3291_v10 = vpack.c.bf16 %v3274_v43, %v3273_v50  ;;  %v7110_v62 = vpop.f32.mrb[10].mxu0 }
 0x219   : > { %v6529_v35 = vcombine.low %v3392_v47, %v3392_v47  ;;  %v6530_v19 = vcombine.high %v3392_v47, %v3392_v47  ;;  %3526 = vst.msk [vmem:[#allocation2 + $0x8] sm:$0x1] %vm3525_vm11, %v6531_v8  ;;  %v3321_v4 = vshrl.u32 %v3292_v12, 16  ;;  %v3178_v30 = vpop.f32.mrb[11].mxu0  ;;  %v3259_v25 = vadd.f32 %v7289_v13, %v8885_v42 }
 0x21a   : > { %3527 = vst.msk [vmem:[#allocation2 + $0xc] sm:$0xf] %vm3522_vm12, %v6532_v39  ;;  %3528 = vst.msk [vmem:[#allocation2 + $0x10] sm:$0xf] %vm3522_vm12, %v6533_v61  ;;  %v3314_v33 = vshrl.u32 %v3291_v10, 16  ;;  %v7290_v3 = vadd.f32 %v3175_v5, %v8860_v48  ;;  %v3324_v16 = vshll.u32 %v3292_v12, 16  ;;  %v7291_v17 = vadd.f32 %v7110_v62, %v8862_v40 }
 0x21b   : > { %3523 = vst.msk [vmem:[#allocation2] sm:$0xf] %vm3522_vm12, %v6529_v35  ;;  %3524 = vst.msk [vmem:[#allocation2 + $0x4] sm:$0xf] %vm3522_vm12, %v6530_v19  ;;  %v3323_v31 = vrot.slane %v3321_v4, 7  ;;  %v7292_v0 = vadd.f32 %v3178_v30, %v8864_v2  ;;  %v3317_v22 = vshll.u32 %v3291_v10, 16 }
 0x21c   : > { %v3316_v57 = vrot.slane %v3314_v33, 7  ;;  %v3279_v58 = vmax.f32 %v3259_v25, 0.0  ;;  %v3257_v27 = vadd.f32 %v7290_v3, %v8885_v42  ;;  %v3260_v48 = vadd.f32 %v7291_v17, %v8885_v42  ;;  %3558 = vst.msk [vmem:[#allocation2] sm:$0xf] (!%p6559_p7), %vm3522_vm12, %v7736_v11  ;;  %3559 = vst.msk [vmem:[#allocation2 + $0x4] sm:$0xf] (!%p6559_p7), %vm3522_vm12, %v7736_v11 }
 0x21d   : > { %v3326_v29 = vor.u32 %v3324_v16, %v3323_v31  ;;  %v3405_v21 = vsel %vm8892_vm10, %v3323_v31, 0  ;;  %v3258_v32 = vadd.f32 %v7292_v0, %v8885_v42  ;;  %3560 = vst.msk [vmem:[#allocation2 + $0x8] sm:$0x1] (!%p6559_p7), %vm3525_vm11, %v7736_v11 }
 0x21e   : > { %v6540_v49 = vcombine.low %v3405_v21, %v3405_v21  ;;  %v3319_v18 = vor.u32 %v3317_v22, %v3316_v57  ;;  %v3404_v40 = vsel %vm8892_vm10, %v3316_v57, 0  ;;  %v3277_v51 = vmax.f32 %v3257_v27, 0.0  ;;  %v7113_v2 = vpop.f32.mrb[12].mxu0 }
 0x21f   : > { %v3395_v60 = vsel %vm8892_vm10, 0, %v3326_v29  ;;  %v6537_v56 = vcombine.low %v3404_v40, %v3404_v40  ;;  %v3280_v54 = vmax.f32 %v3260_v48, 0.0  ;;  %v3278_v55 = vmax.f32 %v3258_v32, 0.0  ;;  %v3191_v6 = vpop.f32.mrb[13].mxu0 }
 0x220   : > { %v6538_v9 = vcombine.low %v3395_v60, %v3395_v60  ;;  %v6539_v7 = vcombine.high %v3395_v60, %v3395_v60  ;;  %3535 = vst.msk [vmem:[#allocation2 + $0x2c] sm:$0x1] %vm3525_vm11, %v6540_v49  ;;  %v3394_v52 = vsel %vm8892_vm10, 0, %v3319_v18  ;;  %v7293_v26 = vadd.f32 %v7113_v2, %v8866_v1  ;;  %v7114_v34 = vpop.f32.mrb[14].mxu0 }
 0x221   : > { %v6535_v41 = vcombine.low %v3394_v52, %v3394_v52  ;;  %v6536_v50 = vcombine.high %v3394_v52, %v3394_v52  ;;  %3532 = vst.msk [vmem:[#allocation2 + $0x20] sm:$0x1] %vm3525_vm11, %v6537_v56  ;;  %v3294_v46 = vpack.c.bf16 %v3280_v54, %v3279_v58  ;;  %v3293_v45 = vpack.c.bf16 %v3278_v55, %v3277_v51  ;;  %v3194_v53 = vpop.f32.mrb[15].mxu0 }
 0x222   : > { %3533 = vst.msk [vmem:[#allocation2 + $0x24] sm:$0xf] %vm3522_vm12, %v6538_v9  ;;  %3534 = vst.msk [vmem:[#allocation2 + $0x28] sm:$0xf] %vm3522_vm12, %v6539_v7  ;;  %v3263_v36 = vadd.f32 %v7293_v26, %v8885_v42  ;;  %v7294_v43 = vadd.f32 %v3191_v6, %v8868_v15  ;;  %v7295_v44 = vadd.f32 %v7114_v34, %v8870_v28 }
 0x223   : > { %v7296_v1 = vadd.f32 %v3194_v53, %v8872_v14  ;;  %3530 = vst.msk [vmem:[#allocation2 + $0x18] sm:$0xf] %vm3522_vm12, %v6535_v41  ;;  %3531 = vst.msk [vmem:[#allocation2 + $0x1c] sm:$0xf] %vm3522_vm12, %v6536_v50  ;;  %v3335_v24 = vshrl.u32 %v3294_v46, 16  ;;  %v3328_v8 = vshrl.u32 %v3293_v45, 16 }
 0x224   : > { %v3261_v12 = vadd.f32 %v7294_v43, %v8885_v42  ;;  %v3264_v13 = vadd.f32 %v7295_v44, %v8885_v42  ;;  %v3338_v61 = vshll.u32 %v3294_v46, 16  ;;  %v3331_v15 = vshll.u32 %v3293_v45, 16 }
 0x225   : > { %v3262_v5 = vadd.f32 %v7296_v1, %v8885_v42  ;;  %v3337_v39 = vrot.slane %v3335_v24, 7  ;;  %v3330_v47 = vrot.slane %v3328_v8, 7  ;;  %v3283_v10 = vmax.f32 %v3263_v36, 0.0 }
 0x226   : > { %v3281_v28 = vmax.f32 %v3261_v12, 0.0  ;;  %v3284_v62 = vmax.f32 %v3264_v13, 0.0  ;;  %v7117_v35 = vpop.f32.mrb[16].mxu0 }
 0x227   : > { %v3282_v14 = vmax.f32 %v3262_v5, 0.0  ;;  %v3340_v19 = vor.u32 %v3338_v61, %v3337_v39  ;;  %v3407_v4 = vsel %vm8892_vm10, %v3337_v39, 0  ;;  %v3333_v30 = vor.u32 %v3331_v15, %v3330_v47  ;;  %v3207_v25 = vpop.f32.mrb[17].mxu0 }
 0x228   : > { %v3406_v33 = vsel %vm8892_vm10, %v3330_v47, 0  ;;  %v6546_v3 = vcombine.low %v3407_v4, %v3407_v4  ;;  %v3296_v16 = vpack.c.bf16 %v3284_v62, %v3283_v10  ;;  %v7118_v0 = vpop.f32.mrb[18].mxu0  ;;  %v7297_v58 = vadd.f32 %v7117_v35, %v8874_v23 }
 0x229   : > { %v6543_v31 = vcombine.low %v3406_v33, %v3406_v33  ;;  %v3295_v17 = vpack.c.bf16 %v3282_v14, %v3281_v28  ;;  %v3397_v57 = vsel %vm8892_vm10, 0, %v3340_v19  ;;  %v3396_v22 = vsel %vm8892_vm10, 0, %v3333_v30  ;;  %v3210_v29 = vpop.f32.mrb[19].mxu0 }
 0x22a   : > { %v7298_v27 = vadd.f32 %v3207_v25, %v8876_v20  ;;  %v6544_v21 = vcombine.low %v3397_v57, %v3397_v57  ;;  %v6545_v48 = vcombine.high %v3397_v57, %v3397_v57  ;;  %3541 = vst.msk [vmem:[#allocation2 + $0x44] sm:$0x1] %vm3525_vm11, %v6546_v3  ;;  %v6541_v32 = vcombine.low %v3396_v22, %v3396_v22 }
 0x22b   : > { %v6542_v49 = vcombine.high %v3396_v22, %v3396_v22  ;;  %3538 = vst.msk [vmem:[#allocation2 + $0x38] sm:$0x1] %vm3525_vm11, %v6543_v31  ;;  %v3349_v18 = vshrl.u32 %v3296_v16, 16  ;;  %v3342_v40 = vshrl.u32 %v3295_v17, 16  ;;  %v3352_v23 = vshll.u32 %v3296_v16, 16 }
 0x22c   : > { %3539 = vst.msk [vmem:[#allocation2 + $0x3c] sm:$0xf] %vm3522_vm12, %v6544_v21  ;;  %3540 = vst.msk [vmem:[#allocation2 + $0x40] sm:$0xf] %vm3522_vm12, %v6545_v48  ;;  %v3345_v20 = vshll.u32 %v3295_v17, 16  ;;  %v7299_v51 = vadd.f32 %v7118_v0, %v8878_v59  ;;  %v7300_v2 = vadd.f32 %v3210_v29, %v8880_v38  ;;  %v3267_v54 = vadd.f32 %v7297_v58, %v8885_v42 }
 0x22d   : > { %3536 = vst.msk [vmem:[#allocation2 + $0x30] sm:$0xf] %vm3522_vm12, %v6541_v32  ;;  %3537 = vst.msk [vmem:[#allocation2 + $0x34] sm:$0xf] %vm3522_vm12, %v6542_v49  ;;  %v3351_v60 = vrot.slane %v3349_v18, 7  ;;  %v3344_v56 = vrot.slane %v3342_v40, 7  ;;  %v3265_v55 = vadd.f32 %v7298_v27, %v8885_v42 }
 0x22e   : > { %v3268_v6 = vadd.f32 %v7299_v51, %v8885_v42  ;;  %v3266_v9 = vadd.f32 %v7300_v2, %v8885_v42  ;;  %v3287_v53 = vmax.f32 %v3267_v54, 0.0 }
 0x22f   : > { %v3354_v7 = vor.u32 %v3352_v23, %v3351_v60  ;;  %v3409_v52 = vsel %vm8892_vm10, %v3351_v60, 0  ;;  %v3347_v26 = vor.u32 %v3345_v20, %v3344_v56  ;;  %v3408_v59 = vsel %vm8892_vm10, %v3344_v56, 0 }
 0x230   : > { %v6552_v34 = vcombine.low %v3409_v52, %v3409_v52  ;;  %v6549_v38 = vcombine.low %v3408_v59, %v3408_v59  ;;  %v3288_v41 = vmax.f32 %v3268_v6, 0.0  ;;  %v3286_v50 = vmax.f32 %v3266_v9, 0.0 }
 0x231   : > { %v3399_v46 = vsel %vm8892_vm10, 0, %v3354_v7  ;;  %v3398_v45 = vsel %vm8892_vm10, 0, %v3347_v26  ;;  %v3285_v42 = vmax.f32 %v3265_v55, 0.0 }
 0x232   : > { %v6550_v36 = vcombine.low %v3399_v46, %v3399_v46  ;;  %v6551_v43 = vcombine.high %v3399_v46, %v3399_v46  ;;  %3547 = vst.msk [vmem:[#allocation2 + $0x5c] sm:$0x1] %vm3525_vm11, %v6552_v34  ;;  %v6547_v44 = vcombine.low %v3398_v45, %v3398_v45  ;;  %v6548_v1 = vcombine.high %v3398_v45, %v3398_v45 }
 0x233   : > { %3544 = vst.msk [vmem:[#allocation2 + $0x50] sm:$0x1] %vm3525_vm11, %v6549_v38  ;;  %v3298_v24 = vpack.c.bf16 %v3288_v41, %v3287_v53  ;;  %v3297_v8 = vpack.c.bf16 %v3286_v50, %v3285_v42 }
 0x234   : > { %3545 = vst.msk [vmem:[#allocation2 + $0x54] sm:$0xf] %vm3522_vm12, %v6550_v36  ;;  %3546 = vst.msk [vmem:[#allocation2 + $0x58] sm:$0xf] %vm3522_vm12, %v6551_v43 }
 0x235   : > { %3542 = vst.msk [vmem:[#allocation2 + $0x48] sm:$0xf] %vm3522_vm12, %v6547_v44  ;;  %3543 = vst.msk [vmem:[#allocation2 + $0x4c] sm:$0xf] %vm3522_vm12, %v6548_v1  ;;  %v3363_v12 = vshrl.u32 %v3298_v24, 16  ;;  %v3356_v13 = vshrl.u32 %v3297_v8, 16 }
 0x236   : > { %v3366_v39 = vshll.u32 %v3298_v24, 16  ;;  %v3359_v47 = vshll.u32 %v3297_v8, 16 }
 0x237   : > { %v3365_v5 = vrot.slane %v3363_v12, 7  ;;  %v3358_v61 = vrot.slane %v3356_v13, 7 }
 0x239   : > { %v3368_v15 = vor.u32 %v3366_v39, %v3365_v5  ;;  %v3411_v10 = vsel %vm8892_vm10, %v3365_v5, 0  ;;  %v3361_v28 = vor.u32 %v3359_v47, %v3358_v61  ;;  %v3410_v62 = vsel %vm8892_vm10, %v3358_v61, 0  ;;  %3557 = sbr.rel (%p6559_p7) target bundleno = 576 (0x240), region = 44 }
 0x23a   : > { %v6558_v14 = vcombine.low %v3411_v10, %v3411_v10  ;;  %v6555_v35 = vcombine.low %v3410_v62, %v3410_v62 }
 0x23b   : > { %v3401_v19 = vsel %vm8892_vm10, 0, %v3368_v15  ;;  %v3400_v4 = vsel %vm8892_vm10, 0, %v3361_v28 }
 0x23c   : > { %v6556_v30 = vcombine.low %v3401_v19, %v3401_v19  ;;  %v6557_v33 = vcombine.high %v3401_v19, %v3401_v19  ;;  %3553 = vst.msk [vmem:[#allocation2 + $0x74] sm:$0x1] %vm3525_vm11, %v6558_v14  ;;  %v6553_v25 = vcombine.low %v3400_v4, %v3400_v4  ;;  %v6554_v3 = vcombine.high %v3400_v4, %v3400_v4 }
 0x23d   : > { %3550 = vst.msk [vmem:[#allocation2 + $0x68] sm:$0x1] %vm3525_vm11, %v6555_v35 }
 0x23e   : > { %3551 = vst.msk [vmem:[#allocation2 + $0x6c] sm:$0xf] %vm3522_vm12, %v6556_v30  ;;  %3552 = vst.msk [vmem:[#allocation2 + $0x70] sm:$0xf] %vm3522_vm12, %v6557_v33 }
 0x23f   : > { %3548 = vst.msk [vmem:[#allocation2 + $0x60] sm:$0xf] %vm3522_vm12, %v6553_v25  ;;  %3549 = vst.msk [vmem:[#allocation2 + $0x64] sm:$0xf] %vm3522_vm12, %v6554_v3 }
 0x240 PF: > { %p6560_p8 = scmp.ne.s32.totalorder %s7718_s18, 1 }
 0x241   : > { %v7737_v31 = vmov (!%p6560_p8), 0  }
 0x242   : > { %3564 = sbr.rel (%p6560_p8) target bundleno = 585 (0x249), region = 48  ;;  %3566 = vst.msk [vmem:[#allocation2 + $0x6c] sm:$0xf] (!%p6560_p8), %vm3522_vm12, %v7737_v31  ;;  %3567 = vst.msk [vmem:[#allocation2 + $0x70] sm:$0xf] (!%p6560_p8), %vm3522_vm12, %v7737_v31 }
 0x243   : > { %3568 = vst.msk [vmem:[#allocation2 + $0x74] sm:$0x1] (!%p6560_p8), %vm3525_vm11, %v7737_v31 }
 0x249 PF: > { %v6561_v16 = vld [vmem:[%s9672_s3 + $0x4] sm:$0xf]  ;;  %vm3837_vm13 = vcmask 1043456   ;;  %v9004_v17 = vld [vmem:[#allocation2] sm:$0xf]  ;;  %vm3812_vm14 = vcmask 64512  }
 0x24a   : > { %7578 = vmatprep.subr.msk.bf16.mxu1 %vm3837_vm13, %v6561_v16  ;;  %v3839_v0 = vsel %vm3837_vm13, %v6561_v16, 0  ;;  %v9008_v57 = vld [vmem:[#allocation2 + $0x4] sm:$0xf]  ;;  %v9010_v22 = vld [vmem:[#allocation2 + $0x8] sm:$0x1]  ;;  %v3595_v58 = vshrl.u32 %v9004_v17, 16 }
 0x24b   : > { %7120 = vmatpush3.bf16.msra.mxu1 %v3839_v0  ;;  %v3598_v27 = vshll.u32 %v9004_v17, 16  ;;  %v3604_v29 = vshll.u32 %v9008_v57, 16  ;;  %v3608_v21 = vshrl.u32 %v9008_v57, 16  ;;  %v3614_v48 = vshll.u32 %v9010_v22, 16  ;;  %v3585_v32 = vld [vmem:[%s9672_s3] sm:$0xf] }
 0x24c   : > { %v3597_v49 = vrot.slane %v3595_v58, 4  ;;  %7579 = vmatprep.subr.msk.bf16.mxu1 %vm3837_vm13, %v3585_v32  ;;  %v9021_v18 = vld [vmem:[#allocation2 + $0xc] sm:$0xf]  ;;  %v9023_v40 = vld [vmem:[#allocation2 + $0x10] sm:$0xf]  ;;  %v4003_v24 = vsel %vm3837_vm13, %v3585_v32, 0 }
 0x24d   : > { %v3600_v23 = vrot.slane %v3598_v27, 5  ;;  %v3606_v20 = vrot.slane %v3604_v29, 5  ;;  %v3610_v51 = vrot.slane %v3608_v21, 4  ;;  %v3616_v2 = vrot.slane %v3614_v48, 5  ;;  %v3587_v60 = vld [vmem:[#allocation2 + $0x14] sm:$0x1] }
 0x24e   : > { %v3619_v56 = vshrl.u32 %v9021_v18, 16  ;;  %v3622_v54 = vshll.u32 %v9021_v18, 16  ;;  %v3628_v55 = vshll.u32 %v9023_v40, 16  ;;  %v3632_v6 = vshrl.u32 %v9023_v40, 16  ;;  %v4103_v9 = vld [vmem:[#allocation2 + $0xc] sm:$0xe] }
 0x24f   : > { %v3601_v7 = vor.u32 %v3600_v23, %v3597_v49  ;;  %v3611_v52 = vor.u32 %v3610_v51, %v3606_v20  ;;  %v3638_v26 = vshll.u32 %v3587_v60, 16  ;;  %v6595_v59 = vrot.slane %v4103_v9, 9  ;;  %v9030_v36 = vld [vmem:[#allocation2 + $0x18] sm:$0xf]  ;;  %v9033_v8 = vld [vmem:[#allocation2 + $0x1c] sm:$0xf] }
 0x250   : > { %v3621_v34 = vrot.slane %v3619_v56, 4  ;;  %v3624_v38 = vrot.slane %v3622_v54, 5  ;;  %v3630_v41 = vrot.slane %v3628_v55, 5  ;;  %v3634_v50 = vrot.slane %v3632_v6, 4  ;;  %v9043_v61 = vld [vmem:[#allocation2 + $0x20] sm:$0x1] }
 0x251   : > { %v3602_v46 = vrot.slane %v3601_v7, 4  ;;  %v3612_v45 = vrot.slane %v3611_v52, 4  ;;  %v3640_v53 = vrot.slane %v3638_v26, 5  ;;  %v4135_v42 = vrot.slane %v9023_v40, 5  ;;  %v9046_v62 = vld [vmem:[#allocation2 + $0x24] sm:$0xf] }
 0x252   : > { %v3625_v43 = vor.u32 %v3624_v38, %v3621_v34  ;;  %v3635_v44 = vor.u32 %v3634_v50, %v3630_v41  ;;  %v4138_v1 = vrot.slane %v3587_v60, 5  ;;  %v3643_v28 = vshrl.u32 %v9030_v36, 16  ;;  %v9055_v30 = vld [vmem:[#allocation2 + $0x28] sm:$0xf]  ;;  %v9064_v31 = vld [vmem:[#allocation2 + $0x2c] sm:$0x1] }
 0x253   : > { %v3607_v12 = vsel %vm8137_vm7, %v3602_v46, %v3606_v20  ;;  %v3617_v13 = vsel %vm8137_vm7, %v3612_v45, %v3616_v2  ;;  %v9041_v5 = vsel %vm7914_vm4, %v6595_v59, %v4135_v42  ;;  %v4137_v39 = vrot.slane %v4135_v42, 4  ;;  %v9073_v2 = vld [vmem:[#allocation2 + $0x30] sm:$0xf]  ;;  %v9075_v60 = vld [vmem:[#allocation2 + $0x34] sm:$0xf] }
 0x254   : > { %v6562_v47 = vcombine.low %v3607_v12, %v3617_v13  ;;  %v3626_v15 = vrot.slane %v3625_v43, 4  ;;  %v3636_v10 = vrot.slane %v3635_v44, 4  ;;  %v3646_v35 = vshll.u32 %v9030_v36, 16  ;;  %v9077_v59 = vld [vmem:[#allocation2 + $0x38] sm:$0x1] }
 0x255   : > { %v9050_v14 = vsel %vm7914_vm4, %v4137_v39, %v4138_v1  ;;  %v3652_v19 = vshll.u32 %v9033_v8, 16  ;;  %v3656_v4 = vshrl.u32 %v9033_v8, 16  ;;  %v3645_v11 = vrot.slane %v3643_v28, 4  ;;  %v9085_v46 = vld [vmem:[%s9672_s3 + $0x8] sm:$0xf] }
 0x256   : > { %7121 = vmatprep.mubr.msk.bf16.mxu1 %vm3812_vm14, %v6562_v47  ;;  %v3631_v33 = vsel %vm8137_vm7, %v3626_v15, %v3630_v41  ;;  %v3641_v25 = vsel %vm8137_vm7, %v3636_v10, %v3640_v53  ;;  %v6604_v3 = vcombine.low %v9041_v5, %v9050_v14  ;;  %v3648_v0 = vrot.slane %v3646_v35, 5  ;;  %v9092_v44 = vld [vmem:[#allocation2 + $0x3c] sm:$0xf]  ;;  %v9096_v39 = vld [vmem:[#allocation2 + $0x40] sm:$0xf] }
 0x257   : > { %v6563_v16 = vcombine.low %v3631_v33, %v3641_v25  ;;  %v3654_v58 = vrot.slane %v3652_v19, 5  ;;  %v3658_v27 = vrot.slane %v3656_v4, 4  ;;  %v3662_v29 = vshll.u32 %v9043_v61, 16  ;;  %v9102_v4 = vld [vmem:[#allocation2 + $0x44] sm:$0x1] }
 0x258   : > { %v3667_v21 = vshrl.u32 %v9046_v62, 16  ;;  %v3670_v48 = vshll.u32 %v9046_v62, 16  ;;  %v3676_v32 = vshll.u32 %v9055_v30, 16  ;;  %v3649_v49 = vor.u32 %v3648_v0, %v3645_v11 }
 0x259   : > { %7122 = vmatmul.mubr.msk.bf16.vlgmr.msra.gmra.mrb[20].mxu1 %vm3812_vm14, %v6563_v16  ;;  %v3659_v23 = vor.u32 %v3658_v27, %v3654_v58  ;;  %v3680_v20 = vshrl.u32 %v9055_v30, 16  ;;  %v3686_v51 = vshll.u32 %v9064_v31, 16  ;;  %v3664_v56 = vrot.slane %v3662_v29, 5  ;;  %v9109_v27 = vld [vmem:[#allocation2 + $0x48] sm:$0xf] }
 0x25a   : > { %7138 = vmatpush3.bf16.msra.mxu1 %v4003_v24  ;;  %v3669_v54 = vrot.slane %v3667_v21, 4  ;;  %v3672_v55 = vrot.slane %v3670_v48, 5  ;;  %v3678_v6 = vrot.slane %v3676_v32, 5  ;;  %v3650_v9 = vrot.slane %v3649_v49, 4  ;;  %v9111_v29 = vld [vmem:[#allocation2 + $0x4c] sm:$0xf] }
 0x25b   : > { %v3660_v7 = vrot.slane %v3659_v23, 4  ;;  %v3682_v52 = vrot.slane %v3680_v20, 4  ;;  %v3688_v26 = vrot.slane %v3686_v51, 5  ;;  %v3691_v38 = vshrl.u32 %v9073_v2, 16  ;;  %7580 = vmatprep.subr.msk.bf16.mxu1 %vm3837_vm13, %v9085_v46  ;;  %v9113_v23 = vld [vmem:[#allocation2 + $0x50] sm:$0x1] }
 0x25c   : > { %v3673_v34 = vor.u32 %v3672_v55, %v3669_v54  ;;  %v3694_v41 = vshll.u32 %v9073_v2, 16  ;;  %v3700_v50 = vshll.u32 %v9075_v60, 16  ;;  %v3655_v45 = vsel %vm8137_vm7, %v3650_v9, %v3654_v58  ;;  %v9117_v55 = vld [vmem:[#allocation2 + $0x54] sm:$0xf] }
 0x25d   : > { %v3665_v53 = vsel %vm8137_vm7, %v3660_v7, %v3664_v56  ;;  %v3683_v42 = vor.u32 %v3682_v52, %v3678_v6  ;;  %v3704_v43 = vshrl.u32 %v9075_v60, 16  ;;  %v3693_v12 = vrot.slane %v3691_v38, 4 }
 0x25e   : > { %v6564_v1 = vcombine.low %v3655_v45, %v3665_v53  ;;  %v3674_v24 = vrot.slane %v3673_v34, 4  ;;  %v3696_v13 = vrot.slane %v3694_v41, 5  ;;  %v3702_v15 = vrot.slane %v3700_v50, 5 }
 0x25f   : > { %v3684_v47 = vrot.slane %v3683_v42, 4  ;;  %v3706_v10 = vrot.slane %v3704_v43, 4  ;;  %v3710_v28 = vshll.u32 %v9077_v59, 16  ;;  %v3715_v33 = vshrl.u32 %v9092_v44, 16 }
 0x260   : > { %7125 = vmatprep.mubr.msk.bf16.mxu1 %vm3812_vm14, %v6564_v1  ;;  %v3679_v35 = vsel %vm8137_vm7, %v3674_v24, %v3678_v6  ;;  %v3697_v19 = vor.u32 %v3696_v13, %v3693_v12  ;;  %v3718_v25 = vshll.u32 %v9092_v44, 16  ;;  %v3724_v58 = vshll.u32 %v9096_v39, 16  ;;  %v9129_v1 = vld [vmem:[#allocation2 + $0x5c] sm:$0x1] }
 0x261   : > { %v3689_v11 = vsel %vm8137_vm7, %v3684_v47, %v3688_v26  ;;  %v3707_v16 = vor.u32 %v3706_v10, %v3702_v15  ;;  %v3712_v0 = vrot.slane %v3710_v28, 5  ;;  %v3717_v32 = vrot.slane %v3715_v33, 4  ;;  %v9124_v26 = vld [vmem:[#allocation2 + $0x58] sm:$0xf] }
 0x262   : > { %v6565_v21 = vcombine.low %v3679_v35, %v3689_v11  ;;  %v3698_v48 = vrot.slane %v3697_v19, 4  ;;  %v3720_v49 = vrot.slane %v3718_v25, 5  ;;  %v3726_v51 = vrot.slane %v3724_v58, 5 }
 0x263   : > { %v3708_v20 = vrot.slane %v3707_v16, 4  ;;  %v3728_v56 = vshrl.u32 %v9096_v39, 16  ;;  %v3734_v54 = vshll.u32 %v9102_v4, 16  ;;  %v3739_v7 = vshrl.u32 %v9109_v27, 16 }
 0x264   : > { %7126 = vmatmul.mubr.msk.bf16.gmra.mrb[24].mxu1 %vm3812_vm14, %v6565_v21  ;;  %v3703_v6 = vsel %vm8137_vm7, %v3698_v48, %v3702_v15  ;;  %v3721_v9 = vor.u32 %v3720_v49, %v3717_v32  ;;  %v3742_v52 = vshll.u32 %v9109_v27, 16  ;;  %v3748_v50 = vshll.u32 %v9111_v29, 16 }
 0x265   : > { %v3713_v34 = vsel %vm8137_vm7, %v3708_v20, %v3712_v0  ;;  %v3730_v38 = vrot.slane %v3728_v56, 4  ;;  %v3736_v41 = vrot.slane %v3734_v54, 5  ;;  %v3741_v42 = vrot.slane %v3739_v7, 4  ;;  %v4102_v7 = vld [vmem:[#allocation2] sm:$0xe] }
 0x266   : > { %v6566_v45 = vcombine.low %v3703_v6, %v3713_v34  ;;  %v3722_v53 = vrot.slane %v3721_v9, 4  ;;  %v3744_v43 = vrot.slane %v3742_v52, 5  ;;  %v3750_v12 = vrot.slane %v3748_v50, 5  ;;  %v4104_v50 = vld [vmem:[#allocation2 + $0x18] sm:$0xe] }
 0x267   : > { %v3731_v24 = vor.u32 %v3730_v38, %v3726_v51  ;;  %v3752_v13 = vshrl.u32 %v9111_v29, 16  ;;  %v3758_v47 = vshll.u32 %v9113_v23, 16  ;;  %v3763_v28 = vshrl.u32 %v9117_v55, 16 }
 0x268   : > { %7129 = vmatprep.mubr.msk.bf16.mxu1 %vm3812_vm14, %v6566_v45  ;;  %v3727_v15 = vsel %vm8137_vm7, %v3722_v53, %v3726_v51  ;;  %v3745_v10 = vor.u32 %v3744_v43, %v3741_v42  ;;  %v3766_v35 = vshll.u32 %v9117_v55, 16  ;;  %v3772_v11 = vshll.u32 %v9124_v26, 16  ;;  %v4105_v45 = vld [vmem:[#allocation2 + $0x24] sm:$0xe] }
 0x269   : > { %v3732_v19 = vrot.slane %v3731_v24, 4  ;;  %v3754_v33 = vrot.slane %v3752_v13, 4  ;;  %v3760_v25 = vrot.slane %v3758_v47, 5  ;;  %v3765_v0 = vrot.slane %v3763_v28, 4 }
 0x26a   : > { %v3746_v16 = vrot.slane %v3745_v10, 4  ;;  %v3768_v58 = vrot.slane %v3766_v35, 5  ;;  %v3776_v21 = vshrl.u32 %v9124_v26, 16  ;;  %v3774_v49 = vrot.slane %v3772_v11, 5  ;;  %v4106_v10 = vld [vmem:[#allocation2 + $0x30] sm:$0xe] }
 0x26b   : > { %v3737_v48 = vsel %vm8137_vm7, %v3732_v19, %v3736_v41  ;;  %v3755_v32 = vor.u32 %v3754_v33, %v3750_v12  ;;  %v3782_v20 = vshll.u32 %v9129_v1, 16  ;;  %v4131_v53 = vrot.slane %v9010_v22, 5 }
 0x26c   : > { %v6567_v51 = vcombine.low %v3727_v15, %v3737_v48  ;;  %v3769_v56 = vor.u32 %v3768_v58, %v3765_v0  ;;  %v3778_v54 = vrot.slane %v3776_v21, 4  ;;  %v3751_v6 = vsel %vm8137_vm7, %v3746_v16, %v3750_v12 }
 0x26d   : > { %v3756_v9 = vrot.slane %v3755_v32, 4  ;;  %v3784_v38 = vrot.slane %v3782_v20, 5  ;;  %v6578_v12 = vcombine.low %v9004_v17, %v9008_v57  ;;  %v6594_v13 = vrot.slane %v4102_v7, 9 }
 0x26e   : > { %7130 = vmatmul.mubr.msk.bf16.gmra.mrb[28].mxu1 %vm3812_vm14, %v6567_v51  ;;  %v3770_v52 = vrot.slane %v3769_v56, 4  ;;  %v3779_v34 = vor.u32 %v3778_v54, %v3774_v49  ;;  %v4128_v47 = vrot.slane %v9008_v57, 5  ;;  %v6596_v15 = vrot.slane %v4104_v50, 9  ;;  %v4107_v57 = vld [vmem:[#allocation2 + $0x3c] sm:$0xe] }
 0x26f   : > { %v3761_v41 = vsel %vm8137_vm7, %v3756_v9, %v3760_v25  ;;  %v4142_v22 = vrot.slane %v9033_v8, 5  ;;  %v4145_v35 = vrot.slane %v9043_v61, 5  ;;  %v6597_v19 = vrot.slane %v4105_v45, 9 }
 0x270   : > { %v6568_v42 = vcombine.low %v3751_v6, %v3761_v41  ;;  %v3775_v43 = vsel %vm8137_vm7, %v3770_v52, %v3774_v49  ;;  %v3780_v24 = vrot.slane %v3779_v34, 4  ;;  %v4129_v25 = vsel %vm7914_vm4, %v6594_v13, %v4128_v47 }
 0x271   : > { %v4130_v17 = vrot.slane %v4128_v47, 4  ;;  %v4149_v11 = vrot.slane %v9055_v30, 5  ;;  %v4143_v16 = vsel %vm7914_vm4, %v6596_v15, %v4142_v22  ;;  %v4144_v0 = vrot.slane %v4142_v22, 4  ;;  %v6619_v15 = vld [vmem:[%s9672_s3 + $0xc] sm:$0xf] }
 0x272   : > { %7133 = vmatprep.mubr.msk.bf16.mxu1 %vm3812_vm14, %v6568_v42  ;;  %v3785_v28 = vsel %vm8137_vm7, %v3780_v24, %v3784_v38  ;;  %v4152_v58 = vrot.slane %v9064_v31, 5  ;;  %v6598_v21 = vrot.slane %v4106_v10, 9  ;;  %v4156_v49 = vrot.slane %v9075_v60, 5  ;;  %v4109_v31 = vld [vmem:[#allocation2 + $0x54] sm:$0xe] }
 0x273   : > { %v6569_v33 = vcombine.low %v3775_v43, %v3785_v28  ;;  %v4132_v48 = vsel %vm7914_vm4, %v4130_v17, %v4131_v53  ;;  %v4150_v61 = vsel %vm7914_vm4, %v6597_v19, %v4149_v11  ;;  %v4151_v32 = vrot.slane %v4149_v11, 4  ;;  %v9243_v19 = vld [vmem:[#allocation2 + $0x10] sm:$0xf]  ;;  %v9249_v11 = vld [vmem:[%s9672_s3 + $0x14] sm:$0xf] }
 0x274   : > { %v6603_v20 = vcombine.low %v4129_v25, %v4132_v48  ;;  %v4146_v51 = vsel %vm7914_vm4, %v4144_v0, %v4145_v35  ;;  %v4159_v56 = vrot.slane %v9077_v59, 5  ;;  %v6599_v54 = vrot.slane %v4107_v57, 9  ;;  %v7682_v35 = vld [vmem:[#allocation2 + $0x24] sm:$0xff]   ;;  %v4550_v57 = vld [vmem:[#allocation2 + $0x18] sm:$0xf] }
 0x275   : > { %v6605_v6 = vcombine.low %v4143_v16, %v4146_v51  ;;  %v4153_v9 = vsel %vm7914_vm4, %v4151_v32, %v4152_v58  ;;  %v4157_v7 = vsel %vm7914_vm4, %v6598_v21, %v4156_v49  ;;  %v4158_v52 = vrot.slane %v4156_v49, 4  ;;  %v9251_v16 = vld [vmem:[#allocation2 + $0x1c] sm:$0xf]  ;;  %v7683_v51 = vld [vmem:[#allocation2 + $0x30] sm:$0xff]  }
 0x276   : > { %7134 = vmatmul.mubr.msk.bf16.gmra.mrb[32].mxu1 %vm3812_vm14, %v6569_v33  ;;  %v6606_v34 = vcombine.low %v4150_v61, %v4153_v9  ;;  %v4163_v38 = vrot.slane %v9096_v39, 5  ;;  %v4166_v50 = vrot.slane %v9102_v4, 5  ;;  %v6579_v59 = vcombine.low %v9021_v18, %v9023_v40 }
 0x277   : > { %7139 = vmatprep.mubr.msk.bf16.mxu1 %vm3812_vm14, %v6578_v12  ;;  %v4160_v41 = vsel %vm7914_vm4, %v4158_v52, %v4159_v56  ;;  %v6601_v45 = vrot.slane %v4109_v31, 9  ;;  %v4177_v24 = vrot.slane %v9124_v26, 5  ;;  %v6580_v12 = vcombine.low %v9030_v36, %v9033_v8  ;;  %v7684_v31 = vld [vmem:[#allocation2 + $0x3c] sm:$0xff]  }
 0x278   : > { %v6607_v53 = vcombine.low %v4157_v7, %v4160_v41  ;;  %v4164_v42 = vsel %vm7914_vm4, %v6599_v54, %v4163_v38  ;;  %v4165_v43 = vrot.slane %v4163_v38, 4  ;;  %v4180_v13 = vrot.slane %v9129_v1, 5  ;;  %v4553_v7 = vld [vmem:[#allocation2 + $0x24] sm:$0xf]  ;;  %v9269_v41 = vld [vmem:[#allocation2 + $0x20] sm:$0x1] }
 0x279   : > { %v4233_v4 = vsel %vm3837_vm13, %v9085_v46, 0  ;;  %v4178_v40 = vsel %vm7914_vm4, %v6601_v45, %v4177_v24  ;;  %v4179_v47 = vrot.slane %v4177_v24, 4  ;;  %v6581_v46 = vcombine.low %v9046_v62, %v9055_v30 }
 0x27a   : > { %v4167_v18 = vsel %vm7914_vm4, %v4165_v43, %v4166_v50  ;;  %v6582_v1 = vcombine.low %v9073_v2, %v9075_v60  ;;  %v6583_v28 = vcombine.low %v9092_v44, %v9096_v39  ;;  %v6584_v22 = vcombine.low %v9109_v27, %v9111_v29  ;;  %v6636_v2 = vld [vmem:[%s9672_s3 + $0x10] sm:$0xf]  ;;  %v4108_v44 = vld [vmem:[#allocation2 + $0x48] sm:$0xe] }
 0x27b   : > { %v6608_v10 = vcombine.low %v4164_v42, %v4167_v18  ;;  %v4181_v36 = vsel %vm7914_vm4, %v4179_v47, %v4180_v13  ;;  %v6585_v62 = vcombine.low %v9117_v55, %v9124_v26  ;;  %v4432_v30 = vsel %vm3837_vm13, %v6619_v15, 0  ;;  %v7681_v26 = vld [vmem:[#allocation2 + $0x18] sm:$0xff]   ;;  %v4556_v47 = vld [vmem:[#allocation2 + $0x30] sm:$0xf] }
 0x27c   : > { %v6610_v8 = vcombine.low %v4178_v40, %v4181_v36  ;;  %v4170_v60 = vrot.slane %v9111_v29, 5  ;;  %v6600_v39 = vrot.slane %v4108_v44, 9  ;;  %v4173_v55 = vrot.slane %v9113_v23, 5  ;;  %v7680_v29 = vld [vmem:[#allocation2 + $0xc] sm:$0xff]   ;;  %v9279_v36 = vld [vmem:[#allocation2 + $0x34] sm:$0xf] }
 0x27d   : > { %v4547_v23 = vld [vmem:[#allocation2 + $0xc] sm:$0xf]  ;;  %v4814_v17 = vsel %vm3837_vm13, %v6636_v2, 0  ;;  %v4581_v0 = vshll.u32 %v9243_v19, 16  ;;  %v4585_v58 = vshrl.u32 %v9243_v19, 16  ;;  %v4596_v61 = vshrl.u32 %v4550_v57, 16 }
 0x27e   : > { %7140 = vmatmul.mubr.msk.bf16.vlgmr.msra.gmra.mrb[20].mxu1 %vm3812_vm14, %v6579_v59  ;;  %v4172_v27 = vrot.slane %v4170_v60, 4  ;;  %v4171_v5 = vsel %vm7914_vm4, %v6600_v39, %v4170_v60  ;;  %v4572_v33 = vshrl.u32 %v4547_v23, 16  ;;  %v4575_v25 = vshll.u32 %v4547_v23, 16  ;;  %v9267_v59 = vld [vmem:[#allocation2 + $0x28] sm:$0xf] }
 0x27f   : > { %7156 = vmatpush3.bf16.msra.mxu1 %v4233_v4  ;;  %7143 = vmatprep.mubr.msk.bf16.mxu1 %vm3812_vm14, %v6580_v12  ;;  %v4599_v32 = vshll.u32 %v4550_v57, 16  ;;  %v4605_v49 = vshll.u32 %v9251_v16, 16  ;;  %v9261_v56 = vrot.slane %v4581_v0, 5  ;;  %v4587_v54 = vrot.slane %v4585_v58, 4  ;;  %v9283_v44 = vld [vmem:[#allocation2 + $0x40] sm:$0xf] }
 0x280   : > { %7581 = vmatprep.subr.msk.bf16.mxu1 %vm3837_vm13, %v6619_v15  ;;  %v4174_v14 = vsel %vm7914_vm4, %v4172_v27, %v4173_v55  ;;  %v4574_v21 = vrot.slane %v4572_v33, 4  ;;  %v4577_v48 = vrot.slane %v4575_v25, 5  ;;  %v4598_v52 = vrot.slane %v4596_v61, 4  ;;  %v7685_v15 = vld [vmem:[#allocation2 + $0x48] sm:$0xff]  }
 0x281   : > { %v9265_v38 = vrot.slane %v4605_v49, 5  ;;  %v4588_v45 = vor.u32 %v4587_v54, %v9261_v56  ;;  %v4620_v42 = vshrl.u32 %v4553_v7, 16  ;;  %v4623_v43 = vshll.u32 %v4553_v7, 16 }
 0x282   : > { %v4578_v9 = vor.u32 %v4577_v48, %v4574_v21  ;;  %v4629_v24 = vshll.u32 %v9267_v59, 16  ;;  %v4633_v12 = vshrl.u32 %v9267_v59, 16  ;;  %v4615_v40 = vshll.u32 %v9269_v41, 16 }
 0x283   : > { %v4647_v60 = vshll.u32 %v4556_v47, 16  ;;  %v4677_v25 = vshll.u32 %v9283_v44, 16 }
 0x284   : > { %v4579_v13 = vrot.slane %v4578_v9, 4 }
 0x285   : > { %v4649_v21 = vrot.slane %v4647_v60, 5 }
 0x286   : > { %7144 = vmatmul.mubr.msk.bf16.gmra.mrb[24].mxu1 %vm3812_vm14, %v6581_v46  ;;  %v4584_v39 = vsel %vm8137_vm7, %v4579_v13, %v9261_v56 }
 0x287   : > { %7147 = vmatprep.mubr.msk.bf16.mxu1 %vm3812_vm14, %v6582_v1  ;;  %v4622_v1 = vrot.slane %v4620_v42, 4 }
 0x28e   : > { %7148 = vmatmul.mubr.msk.bf16.gmra.mrb[28].mxu1 %vm3812_vm14, %v6583_v28  ;;  %v4625_v28 = vrot.slane %v4623_v43, 5  ;;  %v9314_v43 = vld [vmem:[#allocation2 + $0x4c] sm:$0xf] }
 0x28f   : > { %7151 = vmatprep.mubr.msk.bf16.mxu1 %vm3812_vm14, %v6584_v22  ;;  %v4559_v22 = vld [vmem:[#allocation2 + $0x3c] sm:$0xf] }
 0x290   : > { %v4668_v23 = vshrl.u32 %v4559_v22, 16  ;;  %v4626_v33 = vor.u32 %v4625_v28, %v4622_v1 }
 0x292   : > { %v4670_v56 = vrot.slane %v4668_v23, 4  ;;  %v4627_v7 = vrot.slane %v4626_v33, 4 }
 0x296   : > { %7152 = vmatmul.mubr.msk.bf16.gmra.mrb[32].mxu1 %vm3812_vm14, %v6585_v62  ;;  %v9281_v62 = vrot.slane %v4629_v24, 5 }
 0x297   : > { %7157 = vmatprep.mubr.msk.bf16.mxu1 %vm3812_vm14, %v6603_v20  ;;  %v4609_v20 = vshrl.u32 %v9251_v16, 16 }
 0x298   : > { %v4632_v1 = vsel %vm8137_vm7, %v4627_v7, %v9281_v62 }
 0x299   : > { %v4611_v50 = vrot.slane %v4609_v20, 4 }
 0x29b   : > { %v4612_v18 = vor.u32 %v4611_v50, %v9265_v38  ;;  %v4562_v50 = vld [vmem:[#allocation2 + $0x48] sm:$0xf] }
 0x29d   : > { %v4613_v55 = vrot.slane %v4612_v18, 4  ;;  %v4692_v18 = vshrl.u32 %v4562_v50, 16 }
 0x29e   : > { %7158 = vmatmul.mubr.msk.bf16.vlgmr.msra.gmra.mrb[20].mxu1 %vm3812_vm14, %v6604_v3  ;;  %v6609_v3 = vcombine.low %v4171_v5, %v4174_v14  ;;  %v4617_v5 = vrot.slane %v4615_v40, 5  ;;  %v9288_v14 = vld [vmem:[#allocation2 + $0x2c] sm:$0x1]  ;;  %v4565_v40 = vld [vmem:[#allocation2 + $0x54] sm:$0xf] }
 0x29f   : > { %7174 = vmatpush3.bf16.msra.mxu1 %v4432_v30  ;;  %7161 = vmatprep.mubr.msk.bf16.mxu1 %vm3812_vm14, %v6605_v6  ;;  %v9263_v6 = vld [vmem:[#allocation2 + $0x14] sm:$0x1]  ;;  %v4635_v30 = vrot.slane %v4633_v12, 4  ;;  %v4639_v0 = vshll.u32 %v9288_v14, 16  ;;  %v4719_v60 = vshll.u32 %v4565_v40, 16 }
 0x2a0   : > { %7582 = vmatprep.subr.msk.bf16.mxu1 %vm3837_vm13, %v6636_v2  ;;  %v4644_v2 = vshrl.u32 %v4556_v47, 16  ;;  %v4618_v61 = vsel %vm8137_vm7, %v4613_v55, %v4617_v5  ;;  %v9318_v47 = vld [vmem:[#allocation2 + $0x58] sm:$0xf] }
 0x2a1   : > { %v4636_v57 = vor.u32 %v4635_v30, %v9281_v62  ;;  %v5068_v62 = vsel %vm3837_vm13, %v9249_v11, 0 }
 0x2a2   : > { %v4646_v58 = vrot.slane %v4644_v2, 4  ;;  %v4716_v2 = vshrl.u32 %v4565_v40, 16 }
 0x2a6   : > { %7162 = vmatmul.mubr.msk.bf16.gmra.mrb[24].mxu1 %vm3812_vm14, %v6606_v34  ;;  %v4601_v34 = vrot.slane %v4599_v32, 5  ;;  %v9305_v32 = vld [vmem:[#allocation2 + $0x38] sm:$0x1] }
 0x2a7   : > { %7165 = vmatprep.mubr.msk.bf16.mxu1 %vm3812_vm14, %v6607_v53  ;;  %v4591_v53 = vshll.u32 %v9263_v6, 16  ;;  %v4663_v42 = vshll.u32 %v9305_v32, 16 }
 0x2a8   : > { %v4602_v4 = vor.u32 %v4601_v34, %v4598_v52  ;;  %v9311_v52 = vrot.slane %v4677_v25, 5 }
 0x2a9   : > { %v4593_v46 = vrot.slane %v4591_v53, 5  ;;  %v4650_v53 = vor.u32 %v4649_v21, %v4646_v58  ;;  %v4665_v30 = vrot.slane %v4663_v42, 5  ;;  %v4721_v58 = vrot.slane %v4719_v60, 5 }
 0x2aa   : > { %v4603_v27 = vrot.slane %v4602_v4, 4 }
 0x2ac   : > { %v4608_v48 = vsel %vm8137_vm7, %v4603_v27, %v9265_v38  ;;  %v4637_v38 = vrot.slane %v4636_v57, 4  ;;  %v4729_v27 = vshrl.u32 %v9318_v47, 16  ;;  %v4568_v57 = vld [vmem:[#allocation2 + $0x60] sm:$0xf] }
 0x2ad   : > { %v6638_v24 = vcombine.low %v4608_v48, %v4618_v61  ;;  %v9336_v61 = vld [vmem:[#allocation2 + $0x64] sm:$0xf] }
 0x2ae   : > { %7166 = vmatmul.mubr.msk.bf16.gmra.mrb[28].mxu1 %vm3812_vm14, %v6608_v10  ;;  %v7686_v10 = vld [vmem:[#allocation2 + $0x54] sm:$0xff]   ;;  %v4731_v48 = vrot.slane %v4729_v27, 4 }
 0x2af   : > { %7169 = vmatprep.mubr.msk.bf16.mxu1 %vm3812_vm14, %v6609_v3  ;;  %v4653_v3 = vshll.u32 %v9279_v36, 16 }
 0x2b1   : > { %v9307_v49 = vrot.slane %v4653_v3, 5 }
 0x2b6   : > { %7170 = vmatmul.mubr.msk.bf16.gmra.mrb[32].mxu1 %vm3812_vm14, %v6610_v8  ;;  %v4589_v8 = vrot.slane %v4588_v45, 4  ;;  %v4641_v45 = vrot.slane %v4639_v0, 5  ;;  %v4718_v0 = vrot.slane %v4716_v2, 4 }
 0x2b7   : > { %7175 = vmatprep.mubr.msk.bf16.mxu1 %vm3812_vm14, %v7680_v29  ;;  %v4657_v29 = vshrl.u32 %v9279_v36, 16 }
 0x2b8   : > { %v4642_v28 = vsel %vm8137_vm7, %v4637_v38, %v4641_v45  ;;  %v4749_v38 = vshll.u32 %v9336_v61, 16  ;;  %v4753_v45 = vshrl.u32 %v9336_v61, 16 }
 0x2b9   : > { %v4659_v20 = vrot.slane %v4657_v29, 4  ;;  %v4694_v29 = vrot.slane %v4692_v18, 4  ;;  %v6639_v25 = vcombine.low %v4632_v1, %v4642_v28 }
 0x2bb   : > { %v4660_v12 = vor.u32 %v4659_v20, %v9307_v49 }
 0x2bd   : > { %v4661_v55 = vrot.slane %v4660_v12, 4 }
 0x2be   : > { %7176 = vmatmul.mubr.msk.bf16.vlgmr.msra.gmra.mrb[20].mxu1 %vm3812_vm14, %v7681_v26  ;;  %v4671_v26 = vshll.u32 %v4559_v22, 16  ;;  %v4651_v22 = vrot.slane %v4650_v53, 4  ;;  %v4722_v53 = vor.u32 %v4721_v58, %v4718_v0  ;;  %v4966_v58 = vrot.slane %v9263_v6, 5 }
 0x2bf   : > { %7192 = vmatpush3.bf16.msra.mxu1 %v4814_v17  ;;  %7179 = vmatprep.mubr.msk.bf16.mxu1 %vm3812_vm14, %v7682_v35  ;;  %v4594_v35 = vsel %vm8137_vm7, %v4589_v8, %v4593_v46  ;;  %v4681_v17 = vshrl.u32 %v9283_v44, 16  ;;  %v4701_v8 = vshll.u32 %v9314_v43, 16  ;;  %v4705_v46 = vshrl.u32 %v9314_v43, 16 }
 0x2c0   : > { %7583 = vmatprep.subr.msk.bf16.mxu1 %vm3837_vm13, %v9249_v11  ;;  %v4673_v54 = vrot.slane %v4671_v26, 5  ;;  %v6637_v9 = vcombine.low %v4584_v39, %v4594_v35  ;;  %v4725_v39 = vshll.u32 %v9318_v47, 16  ;;  %v4656_v20 = vsel %vm8137_vm7, %v4651_v22, %v9307_v49 }
 0x2c1   : > { %v4683_v34 = vrot.slane %v4681_v17, 4  ;;  %v4703_v35 = vrot.slane %v4701_v8, 5  ;;  %v4707_v33 = vrot.slane %v4705_v46, 4  ;;  %v9334_v17 = vld [vmem:[#allocation2 + $0x50] sm:$0x1]  ;;  %v4751_v8 = vrot.slane %v4749_v38, 5 }
 0x2c2   : > { %v4674_v13 = vor.u32 %v4673_v54, %v4670_v56  ;;  %v4727_v21 = vrot.slane %v4725_v39, 5  ;;  %v4666_v56 = vsel %vm8137_vm7, %v4661_v55, %v4665_v30  ;;  %v9346_v54 = vld [vmem:[#allocation2 + $0x5c] sm:$0x1]  ;;  %v4755_v46 = vrot.slane %v4753_v45, 4  ;;  %v9363_v30 = vld [vmem:[#allocation2 + $0x68] sm:$0x1] }
 0x2c3   : > { %v4708_v7 = vor.u32 %v4707_v33, %v4703_v35  ;;  %v6640_v12 = vcombine.low %v4656_v20, %v4666_v56  ;;  %v4723_v1 = vrot.slane %v4722_v53, 4  ;;  %v4759_v55 = vshll.u32 %v9363_v30, 16 }
 0x2c4   : > { %v4675_v5 = vrot.slane %v4674_v13, 4  ;;  %v4732_v42 = vor.u32 %v4731_v48, %v4727_v21  ;;  %v4756_v27 = vor.u32 %v4755_v46, %v4751_v8  ;;  %v4970_v48 = vrot.slane %v9251_v16, 5 }
 0x2c5   : > { %v4709_v18 = vrot.slane %v4708_v7, 4  ;;  %v4977_v6 = vrot.slane %v9267_v59, 5  ;;  %v4980_v16 = vrot.slane %v9288_v14, 5  ;;  %v4991_v14 = vrot.slane %v9283_v44, 5 }
 0x2c6   : > { %7180 = vmatmul.mubr.msk.bf16.gmra.mrb[24].mxu1 %vm3812_vm14, %v7683_v51  ;;  %v9309_v51 = vld [vmem:[#allocation2 + $0x44] sm:$0x1]  ;;  %v4680_v11 = vsel %vm8137_vm7, %v4675_v5, %v9311_v52  ;;  %v4733_v28 = vrot.slane %v4732_v42, 4  ;;  %v4728_v5 = vsel %vm8137_vm7, %v4723_v1, %v4727_v21  ;;  %v4984_v42 = vrot.slane %v9279_v36, 5 }
 0x2c7   : > { %7183 = vmatprep.mubr.msk.bf16.mxu1 %vm3812_vm14, %v7684_v31  ;;  %v7687_v31 = vld [vmem:[#allocation2 + $0x60] sm:$0xff]   ;;  %v4687_v4 = vshll.u32 %v9309_v51, 16  ;;  %v4979_v45 = vrot.slane %v4977_v6, 4  ;;  %v4993_v46 = vrot.slane %v4991_v14, 4  ;;  %v4994_v1 = vrot.slane %v9309_v51, 5 }
 0x2c9   : > { %v4689_v3 = vrot.slane %v4687_v4, 5 }
 0x2ce   : > { %7184 = vmatmul.mubr.msk.bf16.gmra.mrb[28].mxu1 %vm3812_vm14, %v7685_v15  ;;  %v4684_v15 = vor.u32 %v4683_v34, %v9311_v52  ;;  %v4711_v34 = vshll.u32 %v9334_v17, 16  ;;  %v4740_v52 = vshrl.u32 %v4568_v57, 16 }
 0x2cf   : > { %7187 = vmatprep.mubr.msk.bf16.mxu1 %vm3812_vm14, %v7686_v10  ;;  %v4695_v10 = vshll.u32 %v4562_v50, 16  ;;  %v4743_v50 = vshll.u32 %v4568_v57, 16 }
 0x2d0   : > { %v4685_v23 = vrot.slane %v4684_v15, 4  ;;  %v4713_v40 = vrot.slane %v4711_v34, 5  ;;  %v4742_v15 = vrot.slane %v4740_v52, 4  ;;  %v4972_v52 = vrot.slane %v4970_v48, 4 }
 0x2d1   : > { %v4697_v26 = vrot.slane %v4695_v10, 5  ;;  %v4745_v10 = vrot.slane %v4743_v50, 5  ;;  %v4973_v50 = vrot.slane %v9269_v41, 5  ;;  %v4981_v41 = vsel %vm7914_vm4, %v4979_v45, %v4980_v16 }
 0x2d2   : > { %v4714_v60 = vsel %vm8137_vm7, %v4709_v18, %v4713_v40 }
 0x2d3   : > { %v4698_v49 = vor.u32 %v4697_v26, %v4694_v29  ;;  %v4746_v39 = vor.u32 %v4745_v10, %v4742_v15  ;;  %v4963_v29 = vrot.slane %v9243_v19, 5  ;;  %v4974_v59 = vsel %vm7914_vm4, %v4972_v52, %v4973_v50 }
 0x2d4   : > { %v4986_v15 = vrot.slane %v4984_v42, 4  ;;  %v4987_v10 = vrot.slane %v9305_v32, 5 }
 0x2d5   : > { %v4699_v4 = vrot.slane %v4698_v49, 4  ;;  %v4747_v33 = vrot.slane %v4746_v39, 4  ;;  %v4965_v0 = vrot.slane %v4963_v29, 4  ;;  %v4935_v39 = vld [vmem:[#allocation2 + $0x54] sm:$0xe] }
 0x2d6   : > { %7188 = vmatmul.mubr.msk.bf16.gmra.mrb[32].mxu1 %vm3812_vm14, %v7687_v31  ;;  %v9351_v31 = vld [vmem:[%s9672_s3 + $0x18] sm:$0xf]  ;;  %v4988_v32 = vsel %vm7914_vm4, %v4986_v15, %v4987_v10 }
 0x2d7   : > { %7193 = vmatprep.mubr.msk.bf16.mxu1 %vm3812_vm14, %v6637_v9  ;;  %v4690_v9 = vsel %vm8137_vm7, %v4685_v23, %v4689_v3  ;;  %v4704_v2 = vsel %vm8137_vm7, %v4699_v4, %v4703_v35  ;;  %v4929_v23 = vld [vmem:[#allocation2 + $0xc] sm:$0xe]  ;;  %v4752_v21 = vsel %vm8137_vm7, %v4747_v33, %v4751_v8  ;;  %v4967_v56 = vsel %vm7914_vm4, %v4965_v0, %v4966_v58 }
 0x2d8   : > { %v6641_v13 = vcombine.low %v4680_v11, %v4690_v9  ;;  %v6642_v26 = vcombine.low %v4704_v2, %v4714_v60  ;;  %v6653_v57 = vrot.slane %v4929_v23, 9  ;;  %v4930_v11 = vld [vmem:[#allocation2 + $0x18] sm:$0xe]  ;;  %v4931_v9 = vld [vmem:[#allocation2 + $0x24] sm:$0xe]  ;;  %v5267_v8 = vsel %vm3837_vm13, %v9351_v31, 0 }
 0x2d9   : > { %v6654_v34 = vrot.slane %v4930_v11, 9  ;;  %v6655_v38 = vrot.slane %v4931_v9, 9  ;;  %v4934_v2 = vld [vmem:[#allocation2 + $0x48] sm:$0xe]  ;;  %v5005_v60 = vrot.slane %v9318_v47, 5  ;;  %v6659_v23 = vrot.slane %v4935_v39, 9 }
 0x2da   : > { %v4964_v20 = vsel %vm7914_vm4, %v6653_v57, %v4963_v29  ;;  %v5001_v29 = vrot.slane %v9334_v17, 5  ;;  %v5012_v33 = vrot.slane %v9336_v61, 5  ;;  %v7690_v11 = vld [vmem:[#allocation2 + $0x30] sm:$0xff]  }
 0x2db   : > { %v6662_v7 = vcombine.low %v4964_v20, %v4967_v56  ;;  %v4971_v53 = vsel %vm7914_vm4, %v6654_v34, %v4970_v48  ;;  %v7688_v20 = vld [vmem:[#allocation2 + $0x18] sm:$0xff]   ;;  %v7689_v56 = vld [vmem:[#allocation2 + $0x24] sm:$0xff]  }
 0x2dc   : > { %v6663_v4 = vcombine.low %v4971_v53, %v4974_v59  ;;  %v5014_v58 = vrot.slane %v5012_v33, 4  ;;  %v9454_v34 = vld [vmem:[#allocation2 + $0x28] sm:$0xf] }
 0x2dd   : > { %v5440_v59 = vshll.u32 %v9454_v34, 16 }
 0x2de   : > { %7194 = vmatmul.mubr.msk.bf16.vlgmr.msra.gmra.mrb[20].mxu1 %vm3812_vm14, %v6638_v24  ;;  %v4735_v24 = vshll.u32 %v9346_v54, 16 }
 0x2df   : > { %7210 = vmatpush3.bf16.msra.mxu1 %v5068_v62  ;;  %7197 = vmatprep.mubr.msk.bf16.mxu1 %vm3812_vm14, %v6639_v25  ;;  %v4757_v62 = vrot.slane %v4756_v27, 4  ;;  %v4761_v25 = vrot.slane %v4759_v55, 5 }
 0x2e0   : > { %7584 = vmatprep.subr.msk.bf16.mxu1 %vm3837_vm13, %v9351_v31  ;;  %v4737_v22 = vrot.slane %v4735_v24, 5  ;;  %v4978_v24 = vsel %vm7914_vm4, %v6655_v38, %v4977_v6  ;;  %v4998_v31 = vrot.slane %v9314_v43, 5  ;;  %v5007_v43 = vrot.slane %v5005_v60, 4  ;;  %v5382_v6 = vld [vmem:[#allocation2 + $0x18] sm:$0xf] }
 0x2e1   : > { %v4762_v19 = vsel %vm8137_vm7, %v4757_v62, %v4761_v25  ;;  %v6664_v18 = vcombine.low %v4978_v24, %v4981_v41  ;;  %v5006_v62 = vsel %vm7914_vm4, %v6659_v23, %v5005_v60  ;;  %v4936_v25 = vld [vmem:[#allocation2 + $0x60] sm:$0xe]  ;;  %v5407_v52 = vshrl.u32 %v5382_v6, 16 }
 0x2e2   : > { %v4738_v3 = vsel %vm8137_vm7, %v4733_v28, %v4737_v22  ;;  %v6644_v49 = vcombine.low %v4752_v21, %v4762_v19  ;;  %v6695_v28 = vld [vmem:[%s9672_s3 + $0x1c] sm:$0xf]  ;;  %v4995_v22 = vsel %vm7914_vm4, %v4993_v46, %v4994_v1  ;;  %v6660_v0 = vrot.slane %v4936_v25, 9  ;;  %v9470_v46 = vld [vmem:[#allocation2 + $0x34] sm:$0xf] }
 0x2e3   : > { %v6643_v35 = vcombine.low %v4728_v5, %v4738_v3  ;;  %v6658_v5 = vrot.slane %v4934_v2, 9  ;;  %v5000_v3 = vrot.slane %v4998_v31, 4  ;;  %v5015_v21 = vrot.slane %v9363_v30, 5  ;;  %v9446_v30 = vld [vmem:[#allocation2 + $0x1c] sm:$0xf] }
 0x2e4   : > { %v5013_v61 = vsel %vm7914_vm4, %v6660_v0, %v5012_v33  ;;  %v5649_v9 = vsel %vm3837_vm13, %v6695_v28, 0  ;;  %v5410_v50 = vshll.u32 %v5382_v6, 16  ;;  %v5416_v38 = vshll.u32 %v9446_v30, 16  ;;  %v7691_v24 = vld [vmem:[#allocation2 + $0x3c] sm:$0xff]   ;;  %v9472_v1 = vld [vmem:[#allocation2 + $0x2c] sm:$0x1] }
 0x2e5   : > { %v4999_v47 = vsel %vm7914_vm4, %v6658_v5, %v4998_v31  ;;  %v5016_v19 = vsel %vm7914_vm4, %v5014_v58, %v5015_v21  ;;  %v5420_v45 = vshrl.u32 %v9446_v30, 16  ;;  %v5409_v41 = vrot.slane %v5407_v52, 4  ;;  %v7693_v5 = vld [vmem:[#allocation2 + $0x54] sm:$0xff]   ;;  %v9482_v23 = vld [vmem:[#allocation2 + $0x40] sm:$0xf] }
 0x2e6   : > { %7198 = vmatmul.mubr.msk.bf16.gmra.mrb[24].mxu1 %vm3812_vm14, %v6640_v12  ;;  %v4932_v12 = vld [vmem:[#allocation2 + $0x30] sm:$0xe]  ;;  %v6669_v48 = vcombine.low %v5013_v61, %v5016_v19  ;;  %v5468_v2 = vshrl.u32 %v9470_v46, 16  ;;  %v5394_v33 = vld [vmem:[#allocation2 + $0x48] sm:$0xf]  ;;  %v5488_v19 = vshll.u32 %v9482_v23, 16 }
 0x2e7   : > { %7201 = vmatprep.mubr.msk.bf16.mxu1 %vm3812_vm14, %v6641_v13  ;;  %v4933_v13 = vld [vmem:[#allocation2 + $0x3c] sm:$0xe]  ;;  %v6656_v40 = vrot.slane %v4932_v12, 9  ;;  %v5412_v12 = vrot.slane %v5410_v50, 5  ;;  %v9488_v61 = vld [vmem:[#allocation2 + $0x38] sm:$0x1] }
 0x2e8   : > { %v6657_v36 = vrot.slane %v4933_v13, 9  ;;  %v5422_v13 = vrot.slane %v5420_v45, 4 }
 0x2e9   : > { %v4985_v44 = vsel %vm7914_vm4, %v6656_v40, %v4984_v42  ;;  %v5444_v42 = vshrl.u32 %v9454_v34, 16  ;;  %v9466_v40 = vld [vmem:[#allocation2 + $0x20] sm:$0x1] }
 0x2ea   : > { %v4992_v51 = vsel %vm7914_vm4, %v6657_v36, %v4991_v14  ;;  %v6665_v27 = vcombine.low %v4985_v44, %v4988_v32  ;;  %v9464_v14 = vrot.slane %v5416_v38, 5  ;;  %v5413_v32 = vor.u32 %v5412_v12, %v5409_v41  ;;  %v7695_v41 = vld [vmem:[#allocation2 + $0x6c] sm:$0xff]  }
 0x2eb   : > { %v6666_v55 = vcombine.low %v4992_v51, %v4995_v22  ;;  %v5446_v36 = vrot.slane %v5444_v42, 4  ;;  %v5426_v51 = vshll.u32 %v9466_v40, 16  ;;  %v5464_v22 = vshll.u32 %v9470_v46, 16  ;;  %v9508_v42 = vld [vmem:[#allocation2 + $0x44] sm:$0x1] }
 0x2ec   : > { %v5423_v31 = vor.u32 %v5422_v13, %v9464_v14  ;;  %v5474_v38 = vshll.u32 %v9488_v61, 16 }
 0x2ee   : > { %7202 = vmatmul.mubr.msk.bf16.gmra.mrb[28].mxu1 %vm3812_vm14, %v6642_v26  ;;  %v5008_v26 = vrot.slane %v9346_v54, 5 }
 0x2ef   : > { %7205 = vmatprep.mubr.msk.bf16.mxu1 %vm3812_vm14, %v6643_v35  ;;  %v5002_v35 = vsel %vm7914_vm4, %v5000_v3, %v5001_v29 }
 0x2f0   : > { %v5009_v17 = vsel %vm7914_vm4, %v5007_v43, %v5008_v26  ;;  %v6667_v54 = vcombine.low %v4999_v47, %v5002_v35  ;;  %v7694_v43 = vld [vmem:[#allocation2 + $0x60] sm:$0xff]   ;;  %v5414_v26 = vrot.slane %v5413_v32, 4  ;;  %v5424_v47 = vrot.slane %v5423_v31, 4 }
 0x2f1   : > { %v6668_v57 = vcombine.low %v5006_v62, %v5009_v17  ;;  %v5428_v35 = vrot.slane %v5426_v51, 5  ;;  %v9484_v62 = vrot.slane %v5464_v22, 5  ;;  %v5470_v17 = vrot.slane %v5468_v2, 4  ;;  %v9517_v51 = vld [vmem:[#allocation2 + $0x58] sm:$0xf] }
 0x2f2   : > { %v5419_v6 = vsel %vm8137_vm7, %v5414_v26, %v9464_v14  ;;  %v5498_v31 = vshll.u32 %v9508_v42, 16  ;;  %v5540_v26 = vshrl.u32 %v9517_v51, 16 }
 0x2f3   : > { %v5471_v50 = vor.u32 %v5470_v17, %v9484_v62 }
 0x2f4   : > { %v5500_v17 = vrot.slane %v5498_v31, 5 }
 0x2f6   : > { %7206 = vmatmul.mubr.msk.bf16.gmra.mrb[32].mxu1 %vm3812_vm14, %v6644_v49  ;;  %v9452_v49 = vld [vmem:[%s9672_s3 + $0x20] sm:$0xf] }
 0x2f7   : > { %7211 = vmatprep.mubr.msk.bf16.mxu1 %vm3812_vm14, %v6662_v7  ;;  %v5385_v7 = vld [vmem:[#allocation2 + $0x24] sm:$0xf] }
 0x2f8   : > { %v5431_v16 = vshrl.u32 %v5385_v7, 16  ;;  %v5434_v53 = vshll.u32 %v5385_v7, 16 }
 0x2fa   : > { %v5433_v15 = vrot.slane %v5431_v16, 4  ;;  %v5436_v10 = vrot.slane %v5434_v53, 5 }
 0x2fc   : > { %v5437_v60 = vor.u32 %v5436_v10, %v5433_v15  ;;  %v9512_v15 = vld [vmem:[#allocation2 + $0x50] sm:$0x1] }
 0x2fe   : > { %7212 = vmatmul.mubr.msk.bf16.vlgmr.msra.gmra.mrb[20].mxu1 %vm3812_vm14, %v6663_v4  ;;  %v5388_v4 = vld [vmem:[#allocation2 + $0x30] sm:$0xf]  ;;  %v5438_v0 = vrot.slane %v5437_v60, 4 }
 0x2ff   : > { %7228 = vmatpush3.bf16.msra.mxu1 %v5267_v8  ;;  %7215 = vmatprep.mubr.msk.bf16.mxu1 %vm3812_vm14, %v6664_v18  ;;  %v7692_v18 = vld [vmem:[#allocation2 + $0x48] sm:$0xff]   ;;  %v9468_v8 = vrot.slane %v5440_v59, 5  ;;  %v5458_v44 = vshll.u32 %v5388_v4, 16 }
 0x300   : > { %7585 = vmatprep.subr.msk.bf16.mxu1 %vm3837_vm13, %v6695_v28  ;;  %v5455_v28 = vshrl.u32 %v5388_v4, 16 }
 0x301   : > { %v5447_v39 = vor.u32 %v5446_v36, %v9468_v8  ;;  %v5460_v29 = vrot.slane %v5458_v44, 5  ;;  %v5443_v53 = vsel %vm8137_vm7, %v5438_v0, %v9468_v8  ;;  %v5472_v8 = vrot.slane %v5471_v50, 4  ;;  %v5403_v50 = vld [vmem:[#allocation2 + $0x6c] sm:$0xf] }
 0x302   : > { %v5457_v3 = vrot.slane %v5455_v28, 4  ;;  %v5397_v28 = vld [vmem:[#allocation2 + $0x54] sm:$0xf]  ;;  %v5476_v44 = vrot.slane %v5474_v38, 5 }
 0x303   : > { %v5448_v58 = vrot.slane %v5447_v39, 4  ;;  %v5522_v39 = vshll.u32 %v9512_v15, 16 }
 0x306   : > { %7216 = vmatmul.mubr.msk.bf16.gmra.mrb[24].mxu1 %vm3812_vm14, %v6665_v27  ;;  %v5450_v27 = vshll.u32 %v9472_v1, 16 }
 0x307   : > { %7219 = vmatprep.mubr.msk.bf16.mxu1 %vm3812_vm14, %v6666_v55  ;;  %v5391_v55 = vld [vmem:[#allocation2 + $0x3c] sm:$0xf] }
 0x308   : > { %v5479_v25 = vshrl.u32 %v5391_v55, 16  ;;  %v5452_v21 = vrot.slane %v5450_v27, 5  ;;  %v5527_v27 = vshrl.u32 %v5397_v28, 16 }
 0x30a   : > { %v5481_v45 = vrot.slane %v5479_v25, 4  ;;  %v5453_v59 = vsel %vm8137_vm7, %v5448_v58, %v5452_v21 }
 0x30b   : > { %v6697_v22 = vcombine.low %v5443_v53, %v5453_v59  ;;  %v9539_v59 = vld [vmem:[#allocation2 + $0x70] sm:$0xf] }
 0x30e   : > { %7220 = vmatmul.mubr.msk.bf16.gmra.mrb[28].mxu1 %vm3812_vm14, %v6667_v54  ;;  %v5482_v54 = vshll.u32 %v5391_v55, 16  ;;  %v5400_v55 = vld [vmem:[#allocation2 + $0x60] sm:$0xf] }
 0x30f   : > { %7223 = vmatprep.mubr.msk.bf16.mxu1 %vm3812_vm14, %v6668_v57  ;;  %v9486_v57 = vld [vmem:[#allocation2 + $0x4c] sm:$0xf]  ;;  %v5551_v25 = vshrl.u32 %v5400_v55, 16 }
 0x310   : > { %v5512_v7 = vshll.u32 %v9486_v57, 16  ;;  %v5516_v52 = vshrl.u32 %v9486_v57, 16  ;;  %v5484_v16 = vrot.slane %v5482_v54, 5  ;;  %v5554_v54 = vshll.u32 %v5400_v55, 16 }
 0x311   : > { %v5553_v38 = vrot.slane %v5551_v25, 4 }
 0x312   : > { %v9514_v10 = vrot.slane %v5512_v7, 5  ;;  %v5518_v36 = vrot.slane %v5516_v52, 4  ;;  %v5485_v32 = vor.u32 %v5484_v16, %v5481_v45  ;;  %v5903_v7 = vsel %vm3837_vm13, %v9452_v49, 0 }
 0x313   : > { %v5556_v45 = vrot.slane %v5554_v54, 5 }
 0x316   : > { %7224 = vmatmul.mubr.msk.bf16.gmra.mrb[32].mxu1 %vm3812_vm14, %v6669_v48  ;;  %v5461_v48 = vor.u32 %v5460_v29, %v5457_v3  ;;  %v5519_v3 = vor.u32 %v5518_v36, %v9514_v10  ;;  %v5530_v29 = vshll.u32 %v5397_v28, 16  ;;  %v5578_v28 = vshll.u32 %v5403_v50, 16 }
 0x317   : > { %7229 = vmatprep.mubr.msk.bf16.mxu1 %vm3812_vm14, %v7688_v20  ;;  %v5492_v20 = vshrl.u32 %v9482_v23, 16 }
 0x318   : > { %v5462_v12 = vrot.slane %v5461_v48, 4  ;;  %v5524_v48 = vrot.slane %v5522_v39, 5 }
 0x319   : > { %v5494_v14 = vrot.slane %v5492_v20, 4  ;;  %v5529_v20 = vrot.slane %v5527_v27, 4 }
 0x31e   : > { %7230 = vmatmul.mubr.msk.bf16.vlgmr.msra.gmra.mrb[20].mxu1 %vm3812_vm14, %v7689_v56  ;;  %v5503_v56 = vshrl.u32 %v5394_v33, 16 }
 0x31f   : > { %7246 = vmatpush3.bf16.msra.mxu1 %v5649_v9  ;;  %7233 = vmatprep.mubr.msk.bf16.mxu1 %vm3812_vm14, %v7690_v11  ;;  %v5506_v11 = vshll.u32 %v5394_v33, 16  ;;  %v5429_v9 = vsel %vm8137_vm7, %v5424_v47, %v5428_v35  ;;  %v5467_v47 = vsel %vm8137_vm7, %v5462_v12, %v9484_v62  ;;  %v5477_v35 = vsel %vm8137_vm7, %v5472_v8, %v5476_v44 }
 0x320   : > { %7586 = vmatprep.subr.msk.bf16.mxu1 %vm3837_vm13, %v9452_v49  ;;  %v5505_v13 = vrot.slane %v5503_v56, 4  ;;  %v5486_v33 = vrot.slane %v5485_v32, 4  ;;  %v5520_v56 = vrot.slane %v5519_v3, 4  ;;  %v6698_v52 = vcombine.low %v5467_v47, %v5477_v35 }
 0x321   : > { %v5508_v4 = vrot.slane %v5506_v11, 5  ;;  %v9535_v11 = vld [vmem:[#allocation2 + $0x5c] sm:$0x1]  ;;  %v5584_v8 = vshll.u32 %v9539_v59, 16  ;;  %v5588_v44 = vshrl.u32 %v9539_v59, 16  ;;  %v5557_v32 = vor.u32 %v5556_v45, %v5553_v38 }
 0x322   : > { %v5580_v3 = vrot.slane %v5578_v28, 5  ;;  %v5801_v38 = vrot.slane %v9466_v40, 5  ;;  %v5812_v40 = vrot.slane %v9470_v46, 5 }
 0x323   : > { %v5509_v60 = vor.u32 %v5508_v4, %v5505_v13  ;;  %v9547_v13 = vld [vmem:[#allocation2 + $0x68] sm:$0x1]  ;;  %v5525_v4 = vsel %vm8137_vm7, %v5520_v56, %v5524_v48  ;;  %v5798_v48 = vrot.slane %v9446_v30, 5 }
 0x324   : > { %v5814_v28 = vrot.slane %v5812_v40, 4 }
 0x326   : > { %7234 = vmatmul.mubr.msk.bf16.gmra.mrb[24].mxu1 %vm3812_vm14, %v7691_v24  ;;  %v9510_v24 = vrot.slane %v5488_v19, 5  ;;  %v5510_v19 = vrot.slane %v5509_v60, 4 }
 0x327   : > { %7237 = vmatprep.mubr.msk.bf16.mxu1 %vm3812_vm14, %v7692_v18  ;;  %v6696_v18 = vcombine.low %v5419_v6, %v5429_v9  ;;  %v5532_v6 = vrot.slane %v5530_v29, 5  ;;  %v5542_v9 = vrot.slane %v5540_v26, 4  ;;  %v5586_v29 = vrot.slane %v5584_v8, 5 }
 0x328   : > { %v5495_v2 = vor.u32 %v5494_v14, %v9510_v24  ;;  %v5546_v14 = vshll.u32 %v9535_v11, 16  ;;  %v5515_v49 = vsel %vm8137_vm7, %v5510_v19, %v9514_v10  ;;  %v5558_v26 = vrot.slane %v5557_v32, 4 }
 0x329   : > { %v6700_v10 = vcombine.low %v5515_v49, %v5525_v4 }
 0x32a   : > { %v5496_v21 = vrot.slane %v5495_v2, 4  ;;  %v5548_v27 = vrot.slane %v5546_v14, 5  ;;  %v5766_v14 = vld [vmem:[#allocation2 + $0x30] sm:$0xe] }
 0x32b   : > { %v6714_v63 = vrot.slane %v5766_v14, 9 }
 0x32c   : > { %v5501_v12 = vsel %vm8137_vm7, %v5496_v21, %v5500_v17 }
 0x32d   : > { %v5813_v32 = vsel %vm7914_vm4, %v6714_v63, %v5812_v40 }
 0x32e   : > { %7238 = vmatmul.mubr.msk.bf16.gmra.mrb[28].mxu1 %vm3812_vm14, %v7693_v5  ;;  %v9521_v5 = vld [vmem:[#allocation2 + $0x64] sm:$0xf] }
 0x32f   : > { %7241 = vmatprep.mubr.msk.bf16.mxu1 %vm3812_vm14, %v7694_v43  ;;  %v5536_v43 = vshll.u32 %v9517_v51, 16  ;;  %v5560_v0 = vshll.u32 %v9521_v5, 16  ;;  %v5564_v58 = vshrl.u32 %v9521_v5, 16 }
 0x331   : > { %v5538_v62 = vrot.slane %v5536_v43, 5  ;;  %v5562_v16 = vrot.slane %v5560_v0, 5  ;;  %v5566_v53 = vrot.slane %v5564_v58, 4  ;;  %v5590_v43 = vrot.slane %v5588_v44, 4 }
 0x332   : > { %v5819_v44 = vrot.slane %v9482_v23, 5  ;;  %v5829_v23 = vrot.slane %v9512_v15, 5  ;;  %v5840_v15 = vrot.slane %v9521_v5, 5 }
 0x333   : > { %v5543_v36 = vor.u32 %v5542_v9, %v5538_v62  ;;  %v5567_v31 = vor.u32 %v5566_v53, %v5562_v16  ;;  %v5591_v0 = vor.u32 %v5590_v43, %v5586_v29  ;;  %v5563_v21 = vsel %vm8137_vm7, %v5558_v26, %v5562_v16 }
 0x334   : > { %v5805_v16 = vrot.slane %v9454_v34, 5  ;;  %v5815_v34 = vrot.slane %v9488_v61, 5  ;;  %v5826_v61 = vrot.slane %v9486_v57, 5  ;;  %v5833_v43 = vrot.slane %v9517_v51, 5 }
 0x335   : > { %v5544_v39 = vrot.slane %v5543_v36, 4  ;;  %v5568_v47 = vrot.slane %v5567_v31, 4  ;;  %v5592_v9 = vrot.slane %v5591_v0, 4  ;;  %v5767_v31 = vld [vmem:[#allocation2 + $0x3c] sm:$0xe]  ;;  %v5843_v51 = vrot.slane %v9547_v13, 5 }
 0x336   : > { %7242 = vmatmul.mubr.msk.bf16.gmra.mrb[32].mxu1 %vm3812_vm14, %v7695_v41  ;;  %v5491_v41 = vsel %vm8137_vm7, %v5486_v33, %v9510_v24  ;;  %v5575_v24 = vshrl.u32 %v5403_v50, 16  ;;  %v9559_v33 = vld [vmem:[#allocation2 + $0x74] sm:$0x1]  ;;  %v5800_v50 = vrot.slane %v5798_v48, 4  ;;  %v5807_v36 = vrot.slane %v5805_v16, 4 }
 0x337   : > { %7247 = vmatprep.mubr.msk.bf16.mxu1 %vm3812_vm14, %v6696_v18  ;;  %v5533_v18 = vor.u32 %v5532_v6, %v5529_v20  ;;  %v6699_v2 = vcombine.low %v5491_v41, %v5501_v12  ;;  %v5549_v25 = vsel %vm8137_vm7, %v5544_v39, %v5548_v27  ;;  %v5594_v58 = vshll.u32 %v9559_v33, 16  ;;  %v5764_v20 = vld [vmem:[#allocation2 + $0x18] sm:$0xe]  ;;  %v5765_v12 = vld [vmem:[#allocation2 + $0x24] sm:$0xe] }
 0x338   : > { %v5577_v55 = vrot.slane %v5575_v24, 4  ;;  %v5802_v41 = vsel %vm7914_vm4, %v5800_v50, %v5801_v38  ;;  %v5808_v24 = vrot.slane %v9472_v1, 5  ;;  %v5816_v1 = vsel %vm7914_vm4, %v5814_v28, %v5815_v34 }
 0x339   : > { %v5534_v60 = vrot.slane %v5533_v18, 4  ;;  %v6713_v18 = vrot.slane %v5765_v12, 9  ;;  %v5821_v39 = vrot.slane %v5819_v44, 4  ;;  %v5822_v27 = vrot.slane %v9508_v42, 5 }
 0x33a   : > { %v5581_v54 = vor.u32 %v5580_v3, %v5577_v55  ;;  %v5809_v46 = vsel %vm7914_vm4, %v5807_v36, %v5808_v24  ;;  %v5828_v3 = vrot.slane %v5826_v61, 4  ;;  %v5835_v0 = vrot.slane %v5833_v43, 4 }
 0x33b   : > { %v5539_v17 = vsel %vm8137_vm7, %v5534_v60, %v5538_v62  ;;  %v5806_v8 = vsel %vm7914_vm4, %v6713_v18, %v5805_v16  ;;  %v6715_v60 = vrot.slane %v5767_v31, 9  ;;  %v5823_v57 = vsel %vm7914_vm4, %v5821_v39, %v5822_v27 }
 0x33c   : > { %v6701_v56 = vcombine.low %v5539_v17, %v5549_v25  ;;  %v5582_v62 = vrot.slane %v5581_v54, 4  ;;  %v5830_v42 = vsel %vm7914_vm4, %v5828_v3, %v5829_v23 }
 0x33e   : > { %7248 = vmatmul.mubr.msk.bf16.vlgmr.msra.gmra.mrb[20].mxu1 %vm3812_vm14, %v6697_v22  ;;  %v5570_v22 = vshll.u32 %v9547_v13, 16  ;;  %v5587_v45 = vsel %vm8137_vm7, %v5582_v62, %v5586_v29  ;;  %v5820_v29 = vsel %vm7914_vm4, %v6715_v60, %v5819_v44 }
 0x33f   : > { %7264 = vmatpush3.bf16.msra.mxu1 %v5903_v7  ;;  %7251 = vmatprep.mubr.msk.bf16.mxu1 %vm3812_vm14, %v6698_v52  ;;  %v5596_v7 = vrot.slane %v5594_v58, 5  ;;  %v6712_v52 = vrot.slane %v5764_v20, 9  ;;  %v6724_v17 = vcombine.low %v5820_v29, %v5823_v57  ;;  %v5836_v58 = vrot.slane %v9535_v11, 5 }
 0x340   : > { %v5572_v35 = vrot.slane %v5570_v22, 5  ;;  %v5768_v22 = vld [vmem:[#allocation2 + $0x48] sm:$0xe]  ;;  %v5847_v20 = vrot.slane %v9539_v59, 5 }
 0x341   : > { %v5597_v30 = vsel %vm8137_vm7, %v5592_v9, %v5596_v7  ;;  %v5799_v53 = vsel %vm7914_vm4, %v6712_v52, %v5798_v48  ;;  %v6716_v55 = vrot.slane %v5768_v22, 9  ;;  %v5837_v5 = vsel %vm7914_vm4, %v5835_v0, %v5836_v58 }
 0x342   : > { %v5573_v19 = vsel %vm8137_vm7, %v5568_v47, %v5572_v35  ;;  %v6703_v49 = vcombine.low %v5587_v45, %v5597_v30  ;;  %v6721_v4 = vcombine.low %v5799_v53, %v5802_v41  ;;  %v5769_v47 = vld [vmem:[#allocation2 + $0x54] sm:$0xe]  ;;  %v5770_v35 = vld [vmem:[#allocation2 + $0x60] sm:$0xe]  ;;  %v5849_v7 = vrot.slane %v5847_v20, 4 }
 0x343   : > { %v6702_v6 = vcombine.low %v5563_v21, %v5573_v19  ;;  %v5827_v26 = vsel %vm7914_vm4, %v6716_v55, %v5826_v61  ;;  %v6717_v54 = vrot.slane %v5769_v47, 9  ;;  %v6718_v21 = vrot.slane %v5770_v35, 9 }
 0x344   : > { %v6725_v25 = vcombine.low %v5827_v26, %v5830_v42  ;;  %v5842_v19 = vrot.slane %v5840_v15, 4  ;;  %v5850_v52 = vrot.slane %v9559_v33, 5  ;;  %v6737_v33 = vld [vmem:[%s9673_s4] ss:$0 sm:$0xff] }
 0x345   : > { %v5834_v48 = vsel %vm7914_vm4, %v6717_v54, %v5833_v43 }
 0x346   : > { %7252 = vmatmul.mubr.msk.bf16.gmra.mrb[24].mxu1 %vm3812_vm14, %v6699_v2  ;;  %v6722_v2 = vcombine.low %v5806_v8, %v5809_v46  ;;  %v5844_v11 = vsel %vm7914_vm4, %v5842_v19, %v5843_v51  ;;  %v6726_v13 = vcombine.low %v5834_v48, %v5837_v5  ;;  %v5851_v50 = vsel %vm7914_vm4, %v5849_v7, %v5850_v52 }
 0x347   : > { %7255 = vmatprep.mubr.msk.bf16.mxu1 %vm3812_vm14, %v6700_v10  ;;  %v6723_v10 = vcombine.low %v5813_v32, %v5816_v1 }
 0x34e   : > { %7256 = vmatmul.mubr.msk.bf16.gmra.mrb[28].mxu1 %vm3812_vm14, %v6701_v56  ;;  %v5841_v56 = vsel %vm7914_vm4, %v6718_v21, %v5840_v15 }
 0x34f   : > { %7259 = vmatprep.mubr.msk.bf16.mxu1 %vm3812_vm14, %v6702_v6  ;;  %v5771_v6 = vld [vmem:[#allocation2 + $0x6c] sm:$0xe]  ;;  %v6727_v62 = vcombine.low %v5841_v56, %v5844_v11 }
 0x350   : > { %v6719_v9 = vrot.slane %v5771_v6, 9 }
 0x352   : > { %v5848_v59 = vsel %vm7914_vm4, %v6719_v9, %v5847_v20 }
 0x353   : > { %v6728_v38 = vcombine.low %v5848_v59, %v5851_v50 }
 0x356   : > { %7260 = vmatmul.mubr.msk.bf16.gmra.mrb[32].mxu1 %vm3812_vm14, %v6703_v49 }
 0x357   : > { %7265 = vmatprep.mubr.msk.bf16.mxu1 %vm3812_vm14, %v6721_v4 }
 0x35e   : > { %7266 = vmatmul.mubr.msk.bf16.vlgmr.msra.gmra.mrb[20].mxu1 %vm3812_vm14, %v6722_v2 }
 0x35f   : > { %7269 = vmatprep.mubr.msk.bf16.mxu1 %vm3812_vm14, %v6723_v10 }
 0x366   : > { %7270 = vmatmul.mubr.msk.bf16.gmra.mrb[24].mxu1 %vm3812_vm14, %v6724_v17 }
 0x367   : > { %7273 = vmatprep.mubr.msk.bf16.mxu1 %vm3812_vm14, %v6725_v25 }
 0x36e   : > { %7274 = vmatmul.mubr.msk.bf16.gmra.mrb[28].mxu1 %vm3812_vm14, %v6726_v13 }
 0x36f   : > { %7277 = vmatprep.mubr.msk.bf16.mxu1 %vm3812_vm14, %v6727_v62 }
 0x376   : > { %7278 = vmatmul.mubr.msk.bf16.gmra.mrb[32].mxu1 %vm3812_vm14, %v6728_v38 }
 0x431   : > { %v7267_v45 = vpop.f32.mrb[20].mxu1 }
 0x432   : > { %v6027_v30 = vadd.f32 %v7267_v45, %v6737_v33  ;;  %v5939_v16 = vpop.f32.mrb[21].mxu1 }
 0x433   : > { %v6025_v53 = vadd.f32 %v6737_v33, %v5939_v16  ;;  %v7268_v41 = vpop.f32.mrb[22].mxu1 }
 0x434   : > { %v6043_v12 = vmax.f32 %v6027_v30, 0.0  ;;  %v6028_v40 = vadd.f32 %v7268_v41, %v6737_v33  ;;  %v5942_v14 = vpop.f32.mrb[23].mxu1 }
 0x435   : > { %v6041_v37 = vmax.f32 %v6025_v53, 0.0  ;;  %v6026_v49 = vadd.f32 %v6737_v33, %v5942_v14 }
 0x436   : > { %6059 = vst [vmem:[%s7819_s17 + $0x10] sm:$0xff] %v6043_v12  ;;  %v6044_v4 = vmax.f32 %v6028_v40, 0.0 }
 0x437   : > { %6057 = vst [vmem:[%s7819_s17] sm:$0xff] %v6041_v37  ;;  %v6042_v18 = vmax.f32 %v6026_v49, 0.0 }
 0x438   : > { %6060 = vst [vmem:[%s7819_s17 + $0x18] sm:$0xff] %v6044_v4 }
 0x439   : > { %6058 = vst [vmem:[%s7819_s17 + $0x8] sm:$0xff] %v6042_v18  ;;  %v7271_v36 = vpop.f32.mrb[24].mxu1 }
 0x43a   : > { %v6031_v24 = vadd.f32 %v7271_v36, %v6737_v33  ;;  %v5955_v63 = vpop.f32.mrb[25].mxu1 }
 0x43b   : > { %v6029_v28 = vadd.f32 %v6737_v33, %v5955_v63  ;;  %v7272_v34 = vpop.f32.mrb[26].mxu1 }
 0x43c   : > { %v6047_v8 = vmax.f32 %v6031_v24, 0.0  ;;  %v6032_v46 = vadd.f32 %v7272_v34, %v6737_v33  ;;  %v5958_v44 = vpop.f32.mrb[27].mxu1 }
 0x43d   : > { %v6045_v32 = vmax.f32 %v6029_v28, 0.0  ;;  %v6030_v1 = vadd.f32 %v6737_v33, %v5958_v44 }
 0x43e   : > { %6063 = vst [vmem:[%s7819_s17 + $0x30] sm:$0xff] %v6047_v8  ;;  %v6048_v31 = vmax.f32 %v6032_v46, 0.0 }
 0x43f   : > { %6061 = vst [vmem:[%s7819_s17 + $0x20] sm:$0xff] %v6045_v32  ;;  %v6046_v61 = vmax.f32 %v6030_v1, 0.0 }
 0x440   : > { %6064 = vst [vmem:[%s7819_s17 + $0x38] sm:$0xff] %v6048_v31 }
 0x441   : > { %6062 = vst [vmem:[%s7819_s17 + $0x28] sm:$0xff] %v6046_v61  ;;  %v7275_v22 = vpop.f32.mrb[28].mxu1 }
 0x442   : > { %v6035_v2 = vadd.f32 %v7275_v22, %v6737_v33  ;;  %v5971_v10 = vpop.f32.mrb[29].mxu1 }
 0x443   : > { %v6033_v60 = vadd.f32 %v6737_v33, %v5971_v10  ;;  %v7276_v39 = vpop.f32.mrb[30].mxu1 }
 0x444   : > { %v6051_v27 = vmax.f32 %v6035_v2, 0.0  ;;  %v6036_v55 = vadd.f32 %v7276_v39, %v6737_v33  ;;  %v5974_v3 = vpop.f32.mrb[31].mxu1 }
 0x445   : > { %v6049_v23 = vmax.f32 %v6033_v60, 0.0  ;;  %v6034_v29 = vadd.f32 %v6737_v33, %v5974_v3 }
 0x446   : > { %6067 = vst [vmem:[%s7819_s17 + $0x50] sm:$0xff] %v6051_v27  ;;  %v6052_v57 = vmax.f32 %v6036_v55, 0.0 }
 0x447   : > { %6065 = vst [vmem:[%s7819_s17 + $0x40] sm:$0xff] %v6049_v23  ;;  %v6050_v43 = vmax.f32 %v6034_v29, 0.0 }
 0x448   : > { %6068 = vst [vmem:[%s7819_s17 + $0x58] sm:$0xff] %v6052_v57 }
 0x449   : > { %6066 = vst [vmem:[%s7819_s17 + $0x48] sm:$0xff] %v6050_v43  ;;  %v7279_v26 = vpop.f32.mrb[32].mxu1 }
 0x44a   : > { %v6039_v42 = vadd.f32 %v7279_v26, %v6737_v33  ;;  %v5987_v47 = vpop.f32.mrb[33].mxu1 }
 0x44b   : > { %v6037_v15 = vadd.f32 %v6737_v33, %v5987_v47  ;;  %v7280_v35 = vpop.f32.mrb[34].mxu1 }
 0x44c   : > { %v6055_v17 = vmax.f32 %v6039_v42, 0.0  ;;  %v6040_v25 = vadd.f32 %v7280_v35, %v6737_v33  ;;  %v5990_v54 = vpop.f32.mrb[35].mxu1 }
 0x44d   : > { %v6053_v0 = vmax.f32 %v6037_v15, 0.0  ;;  %v6038_v58 = vadd.f32 %v6737_v33, %v5990_v54 }
 0x44e   : > { %6071 = vst [vmem:[%s7819_s17 + $0x70] sm:$0xff] %v6055_v17  ;;  %v6056_v21 = vmax.f32 %v6040_v25, 0.0 }
 0x44f   : > { %6069 = vst [vmem:[%s7819_s17 + $0x60] sm:$0xff] %v6053_v0  ;;  %v6054_v19 = vmax.f32 %v6038_v58, 0.0 }
 0x450   : > { %6072 = vst [vmem:[%s7819_s17 + $0x78] sm:$0xff] %v6056_v21 }
 0x451   : > { %6070 = vst [vmem:[%s7819_s17 + $0x68] sm:$0xff] %v6054_v19 }
 0x452 PF: > { %s15_s22 = sadd.s32 1, %s7734_s22   ;;  %s9754_s18 = smov %s7726_s20 }
 0x453   : > { %p12_p9 = scmp.ge.s32.totalorder %s15_s22, 6   ;;  %s9755_s19 = smov %s7730_s21 }
 0x454   : > { %s9756_s20 = smov %s9759_s23  ;;  %s9757_s21 = smov %s9763_s24 }
 0x455   :  { %14 = sbr.rel (!%p12_p9) target bundleno = 3 (0x3), region = 100 }

</bundles_post_ra>
